<compile_context>
chip_gen: v6e
topology: v6e:2x2x1
jax: 0.10.0
libtpu: 0.0.40
codegen_flags: <defaults>
</compile_context>

<pallas_src>
import functools

import jax
import jax.numpy as jnp
from jax.experimental import pallas as pl
from jax.experimental.pallas import tpu as pltpu

# MXU operand dtype.  Set to jnp.float32 for bit-close fp32 semantics
# (the __main__ correctness check tightens its tolerance automatically).
COMPUTE_DTYPE = jnp.bfloat16


# ----------------------------------------------------------------------------
# small helpers
# ----------------------------------------------------------------------------
def _round_up(v, m):
    return ((v + m - 1) // m) * m


@functools.lru_cache(maxsize=None)
def _vmem_limit_bytes():
    """Generation-aware scoped-VMEM limit: ~96MiB on v5e/v6e, ~48MiB on v7x."""
    cap = 64 * 1024 * 1024
    try:
        cap = int(getattr(pltpu.get_tpu_info(), "vmem_capacity_bytes", cap))
    except Exception:
        pass
    return min(cap * 3 // 4, 100 * 1024 * 1024)


def _tile_caps():
    """(max_row_tile, max_edge_tile): bigger on 128MiB chips, tighter on v7x."""
    if _vmem_limit_bytes() >= 64 * 1024 * 1024:
        return 1024, 1024
    return 512, 512


def _tile_and_pad(n, max_tile, multiple):
    """Return (tile, padded_total) with padded_total % tile == 0."""
    r = _round_up(max(n, 1), multiple)
    if r <= max_tile:
        return r, r
    return max_tile, _round_up(n, max_tile)


def _pad2(a, rows, cols):
    return jnp.pad(a, ((0, rows - a.shape[0]), (0, cols - a.shape[1])))


def _pad_rows(a, rows):
    return jnp.pad(a, ((0, rows - a.shape[0]), (0, 0)))


# ----------------------------------------------------------------------------
# Pallas kernels
# ----------------------------------------------------------------------------
def _mlp2_kernel(x_ref, w1_ref, b1_ref, w2_ref, b2_ref, o_ref):
    """Fused Linear -> ReLU -> Linear on one row tile (weights VMEM-resident)."""
    h = jnp.dot(x_ref[...].astype(w1_ref.dtype), w1_ref[...],
                preferred_element_type=jnp.float32)
    h = jnp.maximum(h + b1_ref[...], 0.0)
    o = jnp.dot(h.astype(w2_ref.dtype), w2_ref[...],
                preferred_element_type=jnp.float32)
    o_ref[...] = (o + b2_ref[...]).astype(o_ref.dtype)


def _node_encoder_kernel(x_ref, c_ref, w1x_ref, w1c_ref, b1_ref, w2_ref, b2_ref,
                         o_ref):
    """relu(x@W1x + cond@W1c + b1)@W2 + b2 — split weights, no HBM concat."""
    cdt = w1x_ref.dtype
    h = jnp.dot(x_ref[...].astype(cdt), w1x_ref[...],
                preferred_element_type=jnp.float32)
    h = h + jnp.dot(c_ref[...].astype(cdt), w1c_ref[...],
                    preferred_element_type=jnp.float32)
    h = jnp.maximum(h + b1_ref[...], 0.0)
    o = jnp.dot(h.astype(w2_ref.dtype), w2_ref[...],
                preferred_element_type=jnp.float32)
    o_ref[...] = (o + b2_ref[...]).astype(o_ref.dtype)


def _layer_kernel(x_ref, e_ref, rowc_ref, colc_ref, invd_ref,
                  w1e_ref, b1e_ref, w2e_ref, b2e_ref,
                  w1n_ref, b1n_ref, w2n_ref, b2n_ref,
                  e_out_ref, x_out_ref,
                  agg_ref):
    """One fused MeshGraphNet processor layer; grid axis tiles the E dimension.

    Per E tile:
      * one-hot gather of x[row]/x[col] via MXU (x VMEM-resident [N_pad, Hp])
      * edge MLP as ONE K=3*Hp dot on the VMEM concat [src|dst|e]
      * scatter-sum into the f32 agg scratch by REUSING g_src transposed
        (lax.dot_general contraction over the edge axis) — no second one-hot.
    On the last E tile:
      * mean (precomputed inverse degree), node MLP as ONE K=2*Hp dot on
        [x|agg], residual add, single store of the new x.

    NOTE: the grid axis MUST stay "arbitrary" (sequential) — agg accumulates
    across tiles and x_out is written only on the last tile.
    """
    t = pl.program_id(0)

    @pl.when(t == 0)
    def _():
        agg_ref[...] = jnp.zeros_like(agg_ref)

    x = x_ref[...]                                     # [N_pad, Hp] (bf16/f32)
    cdt = x.dtype
    n_pad = x.shape[0]
    te = e_ref.shape[0]

    # --- one-hot gathers of x[row], x[col] for this edge tile (MXU) ---
    rowc = rowc_ref[...]                               # [TE, 1] int32
    colc = colc_ref[...]                               # [TE, 1] int32
    lane_nodes = jax.lax.broadcasted_iota(jnp.int32, (te, n_pad), 1)
    g_src = (rowc == lane_nodes).astype(jnp.float32).astype(cdt)   # [TE, N_pad]
    g_dst = (colc == lane_nodes).astype(jnp.float32).astype(cdt)
    # TODO(synk): replace the g_dst path with jnp.take/dynamic_gather on the
    # VMEM-resident x once TE != N_pad sublane gathers lower cleanly.
    src = jnp.dot(g_src, x, preferred_element_type=jnp.float32).astype(cdt)
    dst = jnp.dot(g_dst, x, preferred_element_type=jnp.float32).astype(cdt)

    # --- edge MLP: single K=3*Hp dot (better MXU depth use on v6e/v7x) ---
    packed_e = jnp.concatenate([src, dst, e_ref[...]], axis=-1)   # [TE, 3*Hp]
    h = jnp.dot(packed_e, w1e_ref[...], preferred_element_type=jnp.float32)
    h = jnp.maximum(h + b1e_ref[...], 0.0)
    e_new = jnp.dot(h.astype(cdt), w2e_ref[...],
                    preferred_element_type=jnp.float32) + b2e_ref[...]
    e_new_lp = e_new.astype(e_out_ref.dtype)
    e_out_ref[...] = e_new_lp

    # --- scatter-sum: reuse g_src transposed (no second one-hot build) ---
    agg_ref[...] += jax.lax.dot_general(
        g_src, e_new_lp, (((0,), (0,)), ((), ())),
        preferred_element_type=jnp.float32)

    # --- last tile: mean + node MLP (single K=2*Hp dot) + residual ---
    @pl.when(t == pl.num_programs(0) - 1)
    def _():
        mean = agg_ref[...] * invd_ref[...]            # precomputed 1/deg
        packed_n = jnp.concatenate([x, mean.astype(cdt)], axis=-1)  # [N_pad,2Hp]
        hn = jnp.dot(packed_n, w1n_ref[...], preferred_element_type=jnp.float32)
        hn = jnp.maximum(hn + b1n_ref[...], 0.0)
        x_new = jnp.dot(hn.astype(cdt), w2n_ref[...],
                        preferred_element_type=jnp.float32)
        x_new = x_new + b2n_ref[...] + x.astype(jnp.float32)   # fused residual
        x_out_ref[...] = x_new.astype(x_out_ref.dtype)


# ----------------------------------------------------------------------------
# pallas_call wrappers
# ----------------------------------------------------------------------------
def mlp2_rows(x, w1, b1, w2, b2, tile_rows, out_dtype):
    rows, din = x.shape
    h = w1.shape[1]
    dout = w2.shape[1]
    flops = int(2 * rows * (din * h + h * dout))
    bytes_acc = int(x.size * x.dtype.itemsize
                    + rows * dout * jnp.dtype(out_dtype).itemsize
                    + w1.size * w1.dtype.itemsize + w2.size * w2.dtype.itemsize
                    + (b1.size + b2.size) * 4)
    return pl.pallas_call(
        _mlp2_kernel,
        out_shape=jax.ShapeDtypeStruct((rows, dout), out_dtype),
        grid=(rows // tile_rows,),
        in_specs=[
            pl.BlockSpec((tile_rows, din), lambda i: (i, 0)),
            pl.BlockSpec((din, h), lambda i: (0, 0)),
            pl.BlockSpec((1, h), lambda i: (0, 0)),
            pl.BlockSpec((h, dout), lambda i: (0, 0)),
            pl.BlockSpec((1, dout), lambda i: (0, 0)),
        ],
        out_specs=pl.BlockSpec((tile_rows, dout), lambda i: (i, 0)),
        compiler_params=pltpu.CompilerParams(
            dimension_semantics=("parallel",),
            vmem_limit_bytes=_vmem_limit_bytes()),
        cost_estimate=pl.CostEstimate(flops=flops, transcendentals=0,
                                      bytes_accessed=bytes_acc),
    )(x, w1, b1, w2, b2)


def node_encode_rows(x, c, enc, tile_rows, out_dtype):
    rows, dxin = x.shape
    dcin = c.shape[1]
    w1x, w1c, b1, w2, b2 = enc
    hp = w1x.shape[1]
    flops = int(2 * rows * ((dxin + dcin) * hp + hp * hp))
    bytes_acc = int(x.size * x.dtype.itemsize + c.size * c.dtype.itemsize
                    + rows * hp * jnp.dtype(out_dtype).itemsize
                    + sum(int(w.size) * w.dtype.itemsize for w in enc))
    return pl.pallas_call(
        _node_encoder_kernel,
        out_shape=jax.ShapeDtypeStruct((rows, hp), out_dtype),
        grid=(rows // tile_rows,),
        in_specs=[
            pl.BlockSpec((tile_rows, dxin), lambda i: (i, 0)),
            pl.BlockSpec((tile_rows, dcin), lambda i: (i, 0)),
            pl.BlockSpec((dxin, hp), lambda i: (0, 0)),
            pl.BlockSpec((dcin, hp), lambda i: (0, 0)),
            pl.BlockSpec((1, hp), lambda i: (0, 0)),
            pl.BlockSpec((hp, hp), lambda i: (0, 0)),
            pl.BlockSpec((1, hp), lambda i: (0, 0)),
        ],
        out_specs=pl.BlockSpec((tile_rows, hp), lambda i: (i, 0)),
        compiler_params=pltpu.CompilerParams(
            dimension_semantics=("parallel",),
            vmem_limit_bytes=_vmem_limit_bytes()),
        cost_estimate=pl.CostEstimate(flops=flops, transcendentals=0,
                                      bytes_accessed=bytes_acc),
    )(x, c, w1x, w1c, b1, w2, b2)


def gnn_layer(x_pad, e_feat, row_c, col_c, inv_deg, lparams, tile_e):
    n_pad, hp = x_pad.shape
    e_rows = e_feat.shape[0]
    flops = int(2 * e_rows * n_pad * hp * 3                 # 2 gathers + scatter
                + 2 * e_rows * (3 * hp * hp + hp * hp)      # edge MLP
                + 2 * n_pad * (2 * hp * hp + hp * hp))      # node MLP
    bytes_acc = int(2 * x_pad.size * x_pad.dtype.itemsize
                    + 2 * e_feat.size * e_feat.dtype.itemsize
                    + sum(int(w.size) * w.dtype.itemsize for w in lparams)
                    + 2 * e_rows * 4 + n_pad * 4)
    e_out, x_out = pl.pallas_call(
        _layer_kernel,
        out_shape=(jax.ShapeDtypeStruct((e_rows, hp), e_feat.dtype),
                   jax.ShapeDtypeStruct((n_pad, hp), x_pad.dtype)),
        grid=(e_rows // tile_e,),
        in_specs=[
            pl.BlockSpec((n_pad, hp), lambda t: (0, 0)),     # x (VMEM-resident)
            pl.BlockSpec((tile_e, hp), lambda t: (t, 0)),    # edge feature tile
            pl.BlockSpec((tile_e, 1), lambda t: (t, 0)),     # row idx (column)
            pl.BlockSpec((tile_e, 1), lambda t: (t, 0)),     # col idx (column)
            pl.BlockSpec((n_pad, 1), lambda t: (0, 0)),      # 1/deg (precomputed)
            pl.BlockSpec((3 * hp, hp), lambda t: (0, 0)),    # W1_edge [src|dst|e]
            pl.BlockSpec((1, hp), lambda t: (0, 0)),         # b1_e
            pl.BlockSpec((hp, hp), lambda t: (0, 0)),        # W2_e
            pl.BlockSpec((1, hp), lambda t: (0, 0)),         # b2_e
            pl.BlockSpec((2 * hp, hp), lambda t: (0, 0)),    # W1_node [x|agg]
            pl.BlockSpec((1, hp), lambda t: (0, 0)),         # b1_n
            pl.BlockSpec((hp, hp), lambda t: (0, 0)),        # W2_n
            pl.BlockSpec((1, hp), lambda t: (0, 0)),         # b2_n
        ],
        out_specs=(pl.BlockSpec((tile_e, hp), lambda t: (t, 0)),
                   pl.BlockSpec((n_pad, hp), lambda t: (0, 0))),
        scratch_shapes=[pltpu.VMEM((n_pad, hp), jnp.float32)],
        compiler_params=pltpu.CompilerParams(
            dimension_semantics=("arbitrary",),   # sequential: agg accumulates
            vmem_limit_bytes=_vmem_limit_bytes()),
        cost_estimate=pl.CostEstimate(flops=flops, transcendentals=0,
                                      bytes_accessed=bytes_acc),
    )(x_pad, e_feat, row_c, col_c, inv_deg, *lparams)
    return x_out, e_out


# ----------------------------------------------------------------------------
# Parameter init (deterministic, fp32) + repack into padded / packed slabs
# ----------------------------------------------------------------------------
def _linear(key, din, dout, scale=0.1):
    kw, kb = jax.random.split(key)
    w = scale * jax.random.normal(kw, (din, dout), jnp.float32)
    b = scale * jax.random.normal(kb, (dout,), jnp.float32)
    return w, b


def _mlp2_params(key, din, dh, dout):
    k1, k2 = jax.random.split(key)
    w1, b1 = _linear(k1, din, dh)
    w2, b2 = _linear(k2, dh, dout)
    return (w1, b1, w2, b2)


def init_params(key, node_in, edge_in, cond_in, node_out, hidden, num_layers):
    keys = jax.random.split(key, 3 + 2 * num_layers)
    params = {
        "node_encoder": _mlp2_params(keys[0], node_in + cond_in, hidden, hidden),
        "edge_encoder": _mlp2_params(keys[1], edge_in, hidden, hidden),
        "node_decoder": _mlp2_params(keys[2], hidden, hidden, node_out),
        "processor": [],
    }
    for l in range(num_layers):
        edge_mlp = _mlp2_params(keys[3 + 2 * l], 3 * hidden, hidden, hidden)
        node_mlp = _mlp2_params(keys[4 + 2 * l], 2 * hidden, hidden, hidden)
        params["processor"].append({"edge_mlp": edge_mlp, "node_mlp": node_mlp})
    return params


def pack_params(params, hidden, node_in, cond_in, edge_in, node_out,
                dtype=COMPUTE_DTYPE):
    """Zero-pad feature dims to 128 lanes, cast weights to the compute dtype,
    and pack the processor first-layer weights into [src|dst|e] / [x|agg]
    slabs so the kernel can issue single K>=256 dots (v6e/v7x MXU depth)."""
    hp = _round_up(hidden, 128)
    nop = _round_up(node_out, 128)

    def pad_w(w, rows, cols):
        return _pad2(w, rows, cols).astype(dtype)

    def pad_b(b, cols):
        return jnp.pad(b.reshape(1, -1),
                       ((0, 0), (0, cols - b.shape[0]))).astype(jnp.float32)

    def place(blocks, rows, cols, row_offsets):
        slab = jnp.zeros((rows, cols), jnp.float32)
        for blk, off in zip(blocks, row_offsets):
            slab = slab.at[off:off + blk.shape[0], :blk.shape[1]].set(blk)
        return slab.astype(dtype)

    w1, b1, w2, b2 = params["node_encoder"]
    enc_node = (pad_w(w1[:node_in], node_in, hp),
                pad_w(w1[node_in:], cond_in, hp),
                pad_b(b1, hp), pad_w(w2, hp, hp), pad_b(b2, hp))

    w1, b1, w2, b2 = params["edge_encoder"]
    enc_edge = (pad_w(w1, edge_in, hp), pad_b(b1, hp),
                pad_w(w2, hp, hp), pad_b(b2, hp))

    layers = []
    for lay in params["processor"]:
        ew1, eb1, ew2, eb2 = lay["edge_mlp"]
        nw1, nb1, nw2, nb2 = lay["node_mlp"]
        w1e = place([ew1[:hidden], ew1[hidden:2 * hidden], ew1[2 * hidden:]],
                    3 * hp, hp, [0, hp, 2 * hp])            # [src|dst|e] slab
        w1n = place([nw1[:hidden], nw1[hidden:]],
                    2 * hp, hp, [0, hp])                     # [x|agg] slab
        layers.append((w1e, pad_b(eb1, hp), pad_w(ew2, hp, hp), pad_b(eb2, hp),
                       w1n, pad_b(nb1, hp), pad_w(nw2, hp, hp), pad_b(nb2, hp)))

    dw1, db1, dw2, db2 = params["node_decoder"]
    dec = (pad_w(dw1, hp, hp), pad_b(db1, hp),
           pad_w(dw2, hp, nop), pad_b(db2, nop))             # lane-dense slab

    return {"enc_node": enc_node, "enc_edge": enc_edge,
            "layers": tuple(layers), "decoder": dec}


# ----------------------------------------------------------------------------
# Forward pass
# ----------------------------------------------------------------------------
def forward_pallas(packed, x, edge_index, edge_attr, conditions, batch, *,
                   node_out):
    n = x.shape[0]
    e = edge_attr.shape[0]
    hp = packed["enc_node"][3].shape[0]     # padded hidden width (static)
    cdt = packed["enc_node"][3].dtype       # compute dtype (bf16 or f32)

    max_row_tile, max_edge_tile = _tile_caps()
    tile_n, n_pad = _tile_and_pad(n, max_row_tile, 128)   # 128: lane-dense
    tile_e, e_pad = _tile_and_pad(e, max_edge_tile, 128)  # one-hots / aligned K

    # conditions[batch]: tiny one-off gather; kept in XLA.
    cond_per_node = jnp.take(conditions, batch, axis=0)

    # --- encoders (fused, row-tiled, split weights -> no concat in HBM) ---
    x_p = _pad_rows(x.astype(jnp.float32), n_pad)
    c_p = _pad_rows(cond_per_node.astype(jnp.float32), n_pad)
    xh = node_encode_rows(x_p, c_p, packed["enc_node"], tile_n, cdt)  # [n_pad,hp]

    e_p = _pad_rows(edge_attr.astype(jnp.float32), e_pad)
    eh = mlp2_rows(e_p, *packed["enc_edge"], tile_rows=tile_e,
                   out_dtype=cdt)                                     # [e_pad,hp]

    # edge indices (padded edges get -1 -> never match any node id).
    row = edge_index[0].astype(jnp.int32)
    col = edge_index[1].astype(jnp.int32)
    fill = jnp.full((e_pad - e,), -1, jnp.int32)
    row_p = jnp.concatenate([row, fill])
    col_p = jnp.concatenate([col, fill])
    row_c = row_p.reshape(e_pad, 1)
    col_c = col_p.reshape(e_pad, 1)

    # Inverse degree precomputed once in XLA (layer-invariant): scatter-mean
    # becomes (scatter-sum) * inv_deg inside the kernel (no counts scratch).
    deg = jnp.zeros((n_pad,), jnp.float32).at[row].add(1.0)
    inv_deg = (1.0 / jnp.maximum(deg, 1.0)).reshape(n_pad, 1)

    # --- processor: ONE fused pallas_call per layer ---
    for lparams in packed["layers"]:
        xh, eh = gnn_layer(xh, eh, row_c, col_c, inv_deg, lparams, tile_e)

    # --- decoder: lane-dense 128-wide slab, slice real outputs outside ---
    out = mlp2_rows(xh, *packed["decoder"], tile_rows=tile_n,
                    out_dtype=jnp.float32)
    return out[:n, :node_out]


# ----------------------------------------------------------------------------
# Pure-JAX reference (fp32, no Pallas) for a correctness cross-check
# ----------------------------------------------------------------------------
def _mlp2_ref(x, w1, b1, w2, b2):
    return jnp.maximum(x @ w1 + b1, 0.0) @ w2 + b2


def _scatter_mean_ref(edge_attr, idx, n):
    sums = jax.ops.segment_sum(edge_attr, idx, num_segments=n)
    counts = jax.ops.segment_sum(jnp.ones((edge_attr.shape[0],), jnp.float32),
                                 idx, num_segments=n)
    return sums / jnp.maximum(counts, 1.0)[:, None]


def forward_ref(params, x, edge_index, edge_attr, conditions, batch):
    n = x.shape[0]
    x = jnp.concatenate([x, jnp.take(conditions, batch, axis=0)], axis=1)
    x = _mlp2_ref(x, *params["node_encoder"])
    edge_attr = _mlp2_ref(edge_attr, *params["edge_encoder"])
    row, col = edge_index[0], edge_index[1]
    for layer in params["processor"]:
        x_res = x
        combined_e = jnp.concatenate(
            [jnp.take(x, row, axis=0), jnp.take(x, col, axis=0), edge_attr],
            axis=1)
        edge_attr = _mlp2_ref(combined_e, *layer["edge_mlp"])
        agg = _scatter_mean_ref(edge_attr, row, n)
        x = _mlp2_ref(jnp.concatenate([x, agg], axis=1),
                      *layer["node_mlp"]) + x_res
    return _mlp2_ref(x, *params["node_decoder"])


# ----------------------------------------------------------------------------
if __name__ == "__main__":
    N, E, B = 64, 128, 2
    NODE_IN, EDGE_IN, COND_IN = 8, 4, 6
    NODE_OUT, HIDDEN, NUM_LAYERS = 3, 32, 2

    key = jax.random.PRNGKey(0)
    kp, kx, ke, kc, kei = jax.random.split(key, 5)

    params = init_params(kp, NODE_IN, EDGE_IN, COND_IN, NODE_OUT, HIDDEN,
                         NUM_LAYERS)
    packed = pack_params(params, HIDDEN, NODE_IN, COND_IN, EDGE_IN, NODE_OUT)

    x = jax.random.normal(kx, (N, NODE_IN), jnp.float32)
    edge_attr = jax.random.normal(ke, (E, EDGE_IN), jnp.float32)
    conditions = jax.random.normal(kc, (B, COND_IN), jnp.float32)
    edge_index = jax.random.randint(kei, (2, E), 0, N, dtype=jnp.int32)
    batch = jnp.concatenate([jnp.zeros((N // 2,), jnp.int32),
                             jnp.ones((N - N // 2,), jnp.int32)])

    fwd = jax.jit(functools.partial(forward_pallas, node_out=NODE_OUT))
    out = jax.block_until_ready(
        fwd(packed, x, edge_index, edge_attr, conditions, batch))

    ref = forward_ref(params, x, edge_index, edge_attr, conditions, batch)
    assert out.shape == (N, NODE_OUT), out.shape
    max_err = float(jnp.max(jnp.abs(out - ref)))
    # fp32 path is bit-close; bf16 MXU operands relax the tolerance.
    tol = 5e-4 if COMPUTE_DTYPE == jnp.float32 else 5e-2
    assert jnp.allclose(out, ref, atol=tol, rtol=tol), max_err

    print("KERNEL_OK")
</pallas_src>

<mosaic_0001>
module attributes {stable_mosaic.version = 11 : i64} {
  func.func private @main(%arg0: i32) attributes {dimension_semantics = [#tpu.dimension_semantics<core_parallel>], iteration_bounds = array<i64: 2>, tpu.core_type = #tpu.core_type<sc_scalar_subcore>, window_params = []} {
    return
  }
}

module attributes {stable_mosaic.version = 11 : i64} {
  func.func private @main(%arg0: i32) attributes {dimension_semantics = [#tpu.dimension_semantics<core_parallel>], iteration_bounds = array<i64: 2>, tpu.core_type = #tpu.core_type<sc_scalar_subcore>, window_params = []} {
    return
  }
}

module attributes {stable_mosaic.version = 11 : i64} {
  func.func @_mlp2_kernel(%arg0: i32, %arg1: memref<128x4xf32, #tpu.memory_space<vmem>>, %arg2: memref<4x128xbf16, #tpu.memory_space<vmem>>, %arg3: memref<1x128xf32, #tpu.memory_space<vmem>>, %arg4: memref<128x128xbf16, #tpu.memory_space<vmem>>, %arg5: memref<1x128xf32, #tpu.memory_space<vmem>>, %arg6: memref<128x128xbf16, #tpu.memory_space<vmem>>) attributes {dimension_semantics = [#tpu.dimension_semantics<parallel>], iteration_bounds = array<i64: 1>, scalar_prefetch = 0 : i64, scratch_operands = 0 : i64, tpu.core_type = #tpu.core_type<tc>, window_params = [{transform_indices = @transform_0, window_bounds = array<i64: 128, 4>}, {pipeline_mode = #tpu.pipeline_mode<synchronous>, transform_indices = @transform_1, window_bounds = array<i64: 4, 128>}, {pipeline_mode = #tpu.pipeline_mode<synchronous>, transform_indices = @transform_2, window_bounds = array<i64: 1, 128>}, {pipeline_mode = #tpu.pipeline_mode<synchronous>, transform_indices = @transform_3, window_bounds = array<i64: 128, 128>}, {pipeline_mode = #tpu.pipeline_mode<synchronous>, transform_indices = @transform_4, window_bounds = array<i64: 1, 128>}, {transform_indices = @transform_5, window_bounds = array<i64: 128, 128>}]} {
    %c0 = arith.constant 0 : index
    %c0_0 = arith.constant 0 : index
    %0 = vector.load %arg1[%c0, %c0_0] : memref<128x4xf32, #tpu.memory_space<vmem>>, vector<128x4xf32>
    %1 = arith.truncf %0 : vector<128x4xf32> to vector<128x4xbf16>
    %c0_1 = arith.constant 0 : index
    %c0_2 = arith.constant 0 : index
    %2 = vector.load %arg2[%c0_1, %c0_2] : memref<4x128xbf16, #tpu.memory_space<vmem>>, vector<4x128xbf16>
    %cst = arith.constant dense<0.000000e+00> : vector<128x128xf32>
    %3 = tpu.matmul %1, %2, %cst {dimension_numbers = #tpu.dot_dimension_numbers<[1], [0], [0], [1], [0, 0, 1, 1], [], []>} : vector<128x4xbf16>, vector<4x128xbf16>, vector<128x128xf32> -> vector<128x128xf32>
    %c0_3 = arith.constant 0 : index
    %c0_4 = arith.constant 0 : index
    %4 = vector.load %arg3[%c0_3, %c0_4] : memref<1x128xf32, #tpu.memory_space<vmem>>, vector<1x128xf32>
    %5 = vector.broadcast %4 : vector<1x128xf32> to vector<128x128xf32>
    %6 = arith.addf %3, %5 : vector<128x128xf32>
    %cst_5 = arith.constant 0.000000e+00 : f32
    %7 = vector.broadcast %cst_5 : f32 to vector<128x128xf32>
    %8 = arith.maximumf %6, %7 : vector<128x128xf32>
    %9 = arith.truncf %8 : vector<128x128xf32> to vector<128x128xbf16>
    %c0_6 = arith.constant 0 : index
    %c0_7 = arith.constant 0 : index
    %10 = vector.load %arg4[%c0_6, %c0_7] : memref<128x128xbf16, #tpu.memory_space<vmem>>, vector<128x128xbf16>
    %cst_8 = arith.constant dense<0.000000e+00> : vector<128x128xf32>
    %11 = tpu.matmul %9, %10, %cst_8 {dimension_numbers = #tpu.dot_dimension_numbers<[1], [0], [0], [1], [0, 0, 1, 1], [], []>} : vector<128x128xbf16>, vector<128x128xbf16>, vector<128x128xf32> -> vector<128x128xf32>
    %c0_9 = arith.constant 0 : index
    %c0_10 = arith.constant 0 : index
    %12 = vector.load %arg5[%c0_9, %c0_10] : memref<1x128xf32, #tpu.memory_space<vmem>>, vector<1x128xf32>
    %13 = vector.broadcast %12 : vector<1x128xf32> to vector<128x128xf32>
    %14 = arith.addf %11, %13 : vector<128x128xf32>
    %15 = arith.truncf %14 : vector<128x128xf32> to vector<128x128xbf16>
    %c0_11 = arith.constant 0 : index
    %c0_12 = arith.constant 0 : index
    %16 = vector.load %arg6[%c0_11, %c0_12] : memref<128x128xbf16, #tpu.memory_space<vmem>>, vector<128x128xbf16>
    tpu.vector_store %arg6[%c0_11, %c0_12], %15 {strides = array<i32>} : memref<128x128xbf16, #tpu.memory_space<vmem>>, vector<128x128xbf16>,
    return
  }
  func.func @transform_0(%arg0: i32) -> (i32, i32) {
    %c0_i32 = arith.constant 0 : i32
    %c0_i32_0 = arith.constant 0 : i32
    return %arg0, %c0_i32 : i32, i32
  }
  func.func @transform_1(%arg0: i32) -> (i32, i32) {
    %c0_i32 = arith.constant 0 : i32
    %c0_i32_0 = arith.constant 0 : i32
    %c0_i32_1 = arith.constant 0 : i32
    return %c0_i32, %c0_i32_0 : i32, i32
  }
  func.func @transform_2(%arg0: i32) -> (i32, i32) {
    %c0_i32 = arith.constant 0 : i32
    %c0_i32_0 = arith.constant 0 : i32
    %c0_i32_1 = arith.constant 0 : i32
    return %c0_i32, %c0_i32_0 : i32, i32
  }
  func.func @transform_3(%arg0: i32) -> (i32, i32) {
    %c0_i32 = arith.constant 0 : i32
    %c0_i32_0 = arith.constant 0 : i32
    %c0_i32_1 = arith.constant 0 : i32
    return %c0_i32, %c0_i32_0 : i32, i32
  }
  func.func @transform_4(%arg0: i32) -> (i32, i32) {
    %c0_i32 = arith.constant 0 : i32
    %c0_i32_0 = arith.constant 0 : i32
    %c0_i32_1 = arith.constant 0 : i32
    return %c0_i32, %c0_i32_0 : i32, i32
  }
  func.func @transform_5(%arg0: i32) -> (i32, i32) {
    %c0_i32 = arith.constant 0 : i32
    %c0_i32_0 = arith.constant 0 : i32
    return %arg0, %c0_i32 : i32, i32
  }
}

module attributes {stable_mosaic.version = 11 : i64} {
  func.func @_node_encoder_kernel(%arg0: i32, %arg1: memref<128x8xf32, #tpu.memory_space<vmem>>, %arg2: memref<128x6xf32, #tpu.memory_space<vmem>>, %arg3: memref<8x128xbf16, #tpu.memory_space<vmem>>, %arg4: memref<6x128xbf16, #tpu.memory_space<vmem>>, %arg5: memref<1x128xf32, #tpu.memory_space<vmem>>, %arg6: memref<128x128xbf16, #tpu.memory_space<vmem>>, %arg7: memref<1x128xf32, #tpu.memory_space<vmem>>, %arg8: memref<128x128xbf16, #tpu.memory_space<vmem>>) attributes {dimension_semantics = [#tpu.dimension_semantics<parallel>], iteration_bounds = array<i64: 1>, scalar_prefetch = 0 : i64, scratch_operands = 0 : i64, tpu.core_type = #tpu.core_type<tc>, window_params = [{transform_indices = @transform_0, window_bounds = array<i64: 128, 8>}, {transform_indices = @transform_1, window_bounds = array<i64: 128, 6>}, {pipeline_mode = #tpu.pipeline_mode<synchronous>, transform_indices = @transform_2, window_bounds = array<i64: 8, 128>}, {pipeline_mode = #tpu.pipeline_mode<synchronous>, transform_indices = @transform_3, window_bounds = array<i64: 6, 128>}, {pipeline_mode = #tpu.pipeline_mode<synchronous>, transform_indices = @transform_4, window_bounds = array<i64: 1, 128>}, {pipeline_mode = #tpu.pipeline_mode<synchronous>, transform_indices = @transform_5, window_bounds = array<i64: 128, 128>}, {pipeline_mode = #tpu.pipeline_mode<synchronous>, transform_indices = @transform_6, window_bounds = array<i64: 1, 128>}, {transform_indices = @transform_7, window_bounds = array<i64: 128, 128>}]} {
    %c0 = arith.constant 0 : index
    %c0_0 = arith.constant 0 : index
    %0 = vector.load %arg1[%c0, %c0_0] : memref<128x8xf32, #tpu.memory_space<vmem>>, vector<128x8xf32>
    %1 = arith.truncf %0 : vector<128x8xf32> to vector<128x8xbf16>
    %c0_1 = arith.constant 0 : index
    %c0_2 = arith.constant 0 : index
    %2 = vector.load %arg3[%c0_1, %c0_2] : memref<8x128xbf16, #tpu.memory_space<vmem>>, vector<8x128xbf16>
    %cst = arith.constant dense<0.000000e+00> : vector<128x128xf32>
    %3 = tpu.matmul %1, %2, %cst {dimension_numbers = #tpu.dot_dimension_numbers<[1], [0], [0], [1], [0, 0, 1, 1], [], []>} : vector<128x8xbf16>, vector<8x128xbf16>, vector<128x128xf32> -> vector<128x128xf32>
    %c0_3 = arith.constant 0 : index
    %c0_4 = arith.constant 0 : index
    %4 = vector.load %arg2[%c0_3, %c0_4] : memref<128x6xf32, #tpu.memory_space<vmem>>, vector<128x6xf32>
    %5 = arith.truncf %4 : vector<128x6xf32> to vector<128x6xbf16>
    %c0_5 = arith.constant 0 : index
    %c0_6 = arith.constant 0 : index
    %6 = vector.load %arg4[%c0_5, %c0_6] : memref<6x128xbf16, #tpu.memory_space<vmem>>, vector<6x128xbf16>
    %cst_7 = arith.constant dense<0.000000e+00> : vector<128x128xf32>
    %7 = tpu.matmul %5, %6, %cst_7 {dimension_numbers = #tpu.dot_dimension_numbers<[1], [0], [0], [1], [0, 0, 1, 1], [], []>} : vector<128x6xbf16>, vector<6x128xbf16>, vector<128x128xf32> -> vector<128x128xf32>
    %8 = arith.addf %3, %7 : vector<128x128xf32>
    %c0_8 = arith.constant 0 : index
    %c0_9 = arith.constant 0 : index
    %9 = vector.load %arg5[%c0_8, %c0_9] : memref<1x128xf32, #tpu.memory_space<vmem>>, vector<1x128xf32>
    %10 = vector.broadcast %9 : vector<1x128xf32> to vector<128x128xf32>
    %11 = arith.addf %8, %10 : vector<128x128xf32>
    %cst_10 = arith.constant 0.000000e+00 : f32
    %12 = vector.broadcast %cst_10 : f32 to vector<128x128xf32>
    %13 = arith.maximumf %11, %12 : vector<128x128xf32>
    %14 = arith.truncf %13 : vector<128x128xf32> to vector<128x128xbf16>
    %c0_11 = arith.constant 0 : index
    %c0_12 = arith.constant 0 : index
    %15 = vector.load %arg6[%c0_11, %c0_12] : memref<128x128xbf16, #tpu.memory_space<vmem>>, vector<128x128xbf16>
    %cst_13 = arith.constant dense<0.000000e+00> : vector<128x128xf32>
    %16 = tpu.matmul %14, %15, %cst_13 {dimension_numbers = #tpu.dot_dimension_numbers<[1], [0], [0], [1], [0, 0, 1, 1], [], []>} : vector<128x128xbf16>, vector<128x128xbf16>, vector<128x128xf32> -> vector<128x128xf32>
    %c0_14 = arith.constant 0 : index
    %c0_15 = arith.constant 0 : index
    %17 = vector.load %arg7[%c0_14, %c0_15] : memref<1x128xf32, #tpu.memory_space<vmem>>, vector<1x128xf32>
    %18 = vector.broadcast %17 : vector<1x128xf32> to vector<128x128xf32>
    %19 = arith.addf %16, %18 : vector<128x128xf32>
    %20 = arith.truncf %19 : vector<128x128xf32> to vector<128x128xbf16>
    %c0_16 = arith.constant 0 : index
    %c0_17 = arith.constant 0 : index
    %21 = vector.load %arg8[%c0_16, %c0_17] : memref<128x128xbf16, #tpu.memory_space<vmem>>, vector<128x128xbf16>
    tpu.vector_store %arg8[%c0_16, %c0_17], %20 {strides = array<i32>} : memref<128x128xbf16, #tpu.memory_space<vmem>>, vector<128x128xbf16>,
    return
  }
  func.func @transform_0(%arg0: i32) -> (i32, i32) {
    %c0_i32 = arith.constant 0 : i32
    %c0_i32_0 = arith.constant 0 : i32
    return %arg0, %c0_i32 : i32, i32
  }
  func.func @transform_1(%arg0: i32) -> (i32, i32) {
    %c0_i32 = arith.constant 0 : i32
    %c0_i32_0 = arith.constant 0 : i32
    return %arg0, %c0_i32 : i32, i32
  }
  func.func @transform_2(%arg0: i32) -> (i32, i32) {
    %c0_i32 = arith.constant 0 : i32
    %c0_i32_0 = arith.constant 0 : i32
    %c0_i32_1 = arith.constant 0 : i32
    return %c0_i32, %c0_i32_0 : i32, i32
  }
  func.func @transform_3(%arg0: i32) -> (i32, i32) {
    %c0_i32 = arith.constant 0 : i32
    %c0_i32_0 = arith.constant 0 : i32
    %c0_i32_1 = arith.constant 0 : i32
    return %c0_i32, %c0_i32_0 : i32, i32
  }
  func.func @transform_4(%arg0: i32) -> (i32, i32) {
    %c0_i32 = arith.constant 0 : i32
    %c0_i32_0 = arith.constant 0 : i32
    %c0_i32_1 = arith.constant 0 : i32
    return %c0_i32, %c0_i32_0 : i32, i32
  }
  func.func @transform_5(%arg0: i32) -> (i32, i32) {
    %c0_i32 = arith.constant 0 : i32
    %c0_i32_0 = arith.constant 0 : i32
    %c0_i32_1 = arith.constant 0 : i32
    return %c0_i32, %c0_i32_0 : i32, i32
  }
  func.func @transform_6(%arg0: i32) -> (i32, i32) {
    %c0_i32 = arith.constant 0 : i32
    %c0_i32_0 = arith.constant 0 : i32
    %c0_i32_1 = arith.constant 0 : i32
    return %c0_i32, %c0_i32_0 : i32, i32
  }
  func.func @transform_7(%arg0: i32) -> (i32, i32) {
    %c0_i32 = arith.constant 0 : i32
    %c0_i32_0 = arith.constant 0 : i32
    return %arg0, %c0_i32 : i32, i32
  }
}

module attributes {stable_mosaic.version = 11 : i64} {
  func.func @_layer_kernel(%arg0: i32, %arg1: memref<128x128xbf16, #tpu.memory_space<vmem>>, %arg2: memref<128x128xbf16, #tpu.memory_space<vmem>>, %arg3: memref<128x1xi32, #tpu.memory_space<vmem>>, %arg4: memref<128x1xi32, #tpu.memory_space<vmem>>, %arg5: memref<128x1xf32, #tpu.memory_space<vmem>>, %arg6: memref<384x128xbf16, #tpu.memory_space<vmem>>, %arg7: memref<1x128xf32, #tpu.memory_space<vmem>>, %arg8: memref<128x128xbf16, #tpu.memory_space<vmem>>, %arg9: memref<1x128xf32, #tpu.memory_space<vmem>>, %arg10: memref<256x128xbf16, #tpu.memory_space<vmem>>, %arg11: memref<1x128xf32, #tpu.memory_space<vmem>>, %arg12: memref<128x128xbf16, #tpu.memory_space<vmem>>, %arg13: memref<1x128xf32, #tpu.memory_space<vmem>>, %arg14: memref<128x128xbf16, #tpu.memory_space<vmem>>, %arg15: memref<128x128xbf16, #tpu.memory_space<vmem>>, %arg16: memref<128x128xf32, #tpu.memory_space<vmem>>) attributes {dimension_semantics = [#tpu.dimension_semantics<arbitrary>], iteration_bounds = array<i64: 1>, scalar_prefetch = 0 : i64, scratch_operands = 1 : i64, tpu.core_type = #tpu.core_type<tc>, window_params = [{pipeline_mode = #tpu.pipeline_mode<synchronous>, transform_indices = @transform_0, window_bounds = array<i64: 128, 128>}, {transform_indices = @transform_1, window_bounds = array<i64: 128, 128>}, {transform_indices = @transform_2, window_bounds = array<i64: 128, 1>}, {transform_indices = @transform_3, window_bounds = array<i64: 128, 1>}, {pipeline_mode = #tpu.pipeline_mode<synchronous>, transform_indices = @transform_4, window_bounds = array<i64: 128, 1>}, {pipeline_mode = #tpu.pipeline_mode<synchronous>, transform_indices = @transform_5, window_bounds = array<i64: 384, 128>}, {pipeline_mode = #tpu.pipeline_mode<synchronous>, transform_indices = @transform_6, window_bounds = array<i64: 1, 128>}, {pipeline_mode = #tpu.pipeline_mode<synchronous>, transform_indices = @transform_7, window_bounds = array<i64: 128, 128>}, {pipeline_mode = #tpu.pipeline_mode<synchronous>, transform_indices = @transform_8, window_bounds = array<i64: 1, 128>}, {pipeline_mode = #tpu.pipeline_mode<synchronous>, transform_indices = @transform_9, window_bounds = array<i64: 256, 128>}, {pipeline_mode = #tpu.pipeline_mode<synchronous>, transform_indices = @transform_10, window_bounds = array<i64: 1, 128>}, {pipeline_mode = #tpu.pipeline_mode<synchronous>, transform_indices = @transform_11, window_bounds = array<i64: 128, 128>}, {pipeline_mode = #tpu.pipeline_mode<synchronous>, transform_indices = @transform_12, window_bounds = array<i64: 1, 128>}, {transform_indices = @transform_13, window_bounds = array<i64: 128, 128>}, {pipeline_mode = #tpu.pipeline_mode<synchronous>, transform_indices = @transform_14, window_bounds = array<i64: 128, 128>}]} {
    %c0_i32 = arith.constant 0 : i32
    %0 = arith.cmpi eq, %arg0, %c0_i32 : i32
    %1 = arith.extui %0 : i1 to i32
    %c0_i32_0 = arith.constant 0 : i32
    %2 = arith.cmpi ne, %1, %c0_i32_0 : i32
    scf.if %2 {
      %cst_29 = arith.constant 0.000000e+00 : f32
      %45 = vector.broadcast %cst_29 : f32 to vector<128x128xf32>
      %c0_30 = arith.constant 0 : index
      %c0_31 = arith.constant 0 : index
      %46 = vector.load %arg16[%c0_30, %c0_31] : memref<128x128xf32, #tpu.memory_space<vmem>>, vector<128x128xf32>
      tpu.vector_store %arg16[%c0_30, %c0_31], %45 {strides = array<i32>} : memref<128x128xf32, #tpu.memory_space<vmem>>, vector<128x128xf32>,
    } else {
    }
    %c0 = arith.constant 0 : index
    %c0_1 = arith.constant 0 : index
    %3 = vector.load %arg1[%c0, %c0_1] : memref<128x128xbf16, #tpu.memory_space<vmem>>, vector<128x128xbf16>
    %c0_2 = arith.constant 0 : index
    %c0_3 = arith.constant 0 : index
    %4 = vector.load %arg3[%c0_2, %c0_3] : memref<128x1xi32, #tpu.memory_space<vmem>>, vector<128x1xi32>
    %c0_4 = arith.constant 0 : index
    %c0_5 = arith.constant 0 : index
    %5 = vector.load %arg4[%c0_4, %c0_5] : memref<128x1xi32, #tpu.memory_space<vmem>>, vector<128x1xi32>
    %6 = tpu.iota {dimensions = array<i32: 1>} : vector<128x128xi32>
    %7 = vector.broadcast %4 : vector<128x1xi32> to vector<128x128xi32>
    %8 = arith.cmpi eq, %7, %6 : vector<128x128xi32>
    %9 = arith.extui %8 : vector<128x128xi1> to vector<128x128xi32>
    %10 = arith.sitofp %9 : vector<128x128xi32> to vector<128x128xf32>
    %11 = arith.truncf %10 : vector<128x128xf32> to vector<128x128xbf16>
    %12 = vector.broadcast %5 : vector<128x1xi32> to vector<128x128xi32>
    %13 = arith.cmpi eq, %12, %6 : vector<128x128xi32>
    %14 = arith.extui %13 : vector<128x128xi1> to vector<128x128xi32>
    %15 = arith.sitofp %14 : vector<128x128xi32> to vector<128x128xf32>
    %16 = arith.truncf %15 : vector<128x128xf32> to vector<128x128xbf16>
    %cst = arith.constant dense<0.000000e+00> : vector<128x128xf32>
    %17 = tpu.matmul %11, %3, %cst {dimension_numbers = #tpu.dot_dimension_numbers<[1], [0], [0], [1], [0, 0, 1, 1], [], []>} : vector<128x128xbf16>, vector<128x128xbf16>, vector<128x128xf32> -> vector<128x128xf32>
    %18 = arith.truncf %17 : vector<128x128xf32> to vector<128x128xbf16>
    %cst_6 = arith.constant dense<0.000000e+00> : vector<128x128xf32>
    %19 = tpu.matmul %16, %3, %cst_6 {dimension_numbers = #tpu.dot_dimension_numbers<[1], [0], [0], [1], [0, 0, 1, 1], [], []>} : vector<128x128xbf16>, vector<128x128xbf16>, vector<128x128xf32> -> vector<128x128xf32>
    %20 = arith.truncf %19 : vector<128x128xf32> to vector<128x128xbf16>
    %c0_7 = arith.constant 0 : index
    %c0_8 = arith.constant 0 : index
    %21 = vector.load %arg2[%c0_7, %c0_8] : memref<128x128xbf16, #tpu.memory_space<vmem>>, vector<128x128xbf16>
    %22 = tpu.concatenate %18, %20, %21 in 1 : vector<128x128xbf16>, vector<128x128xbf16>, vector<128x128xbf16> -> vector<128x384xbf16>
    %c0_9 = arith.constant 0 : index
    %c0_10 = arith.constant 0 : index
    %23 = vector.load %arg6[%c0_9, %c0_10] : memref<384x128xbf16, #tpu.memory_space<vmem>>, vector<384x128xbf16>
    %cst_11 = arith.constant dense<0.000000e+00> : vector<128x128xf32>
    %24 = tpu.matmul %22, %23, %cst_11 {dimension_numbers = #tpu.dot_dimension_numbers<[1], [0], [0], [1], [0, 0, 1, 1], [], []>} : vector<128x384xbf16>, vector<384x128xbf16>, vector<128x128xf32> -> vector<128x128xf32>
    %c0_12 = arith.constant 0 : index
    %c0_13 = arith.constant 0 : index
    %25 = vector.load %arg7[%c0_12, %c0_13] : memref<1x128xf32, #tpu.memory_space<vmem>>, vector<1x128xf32>
    %26 = vector.broadcast %25 : vector<1x128xf32> to vector<128x128xf32>
    %27 = arith.addf %24, %26 : vector<128x128xf32>
    %cst_14 = arith.constant 0.000000e+00 : f32
    %28 = vector.broadcast %cst_14 : f32 to vector<128x128xf32>
    %29 = arith.maximumf %27, %28 : vector<128x128xf32>
    %30 = arith.truncf %29 : vector<128x128xf32> to vector<128x128xbf16>
    %c0_15 = arith.constant 0 : index
    %c0_16 = arith.constant 0 : index
    %31 = vector.load %arg8[%c0_15, %c0_16] : memref<128x128xbf16, #tpu.memory_space<vmem>>, vector<128x128xbf16>
    %cst_17 = arith.constant dense<0.000000e+00> : vector<128x128xf32>
    %32 = tpu.matmul %30, %31, %cst_17 {dimension_numbers = #tpu.dot_dimension_numbers<[1], [0], [0], [1], [0, 0, 1, 1], [], []>} : vector<128x128xbf16>, vector<128x128xbf16>, vector<128x128xf32> -> vector<128x128xf32>
    %c0_18 = arith.constant 0 : index
    %c0_19 = arith.constant 0 : index
    %33 = vector.load %arg9[%c0_18, %c0_19] : memref<1x128xf32, #tpu.memory_space<vmem>>, vector<1x128xf32>
    %34 = vector.broadcast %33 : vector<1x128xf32> to vector<128x128xf32>
    %35 = arith.addf %32, %34 : vector<128x128xf32>
    %36 = arith.truncf %35 : vector<128x128xf32> to vector<128x128xbf16>
    %c0_20 = arith.constant 0 : index
    %c0_21 = arith.constant 0 : index
    %37 = vector.load %arg14[%c0_20, %c0_21] : memref<128x128xbf16, #tpu.memory_space<vmem>>, vector<128x128xbf16>
    tpu.vector_store %arg14[%c0_20, %c0_21], %36 {strides = array<i32>} : memref<128x128xbf16, #tpu.memory_space<vmem>>, vector<128x128xbf16>,
    %c0_22 = arith.constant 0 : index
    %c0_23 = arith.constant 0 : index
    %38 = vector.load %arg16[%c0_22, %c0_23] : memref<128x128xf32, #tpu.memory_space<vmem>>, vector<128x128xf32>
    %cst_24 = arith.constant dense<0.000000e+00> : vector<128x128xf32>
    %39 = tpu.matmul %11, %36, %cst_24 {dimension_numbers = #tpu.dot_dimension_numbers<[0], [0], [1], [1], [0, 1, 1, 1], [], []>} : vector<128x128xbf16>, vector<128x128xbf16>, vector<128x128xf32> -> vector<128x128xf32>
    %40 = arith.addf %38, %39 : vector<128x128xf32>
    %c0_25 = arith.constant 0 : index
    %c0_26 = arith.constant 0 : index
    %41 = vector.load %arg16[%c0_25, %c0_26] : memref<128x128xf32, #tpu.memory_space<vmem>>, vector<128x128xf32>
    tpu.vector_store %arg16[%c0_25, %c0_26], %40 {strides = array<i32>} : memref<128x128xf32, #tpu.memory_space<vmem>>, vector<128x128xf32>,
    %c0_i32_27 = arith.constant 0 : i32
    %42 = arith.cmpi eq, %arg0, %c0_i32_27 : i32
    %43 = arith.extui %42 : i1 to i32
    %c0_i32_28 = arith.constant 0 : i32
    %44 = arith.cmpi ne, %43, %c0_i32_28 : i32
    scf.if %44 {
      %c0_29 = arith.constant 0 : index
      %c0_30 = arith.constant 0 : index
      %45 = vector.load %arg16[%c0_29, %c0_30] : memref<128x128xf32, #tpu.memory_space<vmem>>, vector<128x128xf32>
      %c0_31 = arith.constant 0 : index
      %c0_32 = arith.constant 0 : index
      %46 = vector.load %arg5[%c0_31, %c0_32] : memref<128x1xf32, #tpu.memory_space<vmem>>, vector<128x1xf32>
      %47 = vector.broadcast %46 : vector<128x1xf32> to vector<128x128xf32>
      %48 = arith.mulf %45, %47 : vector<128x128xf32>
      %49 = arith.truncf %48 : vector<128x128xf32> to vector<128x128xbf16>
      %50 = tpu.concatenate %3, %49 in 1 : vector<128x128xbf16>, vector<128x128xbf16> -> vector<128x256xbf16>
      %c0_33 = arith.constant 0 : index
      %c0_34 = arith.constant 0 : index
      %51 = vector.load %arg10[%c0_33, %c0_34] : memref<256x128xbf16, #tpu.memory_space<vmem>>, vector<256x128xbf16>
      %cst_35 = arith.constant dense<0.000000e+00> : vector<128x128xf32>
      %52 = tpu.matmul %50, %51, %cst_35 {dimension_numbers = #tpu.dot_dimension_numbers<[1], [0], [0], [1], [0, 0, 1, 1], [], []>} : vector<128x256xbf16>, vector<256x128xbf16>, vector<128x128xf32> -> vector<128x128xf32>
      %c0_36 = arith.constant 0 : index
      %c0_37 = arith.constant 0 : index
      %53 = vector.load %arg11[%c0_36, %c0_37] : memref<1x128xf32, #tpu.memory_space<vmem>>, vector<1x128xf32>
      %54 = vector.broadcast %53 : vector<1x128xf32> to vector<128x128xf32>
      %55 = arith.addf %52, %54 : vector<128x128xf32>
      %cst_38 = arith.constant 0.000000e+00 : f32
      %56 = vector.broadcast %cst_38 : f32 to vector<128x128xf32>
      %57 = arith.maximumf %55, %56 : vector<128x128xf32>
      %58 = arith.truncf %57 : vector<128x128xf32> to vector<128x128xbf16>
      %c0_39 = arith.constant 0 : index
      %c0_40 = arith.constant 0 : index
      %59 = vector.load %arg12[%c0_39, %c0_40] : memref<128x128xbf16, #tpu.memory_space<vmem>>, vector<128x128xbf16>
      %cst_41 = arith.constant dense<0.000000e+00> : vector<128x128xf32>
      %60 = tpu.matmul %58, %59, %cst_41 {dimension_numbers = #tpu.dot_dimension_numbers<[1], [0], [0], [1], [0, 0, 1, 1], [], []>} : vector<128x128xbf16>, vector<128x128xbf16>, vector<128x128xf32> -> vector<128x128xf32>
      %c0_42 = arith.constant 0 : index
      %c0_43 = arith.constant 0 : index
      %61 = vector.load %arg13[%c0_42, %c0_43] : memref<1x128xf32, #tpu.memory_space<vmem>>, vector<1x128xf32>
      %62 = vector.broadcast %61 : vector<1x128xf32> to vector<128x128xf32>
      %63 = arith.addf %60, %62 : vector<128x128xf32>
      %64 = arith.extf %3 : vector<128x128xbf16> to vector<128x128xf32>
      %65 = arith.addf %63, %64 : vector<128x128xf32>
      %66 = arith.truncf %65 : vector<128x128xf32> to vector<128x128xbf16>
      %c0_44 = arith.constant 0 : index
      %c0_45 = arith.constant 0 : index
      %67 = vector.load %arg15[%c0_44, %c0_45] : memref<128x128xbf16, #tpu.memory_space<vmem>>, vector<128x128xbf16>
      tpu.vector_store %arg15[%c0_44, %c0_45], %66 {strides = array<i32>} : memref<128x128xbf16, #tpu.memory_space<vmem>>, vector<128x128xbf16>,
    } else {
    }
    return
  }
  func.func @transform_0(%arg0: i32) -> (i32, i32) {
    %c0_i32 = arith.constant 0 : i32
    %c0_i32_0 = arith.constant 0 : i32
    %c0_i32_1 = arith.constant 0 : i32
    return %c0_i32, %c0_i32_0 : i32, i32
  }
  func.func @transform_1(%arg0: i32) -> (i32, i32) {
    %c0_i32 = arith.constant 0 : i32
    %c0_i32_0 = arith.constant 0 : i32
    return %arg0, %c0_i32 : i32, i32
  }
  func.func @transform_2(%arg0: i32) -> (i32, i32) {
    %c0_i32 = arith.constant 0 : i32
    %c0_i32_0 = arith.constant 0 : i32
    return %arg0, %c0_i32 : i32, i32
  }
  func.func @transform_3(%arg0: i32) -> (i32, i32) {
    %c0_i32 = arith.constant 0 : i32
    %c0_i32_0 = arith.constant 0 : i32
    return %arg0, %c0_i32 : i32, i32
  }
  func.func @transform_4(%arg0: i32) -> (i32, i32) {
    %c0_i32 = arith.constant 0 : i32
    %c0_i32_0 = arith.constant 0 : i32
    %c0_i32_1 = arith.constant 0 : i32
    return %c0_i32, %c0_i32_0 : i32, i32
  }
  func.func @transform_5(%arg0: i32) -> (i32, i32) {
    %c0_i32 = arith.constant 0 : i32
    %c0_i32_0 = arith.constant 0 : i32
    %c0_i32_1 = arith.constant 0 : i32
    return %c0_i32, %c0_i32_0 : i32, i32
  }
  func.func @transform_6(%arg0: i32) -> (i32, i32) {
    %c0_i32 = arith.constant 0 : i32
    %c0_i32_0 = arith.constant 0 : i32
    %c0_i32_1 = arith.constant 0 : i32
    return %c0_i32, %c0_i32_0 : i32, i32
  }
  func.func @transform_7(%arg0: i32) -> (i32, i32) {
    %c0_i32 = arith.constant 0 : i32
    %c0_i32_0 = arith.constant 0 : i32
    %c0_i32_1 = arith.constant 0 : i32
    return %c0_i32, %c0_i32_0 : i32, i32
  }
  func.func @transform_8(%arg0: i32) -> (i32, i32) {
    %c0_i32 = arith.constant 0 : i32
    %c0_i32_0 = arith.constant 0 : i32
    %c0_i32_1 = arith.constant 0 : i32
    return %c0_i32, %c0_i32_0 : i32, i32
  }
  func.func @transform_9(%arg0: i32) -> (i32, i32) {
    %c0_i32 = arith.constant 0 : i32
    %c0_i32_0 = arith.constant 0 : i32
    %c0_i32_1 = arith.constant 0 : i32
    return %c0_i32, %c0_i32_0 : i32, i32
  }
  func.func @transform_10(%arg0: i32) -> (i32, i32) {
    %c0_i32 = arith.constant 0 : i32
    %c0_i32_0 = arith.constant 0 : i32
    %c0_i32_1 = arith.constant 0 : i32
    return %c0_i32, %c0_i32_0 : i32, i32
  }
  func.func @transform_11(%arg0: i32) -> (i32, i32) {
    %c0_i32 = arith.constant 0 : i32
    %c0_i32_0 = arith.constant 0 : i32
    %c0_i32_1 = arith.constant 0 : i32
    return %c0_i32, %c0_i32_0 : i32, i32
  }
  func.func @transform_12(%arg0: i32) -> (i32, i32) {
    %c0_i32 = arith.constant 0 : i32
    %c0_i32_0 = arith.constant 0 : i32
    %c0_i32_1 = arith.constant 0 : i32
    return %c0_i32, %c0_i32_0 : i32, i32
  }
  func.func @transform_13(%arg0: i32) -> (i32, i32) {
    %c0_i32 = arith.constant 0 : i32
    %c0_i32_0 = arith.constant 0 : i32
    return %arg0, %c0_i32 : i32, i32
  }
  func.func @transform_14(%arg0: i32) -> (i32, i32) {
    %c0_i32 = arith.constant 0 : i32
    %c0_i32_0 = arith.constant 0 : i32
    %c0_i32_1 = arith.constant 0 : i32
    return %c0_i32, %c0_i32_0 : i32, i32
  }
}

module attributes {stable_mosaic.version = 11 : i64} {
  func.func @_layer_kernel(%arg0: i32, %arg1: memref<128x128xbf16, #tpu.memory_space<vmem>>, %arg2: memref<128x128xbf16, #tpu.memory_space<vmem>>, %arg3: memref<128x1xi32, #tpu.memory_space<vmem>>, %arg4: memref<128x1xi32, #tpu.memory_space<vmem>>, %arg5: memref<128x1xf32, #tpu.memory_space<vmem>>, %arg6: memref<384x128xbf16, #tpu.memory_space<vmem>>, %arg7: memref<1x128xf32, #tpu.memory_space<vmem>>, %arg8: memref<128x128xbf16, #tpu.memory_space<vmem>>, %arg9: memref<1x128xf32, #tpu.memory_space<vmem>>, %arg10: memref<256x128xbf16, #tpu.memory_space<vmem>>, %arg11: memref<1x128xf32, #tpu.memory_space<vmem>>, %arg12: memref<128x128xbf16, #tpu.memory_space<vmem>>, %arg13: memref<1x128xf32, #tpu.memory_space<vmem>>, %arg14: memref<128x128xbf16, #tpu.memory_space<vmem>>, %arg15: memref<128x128xbf16, #tpu.memory_space<vmem>>, %arg16: memref<128x128xf32, #tpu.memory_space<vmem>>) attributes {dimension_semantics = [#tpu.dimension_semantics<arbitrary>], iteration_bounds = array<i64: 1>, scalar_prefetch = 0 : i64, scratch_operands = 1 : i64, tpu.core_type = #tpu.core_type<tc>, window_params = [{pipeline_mode = #tpu.pipeline_mode<synchronous>, transform_indices = @transform_0, window_bounds = array<i64: 128, 128>}, {transform_indices = @transform_1, window_bounds = array<i64: 128, 128>}, {transform_indices = @transform_2, window_bounds = array<i64: 128, 1>}, {transform_indices = @transform_3, window_bounds = array<i64: 128, 1>}, {pipeline_mode = #tpu.pipeline_mode<synchronous>, transform_indices = @transform_4, window_bounds = array<i64: 128, 1>}, {pipeline_mode = #tpu.pipeline_mode<synchronous>, transform_indices = @transform_5, window_bounds = array<i64: 384, 128>}, {pipeline_mode = #tpu.pipeline_mode<synchronous>, transform_indices = @transform_6, window_bounds = array<i64: 1, 128>}, {pipeline_mode = #tpu.pipeline_mode<synchronous>, transform_indices = @transform_7, window_bounds = array<i64: 128, 128>}, {pipeline_mode = #tpu.pipeline_mode<synchronous>, transform_indices = @transform_8, window_bounds = array<i64: 1, 128>}, {pipeline_mode = #tpu.pipeline_mode<synchronous>, transform_indices = @transform_9, window_bounds = array<i64: 256, 128>}, {pipeline_mode = #tpu.pipeline_mode<synchronous>, transform_indices = @transform_10, window_bounds = array<i64: 1, 128>}, {pipeline_mode = #tpu.pipeline_mode<synchronous>, transform_indices = @transform_11, window_bounds = array<i64: 128, 128>}, {pipeline_mode = #tpu.pipeline_mode<synchronous>, transform_indices = @transform_12, window_bounds = array<i64: 1, 128>}, {transform_indices = @transform_13, window_bounds = array<i64: 128, 128>}, {pipeline_mode = #tpu.pipeline_mode<synchronous>, transform_indices = @transform_14, window_bounds = array<i64: 128, 128>}]} {
    %c0_i32 = arith.constant 0 : i32
    %0 = arith.cmpi eq, %arg0, %c0_i32 : i32
    %1 = arith.extui %0 : i1 to i32
    %c0_i32_0 = arith.constant 0 : i32
    %2 = arith.cmpi ne, %1, %c0_i32_0 : i32
    scf.if %2 {
      %cst_29 = arith.constant 0.000000e+00 : f32
      %45 = vector.broadcast %cst_29 : f32 to vector<128x128xf32>
      %c0_30 = arith.constant 0 : index
      %c0_31 = arith.constant 0 : index
      %46 = vector.load %arg16[%c0_30, %c0_31] : memref<128x128xf32, #tpu.memory_space<vmem>>, vector<128x128xf32>
      tpu.vector_store %arg16[%c0_30, %c0_31], %45 {strides = array<i32>} : memref<128x128xf32, #tpu.memory_space<vmem>>, vector<128x128xf32>,
    } else {
    }
    %c0 = arith.constant 0 : index
    %c0_1 = arith.constant 0 : index
    %3 = vector.load %arg1[%c0, %c0_1] : memref<128x128xbf16, #tpu.memory_space<vmem>>, vector<128x128xbf16>
    %c0_2 = arith.constant 0 : index
    %c0_3 = arith.constant 0 : index
    %4 = vector.load %arg3[%c0_2, %c0_3] : memref<128x1xi32, #tpu.memory_space<vmem>>, vector<128x1xi32>
    %c0_4 = arith.constant 0 : index
    %c0_5 = arith.constant 0 : index
    %5 = vector.load %arg4[%c0_4, %c0_5] : memref<128x1xi32, #tpu.memory_space<vmem>>, vector<128x1xi32>
    %6 = tpu.iota {dimensions = array<i32: 1>} : vector<128x128xi32>
    %7 = vector.broadcast %4 : vector<128x1xi32> to vector<128x128xi32>
    %8 = arith.cmpi eq, %7, %6 : vector<128x128xi32>
    %9 = arith.extui %8 : vector<128x128xi1> to vector<128x128xi32>
    %10 = arith.sitofp %9 : vector<128x128xi32> to vector<128x128xf32>
    %11 = arith.truncf %10 : vector<128x128xf32> to vector<128x128xbf16>
    %12 = vector.broadcast %5 : vector<128x1xi32> to vector<128x128xi32>
    %13 = arith.cmpi eq, %12, %6 : vector<128x128xi32>
    %14 = arith.extui %13 : vector<128x128xi1> to vector<128x128xi32>
    %15 = arith.sitofp %14 : vector<128x128xi32> to vector<128x128xf32>
    %16 = arith.truncf %15 : vector<128x128xf32> to vector<128x128xbf16>
    %cst = arith.constant dense<0.000000e+00> : vector<128x128xf32>
    %17 = tpu.matmul %11, %3, %cst {dimension_numbers = #tpu.dot_dimension_numbers<[1], [0], [0], [1], [0, 0, 1, 1], [], []>} : vector<128x128xbf16>, vector<128x128xbf16>, vector<128x128xf32> -> vector<128x128xf32>
    %18 = arith.truncf %17 : vector<128x128xf32> to vector<128x128xbf16>
    %cst_6 = arith.constant dense<0.000000e+00> : vector<128x128xf32>
    %19 = tpu.matmul %16, %3, %cst_6 {dimension_numbers = #tpu.dot_dimension_numbers<[1], [0], [0], [1], [0, 0, 1, 1], [], []>} : vector<128x128xbf16>, vector<128x128xbf16>, vector<128x128xf32> -> vector<128x128xf32>
    %20 = arith.truncf %19 : vector<128x128xf32> to vector<128x128xbf16>
    %c0_7 = arith.constant 0 : index
    %c0_8 = arith.constant 0 : index
    %21 = vector.load %arg2[%c0_7, %c0_8] : memref<128x128xbf16, #tpu.memory_space<vmem>>, vector<128x128xbf16>
    %22 = tpu.concatenate %18, %20, %21 in 1 : vector<128x128xbf16>, vector<128x128xbf16>, vector<128x128xbf16> -> vector<128x384xbf16>
    %c0_9 = arith.constant 0 : index
    %c0_10 = arith.constant 0 : index
    %23 = vector.load %arg6[%c0_9, %c0_10] : memref<384x128xbf16, #tpu.memory_space<vmem>>, vector<384x128xbf16>
    %cst_11 = arith.constant dense<0.000000e+00> : vector<128x128xf32>
    %24 = tpu.matmul %22, %23, %cst_11 {dimension_numbers = #tpu.dot_dimension_numbers<[1], [0], [0], [1], [0, 0, 1, 1], [], []>} : vector<128x384xbf16>, vector<384x128xbf16>, vector<128x128xf32> -> vector<128x128xf32>
    %c0_12 = arith.constant 0 : index
    %c0_13 = arith.constant 0 : index
    %25 = vector.load %arg7[%c0_12, %c0_13] : memref<1x128xf32, #tpu.memory_space<vmem>>, vector<1x128xf32>
    %26 = vector.broadcast %25 : vector<1x128xf32> to vector<128x128xf32>
    %27 = arith.addf %24, %26 : vector<128x128xf32>
    %cst_14 = arith.constant 0.000000e+00 : f32
    %28 = vector.broadcast %cst_14 : f32 to vector<128x128xf32>
    %29 = arith.maximumf %27, %28 : vector<128x128xf32>
    %30 = arith.truncf %29 : vector<128x128xf32> to vector<128x128xbf16>
    %c0_15 = arith.constant 0 : index
    %c0_16 = arith.constant 0 : index
    %31 = vector.load %arg8[%c0_15, %c0_16] : memref<128x128xbf16, #tpu.memory_space<vmem>>, vector<128x128xbf16>
    %cst_17 = arith.constant dense<0.000000e+00> : vector<128x128xf32>
    %32 = tpu.matmul %30, %31, %cst_17 {dimension_numbers = #tpu.dot_dimension_numbers<[1], [0], [0], [1], [0, 0, 1, 1], [], []>} : vector<128x128xbf16>, vector<128x128xbf16>, vector<128x128xf32> -> vector<128x128xf32>
    %c0_18 = arith.constant 0 : index
    %c0_19 = arith.constant 0 : index
    %33 = vector.load %arg9[%c0_18, %c0_19] : memref<1x128xf32, #tpu.memory_space<vmem>>, vector<1x128xf32>
    %34 = vector.broadcast %33 : vector<1x128xf32> to vector<128x128xf32>
    %35 = arith.addf %32, %34 : vector<128x128xf32>
    %36 = arith.truncf %35 : vector<128x128xf32> to vector<128x128xbf16>
    %c0_20 = arith.constant 0 : index
    %c0_21 = arith.constant 0 : index
    %37 = vector.load %arg14[%c0_20, %c0_21] : memref<128x128xbf16, #tpu.memory_space<vmem>>, vector<128x128xbf16>
    tpu.vector_store %arg14[%c0_20, %c0_21], %36 {strides = array<i32>} : memref<128x128xbf16, #tpu.memory_space<vmem>>, vector<128x128xbf16>,
    %c0_22 = arith.constant 0 : index
    %c0_23 = arith.constant 0 : index
    %38 = vector.load %arg16[%c0_22, %c0_23] : memref<128x128xf32, #tpu.memory_space<vmem>>, vector<128x128xf32>
    %cst_24 = arith.constant dense<0.000000e+00> : vector<128x128xf32>
    %39 = tpu.matmul %11, %36, %cst_24 {dimension_numbers = #tpu.dot_dimension_numbers<[0], [0], [1], [1], [0, 1, 1, 1], [], []>} : vector<128x128xbf16>, vector<128x128xbf16>, vector<128x128xf32> -> vector<128x128xf32>
    %40 = arith.addf %38, %39 : vector<128x128xf32>
    %c0_25 = arith.constant 0 : index
    %c0_26 = arith.constant 0 : index
    %41 = vector.load %arg16[%c0_25, %c0_26] : memref<128x128xf32, #tpu.memory_space<vmem>>, vector<128x128xf32>
    tpu.vector_store %arg16[%c0_25, %c0_26], %40 {strides = array<i32>} : memref<128x128xf32, #tpu.memory_space<vmem>>, vector<128x128xf32>,
    %c0_i32_27 = arith.constant 0 : i32
    %42 = arith.cmpi eq, %arg0, %c0_i32_27 : i32
    %43 = arith.extui %42 : i1 to i32
    %c0_i32_28 = arith.constant 0 : i32
    %44 = arith.cmpi ne, %43, %c0_i32_28 : i32
    scf.if %44 {
      %c0_29 = arith.constant 0 : index
      %c0_30 = arith.constant 0 : index
      %45 = vector.load %arg16[%c0_29, %c0_30] : memref<128x128xf32, #tpu.memory_space<vmem>>, vector<128x128xf32>
      %c0_31 = arith.constant 0 : index
      %c0_32 = arith.constant 0 : index
      %46 = vector.load %arg5[%c0_31, %c0_32] : memref<128x1xf32, #tpu.memory_space<vmem>>, vector<128x1xf32>
      %47 = vector.broadcast %46 : vector<128x1xf32> to vector<128x128xf32>
      %48 = arith.mulf %45, %47 : vector<128x128xf32>
      %49 = arith.truncf %48 : vector<128x128xf32> to vector<128x128xbf16>
      %50 = tpu.concatenate %3, %49 in 1 : vector<128x128xbf16>, vector<128x128xbf16> -> vector<128x256xbf16>
      %c0_33 = arith.constant 0 : index
      %c0_34 = arith.constant 0 : index
      %51 = vector.load %arg10[%c0_33, %c0_34] : memref<256x128xbf16, #tpu.memory_space<vmem>>, vector<256x128xbf16>
      %cst_35 = arith.constant dense<0.000000e+00> : vector<128x128xf32>
      %52 = tpu.matmul %50, %51, %cst_35 {dimension_numbers = #tpu.dot_dimension_numbers<[1], [0], [0], [1], [0, 0, 1, 1], [], []>} : vector<128x256xbf16>, vector<256x128xbf16>, vector<128x128xf32> -> vector<128x128xf32>
      %c0_36 = arith.constant 0 : index
      %c0_37 = arith.constant 0 : index
      %53 = vector.load %arg11[%c0_36, %c0_37] : memref<1x128xf32, #tpu.memory_space<vmem>>, vector<1x128xf32>
      %54 = vector.broadcast %53 : vector<1x128xf32> to vector<128x128xf32>
      %55 = arith.addf %52, %54 : vector<128x128xf32>
      %cst_38 = arith.constant 0.000000e+00 : f32
      %56 = vector.broadcast %cst_38 : f32 to vector<128x128xf32>
      %57 = arith.maximumf %55, %56 : vector<128x128xf32>
      %58 = arith.truncf %57 : vector<128x128xf32> to vector<128x128xbf16>
      %c0_39 = arith.constant 0 : index
      %c0_40 = arith.constant 0 : index
      %59 = vector.load %arg12[%c0_39, %c0_40] : memref<128x128xbf16, #tpu.memory_space<vmem>>, vector<128x128xbf16>
      %cst_41 = arith.constant dense<0.000000e+00> : vector<128x128xf32>
      %60 = tpu.matmul %58, %59, %cst_41 {dimension_numbers = #tpu.dot_dimension_numbers<[1], [0], [0], [1], [0, 0, 1, 1], [], []>} : vector<128x128xbf16>, vector<128x128xbf16>, vector<128x128xf32> -> vector<128x128xf32>
      %c0_42 = arith.constant 0 : index
      %c0_43 = arith.constant 0 : index
      %61 = vector.load %arg13[%c0_42, %c0_43] : memref<1x128xf32, #tpu.memory_space<vmem>>, vector<1x128xf32>
      %62 = vector.broadcast %61 : vector<1x128xf32> to vector<128x128xf32>
      %63 = arith.addf %60, %62 : vector<128x128xf32>
      %64 = arith.extf %3 : vector<128x128xbf16> to vector<128x128xf32>
      %65 = arith.addf %63, %64 : vector<128x128xf32>
      %66 = arith.truncf %65 : vector<128x128xf32> to vector<128x128xbf16>
      %c0_44 = arith.constant 0 : index
      %c0_45 = arith.constant 0 : index
      %67 = vector.load %arg15[%c0_44, %c0_45] : memref<128x128xbf16, #tpu.memory_space<vmem>>, vector<128x128xbf16>
      tpu.vector_store %arg15[%c0_44, %c0_45], %66 {strides = array<i32>} : memref<128x128xbf16, #tpu.memory_space<vmem>>, vector<128x128xbf16>,
    } else {
    }
    return
  }
  func.func @transform_0(%arg0: i32) -> (i32, i32) {
    %c0_i32 = arith.constant 0 : i32
    %c0_i32_0 = arith.constant 0 : i32
    %c0_i32_1 = arith.constant 0 : i32
    return %c0_i32, %c0_i32_0 : i32, i32
  }
  func.func @transform_1(%arg0: i32) -> (i32, i32) {
    %c0_i32 = arith.constant 0 : i32
    %c0_i32_0 = arith.constant 0 : i32
    return %arg0, %c0_i32 : i32, i32
  }
  func.func @transform_2(%arg0: i32) -> (i32, i32) {
    %c0_i32 = arith.constant 0 : i32
    %c0_i32_0 = arith.constant 0 : i32
    return %arg0, %c0_i32 : i32, i32
  }
  func.func @transform_3(%arg0: i32) -> (i32, i32) {
    %c0_i32 = arith.constant 0 : i32
    %c0_i32_0 = arith.constant 0 : i32
    return %arg0, %c0_i32 : i32, i32
  }
  func.func @transform_4(%arg0: i32) -> (i32, i32) {
    %c0_i32 = arith.constant 0 : i32
    %c0_i32_0 = arith.constant 0 : i32
    %c0_i32_1 = arith.constant 0 : i32
    return %c0_i32, %c0_i32_0 : i32, i32
  }
  func.func @transform_5(%arg0: i32) -> (i32, i32) {
    %c0_i32 = arith.constant 0 : i32
    %c0_i32_0 = arith.constant 0 : i32
    %c0_i32_1 = arith.constant 0 : i32
    return %c0_i32, %c0_i32_0 : i32, i32
  }
  func.func @transform_6(%arg0: i32) -> (i32, i32) {
    %c0_i32 = arith.constant 0 : i32
    %c0_i32_0 = arith.constant 0 : i32
    %c0_i32_1 = arith.constant 0 : i32
    return %c0_i32, %c0_i32_0 : i32, i32
  }
  func.func @transform_7(%arg0: i32) -> (i32, i32) {
    %c0_i32 = arith.constant 0 : i32
    %c0_i32_0 = arith.constant 0 : i32
    %c0_i32_1 = arith.constant 0 : i32
    return %c0_i32, %c0_i32_0 : i32, i32
  }
  func.func @transform_8(%arg0: i32) -> (i32, i32) {
    %c0_i32 = arith.constant 0 : i32
    %c0_i32_0 = arith.constant 0 : i32
    %c0_i32_1 = arith.constant 0 : i32
    return %c0_i32, %c0_i32_0 : i32, i32
  }
  func.func @transform_9(%arg0: i32) -> (i32, i32) {
    %c0_i32 = arith.constant 0 : i32
    %c0_i32_0 = arith.constant 0 : i32
    %c0_i32_1 = arith.constant 0 : i32
    return %c0_i32, %c0_i32_0 : i32, i32
  }
  func.func @transform_10(%arg0: i32) -> (i32, i32) {
    %c0_i32 = arith.constant 0 : i32
    %c0_i32_0 = arith.constant 0 : i32
    %c0_i32_1 = arith.constant 0 : i32
    return %c0_i32, %c0_i32_0 : i32, i32
  }
  func.func @transform_11(%arg0: i32) -> (i32, i32) {
    %c0_i32 = arith.constant 0 : i32
    %c0_i32_0 = arith.constant 0 : i32
    %c0_i32_1 = arith.constant 0 : i32
    return %c0_i32, %c0_i32_0 : i32, i32
  }
  func.func @transform_12(%arg0: i32) -> (i32, i32) {
    %c0_i32 = arith.constant 0 : i32
    %c0_i32_0 = arith.constant 0 : i32
    %c0_i32_1 = arith.constant 0 : i32
    return %c0_i32, %c0_i32_0 : i32, i32
  }
  func.func @transform_13(%arg0: i32) -> (i32, i32) {
    %c0_i32 = arith.constant 0 : i32
    %c0_i32_0 = arith.constant 0 : i32
    return %arg0, %c0_i32 : i32, i32
  }
  func.func @transform_14(%arg0: i32) -> (i32, i32) {
    %c0_i32 = arith.constant 0 : i32
    %c0_i32_0 = arith.constant 0 : i32
    %c0_i32_1 = arith.constant 0 : i32
    return %c0_i32, %c0_i32_0 : i32, i32
  }
}

module attributes {stable_mosaic.version = 11 : i64} {
  func.func @_mlp2_kernel(%arg0: i32, %arg1: memref<128x128xbf16, #tpu.memory_space<vmem>>, %arg2: memref<128x128xbf16, #tpu.memory_space<vmem>>, %arg3: memref<1x128xf32, #tpu.memory_space<vmem>>, %arg4: memref<128x128xbf16, #tpu.memory_space<vmem>>, %arg5: memref<1x128xf32, #tpu.memory_space<vmem>>, %arg6: memref<128x128xf32, #tpu.memory_space<vmem>>) attributes {dimension_semantics = [#tpu.dimension_semantics<parallel>], iteration_bounds = array<i64: 1>, scalar_prefetch = 0 : i64, scratch_operands = 0 : i64, tpu.core_type = #tpu.core_type<tc>, window_params = [{transform_indices = @transform_0, window_bounds = array<i64: 128, 128>}, {pipeline_mode = #tpu.pipeline_mode<synchronous>, transform_indices = @transform_1, window_bounds = array<i64: 128, 128>}, {pipeline_mode = #tpu.pipeline_mode<synchronous>, transform_indices = @transform_2, window_bounds = array<i64: 1, 128>}, {pipeline_mode = #tpu.pipeline_mode<synchronous>, transform_indices = @transform_3, window_bounds = array<i64: 128, 128>}, {pipeline_mode = #tpu.pipeline_mode<synchronous>, transform_indices = @transform_4, window_bounds = array<i64: 1, 128>}, {transform_indices = @transform_5, window_bounds = array<i64: 128, 128>}]} {
    %c0 = arith.constant 0 : index
    %c0_0 = arith.constant 0 : index
    %0 = vector.load %arg1[%c0, %c0_0] : memref<128x128xbf16, #tpu.memory_space<vmem>>, vector<128x128xbf16>
    %c0_1 = arith.constant 0 : index
    %c0_2 = arith.constant 0 : index
    %1 = vector.load %arg2[%c0_1, %c0_2] : memref<128x128xbf16, #tpu.memory_space<vmem>>, vector<128x128xbf16>
    %cst = arith.constant dense<0.000000e+00> : vector<128x128xf32>
    %2 = tpu.matmul %0, %1, %cst {dimension_numbers = #tpu.dot_dimension_numbers<[1], [0], [0], [1], [0, 0, 1, 1], [], []>} : vector<128x128xbf16>, vector<128x128xbf16>, vector<128x128xf32> -> vector<128x128xf32>
    %c0_3 = arith.constant 0 : index
    %c0_4 = arith.constant 0 : index
    %3 = vector.load %arg3[%c0_3, %c0_4] : memref<1x128xf32, #tpu.memory_space<vmem>>, vector<1x128xf32>
    %4 = vector.broadcast %3 : vector<1x128xf32> to vector<128x128xf32>
    %5 = arith.addf %2, %4 : vector<128x128xf32>
    %cst_5 = arith.constant 0.000000e+00 : f32
    %6 = vector.broadcast %cst_5 : f32 to vector<128x128xf32>
    %7 = arith.maximumf %5, %6 : vector<128x128xf32>
    %8 = arith.truncf %7 : vector<128x128xf32> to vector<128x128xbf16>
    %c0_6 = arith.constant 0 : index
    %c0_7 = arith.constant 0 : index
    %9 = vector.load %arg4[%c0_6, %c0_7] : memref<128x128xbf16, #tpu.memory_space<vmem>>, vector<128x128xbf16>
    %cst_8 = arith.constant dense<0.000000e+00> : vector<128x128xf32>
    %10 = tpu.matmul %8, %9, %cst_8 {dimension_numbers = #tpu.dot_dimension_numbers<[1], [0], [0], [1], [0, 0, 1, 1], [], []>} : vector<128x128xbf16>, vector<128x128xbf16>, vector<128x128xf32> -> vector<128x128xf32>
    %c0_9 = arith.constant 0 : index
    %c0_10 = arith.constant 0 : index
    %11 = vector.load %arg5[%c0_9, %c0_10] : memref<1x128xf32, #tpu.memory_space<vmem>>, vector<1x128xf32>
    %12 = vector.broadcast %11 : vector<1x128xf32> to vector<128x128xf32>
    %13 = arith.addf %10, %12 : vector<128x128xf32>
    %c0_11 = arith.constant 0 : index
    %c0_12 = arith.constant 0 : index
    %14 = vector.load %arg6[%c0_11, %c0_12] : memref<128x128xf32, #tpu.memory_space<vmem>>, vector<128x128xf32>
    tpu.vector_store %arg6[%c0_11, %c0_12], %13 {strides = array<i32>} : memref<128x128xf32, #tpu.memory_space<vmem>>, vector<128x128xf32>,
    return
  }
  func.func @transform_0(%arg0: i32) -> (i32, i32) {
    %c0_i32 = arith.constant 0 : i32
    %c0_i32_0 = arith.constant 0 : i32
    return %arg0, %c0_i32 : i32, i32
  }
  func.func @transform_1(%arg0: i32) -> (i32, i32) {
    %c0_i32 = arith.constant 0 : i32
    %c0_i32_0 = arith.constant 0 : i32
    %c0_i32_1 = arith.constant 0 : i32
    return %c0_i32, %c0_i32_0 : i32, i32
  }
  func.func @transform_2(%arg0: i32) -> (i32, i32) {
    %c0_i32 = arith.constant 0 : i32
    %c0_i32_0 = arith.constant 0 : i32
    %c0_i32_1 = arith.constant 0 : i32
    return %c0_i32, %c0_i32_0 : i32, i32
  }
  func.func @transform_3(%arg0: i32) -> (i32, i32) {
    %c0_i32 = arith.constant 0 : i32
    %c0_i32_0 = arith.constant 0 : i32
    %c0_i32_1 = arith.constant 0 : i32
    return %c0_i32, %c0_i32_0 : i32, i32
  }
  func.func @transform_4(%arg0: i32) -> (i32, i32) {
    %c0_i32 = arith.constant 0 : i32
    %c0_i32_0 = arith.constant 0 : i32
    %c0_i32_1 = arith.constant 0 : i32
    return %c0_i32, %c0_i32_0 : i32, i32
  }
  func.func @transform_5(%arg0: i32) -> (i32, i32) {
    %c0_i32 = arith.constant 0 : i32
    %c0_i32_0 = arith.constant 0 : i32
    return %arg0, %c0_i32 : i32, i32
  }
}

</mosaic_0001>

<bundles_post_ra>
// kernel: forward_pallas.6
= control target key start
LH: loop header
LB: loop body
LE: loop exit
PB: predicated region body
PF: predicated region fallthrough
CT: control target
= control target key end

     0   :  { %vm78_vm0 = vcmask 1041408   ;;  %vm53_vm1 = vcmask 31744   ;;  %s795_s1 = inlined_call_operand.vmem [shape: bf16[4,128], index: 1, kind: input, shape index: {}]   ;;  %s796_s0 = inlined_call_operand.vmem [shape: f32[128,4], index: 0, kind: input, shape index: {}]   ;;  %s797_s3 = inlined_call_operand.vmem [shape: bf16[128,128], index: 3, kind: input, shape index: {}]   ;;  %s798_s2 = inlined_call_operand.vmem [shape: f32[1,128], index: 2, kind: input, shape index: {}]   ;;  %s799_s4 = inlined_call_operand.vmem [shape: f32[1,128], index: 4, kind: input, shape index: {}]   ;;  %s800_s5 = inlined_call_operand.vmem [shape: bf16[128,128], index: 5, kind: output, shape index: {}]  }
   0x1   :  { %v45_v0 = vld [vmem:[%s795_s1] sm:$0x3]  ;;  %v22_v2 = vld [vmem:[%s796_s0 + $0x8] sm:$0xff]  ;;  %v23_v5 = vld [vmem:[%s796_s0 + $0x10] sm:$0xff] }
   0x2   :  { %v21_v1 = vld [vmem:[%s796_s0] sm:$0xff]  ;;  %643 = vmatprep.subr.msk.bf16.mxu0 %vm78_vm0, %v45_v0  ;;  %v80_v3 = vsel %vm78_vm0, %v45_v0, 0  ;;  %v24_v6 = vld [vmem:[%s796_s0 + $0x18] sm:$0xff]  ;;  %v26_v9 = vld [vmem:[%s796_s0 + $0x28] sm:$0xff] }
   0x3   :  { %v37_v4 = vpack.c.bf16 %v22_v2, %v21_v1  ;;  %v25_v7 = vld [vmem:[%s796_s0 + $0x20] sm:$0xff]  ;;  %578 = vmatpush3.bf16.msra.mxu0 %v80_v3  ;;  %v38_v8 = vpack.c.bf16 %v24_v6, %v23_v5  ;;  %v27_v11 = vld [vmem:[%s796_s0 + $0x30] sm:$0xff]  ;;  %v28_v12 = vld [vmem:[%s796_s0 + $0x38] sm:$0xff] }
   0x4   :  { %v39_v10 = vpack.c.bf16 %v26_v9, %v25_v7  ;;  %v29_v13 = vld [vmem:[%s796_s0 + $0x40] sm:$0xff]  ;;  %v30_v14 = vld [vmem:[%s796_s0 + $0x48] sm:$0xff]  ;;  %v644_v15 = vld [vmem:[%s797_s3 + $0x38] sm:$0xff]   ;;  %v40_v17 = vpack.c.bf16 %v28_v12, %v27_v11 }
   0x5   :  { %579 = vmatprep.mubr.msk.bf16.mxu0 %vm53_vm1, %v37_v4  ;;  %v645_v16 = vld [vmem:[%s797_s3 + $0x30] sm:$0xff]   ;;  %595 = vmatprep.subr.bf16.mxu0 %v644_v15  ;;  %v41_v18 = vpack.c.bf16 %v30_v14, %v29_v13  ;;  %v646_v19 = vld [vmem:[%s797_s3 + $0x28] sm:$0xff]   ;;  %v32_v21 = vld [vmem:[%s796_s0 + $0x58] sm:$0xff] }
   0x6   :  { %580 = vmatmul.mubr.msk.bf16.vlgmr.msra.gmra.mxu0 %vm53_vm1, %v38_v8  ;;  %627 = vmatprep.subr.bf16.mxu1 %v644_v15  ;;  %v31_v20 = vld [vmem:[%s796_s0 + $0x50] sm:$0xff]  ;;  %v33_v22 = vld [vmem:[%s796_s0 + $0x60] sm:$0xff]  ;;  %v34_v23 = vld [vmem:[%s796_s0 + $0x68] sm:$0xff] }
   0x7   :  { %583 = vmatprep.mubr.msk.bf16.mxu0 %vm53_vm1, %v39_v10  ;;  %596 = vmatpush3.bf16.msra.mxu0 %v644_v15  ;;  %v647_v24 = vld [vmem:[%s797_s3 + $0x20] sm:$0xff]   ;;  %v42_v25 = vpack.c.bf16 %v32_v21, %v31_v20  ;;  %v43_v26 = vpack.c.bf16 %v34_v23, %v33_v22  ;;  %v648_v27 = vld [vmem:[%s797_s3 + $0x18] sm:$0xff]   ;;  %v35_v28 = vld [vmem:[%s796_s0 + $0x70] sm:$0xff] }
   0x8   :  { %635 = vmatpush3.bf16.msra.mxu1 %v644_v15  ;;  %597 = vmatprep.subr.bf16.mxu0 %v645_v16  ;;  %v36_v29 = vld [vmem:[%s796_s0 + $0x78] sm:$0xff]  ;;  %v649_v31 = vld [vmem:[%s797_s3 + $0x10] sm:$0xff]   ;;  %v650_v32 = vld [vmem:[%s797_s3 + $0x8] sm:$0xff]  }
   0x9   :  { %628 = vmatprep.subr.bf16.mxu1 %v645_v16  ;;  %v44_v30 = vpack.c.bf16 %v36_v29, %v35_v28  ;;  %v651_v33 = vld [vmem:[%s797_s3] sm:$0xff]  }
   0xa   :  { %v455_v36 = vld [vmem:[%s798_s2] ss:$0 sm:$0xff] }
   0xb   :  { %598 = vmatpush3.bf16.msra.mxu0 %v645_v16  ;;  %v464_v28 = vld [vmem:[%s799_s4] ss:$0 sm:$0xff] }
   0xc   :  { %636 = vmatpush3.bf16.msra.mxu1 %v645_v16  ;;  %599 = vmatprep.subr.bf16.mxu0 %v646_v19 }
   0xd   :  { %629 = vmatprep.subr.bf16.mxu1 %v646_v19 }
   0xe   :  { %584 = vmatmul.mubr.msk.bf16.gmra.mxu0 %vm53_vm1, %v40_v17 }
   0xf   :  { %587 = vmatprep.mubr.msk.bf16.mxu0 %vm53_vm1, %v41_v18  ;;  %600 = vmatpush3.bf16.msra.mxu0 %v646_v19 }
  0x10   :  { %637 = vmatpush3.bf16.msra.mxu1 %v646_v19  ;;  %601 = vmatprep.subr.bf16.mxu0 %v647_v24 }
  0x11   :  { %630 = vmatprep.subr.bf16.mxu1 %v647_v24 }
  0x13   :  { %602 = vmatpush3.bf16.msra.mxu0 %v647_v24 }
  0x14   :  { %638 = vmatpush3.bf16.msra.mxu1 %v647_v24  ;;  %603 = vmatprep.subr.bf16.mxu0 %v648_v27 }
  0x15   :  { %631 = vmatprep.subr.bf16.mxu1 %v648_v27 }
  0x16   :  { %588 = vmatmul.mubr.msk.bf16.gmra.mxu0 %vm53_vm1, %v42_v25 }
  0x17   :  { %591 = vmatprep.mubr.msk.bf16.mxu0 %vm53_vm1, %v43_v26  ;;  %604 = vmatpush3.bf16.msra.mxu0 %v648_v27 }
  0x18   :  { %639 = vmatpush3.bf16.msra.mxu1 %v648_v27  ;;  %605 = vmatprep.subr.bf16.mxu0 %v649_v31 }
  0x19   :  { %632 = vmatprep.subr.bf16.mxu1 %v649_v31 }
  0x1b   :  { %606 = vmatpush3.bf16.msra.mxu0 %v649_v31 }
  0x1c   :  { %640 = vmatpush3.bf16.msra.mxu1 %v649_v31  ;;  %607 = vmatprep.subr.bf16.mxu0 %v650_v32 }
  0x1d   :  { %633 = vmatprep.subr.bf16.mxu1 %v650_v32 }
  0x1e   :  { %592 = vmatmul.mubr.msk.bf16.gmra.mxu0 %vm53_vm1, %v44_v30 }
  0x1f   :  { %608 = vmatpush3.bf16.msra.mxu0 %v650_v32 }
  0x20   :  { %641 = vmatpush3.bf16.msra.mxu1 %v650_v32  ;;  %609 = vmatprep.subr.bf16.mxu0 %v651_v33 }
  0x21   :  { %634 = vmatprep.subr.bf16.mxu1 %v651_v33 }
  0x23   :  { %610 = vmatpush3.bf16.msra.mxu0 %v651_v33 }
  0x24   :  { %642 = vmatpush3.bf16.msra.mxu1 %v651_v33 }
  0xc6   :  { %v581_v34 = vpop.f32.mrf.mxu0 }
  0xc7   :  { %v125_v40 = vadd.f32 %v581_v34, %v455_v36 }
  0xc8   :  { %v116_v35 = vpop.f32.mrf.mxu0 }
  0xc9   :  { %v117_v38 = vadd.f32 %v455_v36, %v116_v35  ;;  %v181_v47 = vmax.f32 %v125_v40, 0.0 }
  0xca   :  { %v582_v37 = vpop.f32.mrf.mxu0 }
  0xcb   :  { %v128_v39 = vadd.f32 %v582_v37, %v455_v36  ;;  %v179_v45 = vmax.f32 %v117_v38, 0.0 }
  0xcc   :  { %v119_v41 = vpop.f32.mrf.mxu0 }
  0xcd   :  { %v120_v42 = vadd.f32 %v455_v36, %v119_v41  ;;  %v182_v43 = vmax.f32 %v128_v39, 0.0 }
  0xce   :  { %v585_v44 = vpop.f32.mrf.mxu0 }
  0xcf   :  { %v180_v46 = vmax.f32 %v120_v42, 0.0  ;;  %v196_v50 = vpack.c.bf16 %v182_v43, %v181_v47  ;;  %v141_v54 = vadd.f32 %v585_v44, %v455_v36 }
  0xd0   :  { %v132_v48 = vpop.f32.mrf.mxu0 }
  0xd1   :  { %v195_v49 = vpack.c.bf16 %v180_v46, %v179_v45  ;;  %v133_v52 = vadd.f32 %v455_v36, %v132_v48  ;;  %v185_v61 = vmax.f32 %v141_v54, 0.0 }
  0xd2   :  { %v586_v51 = vpop.f32.mrf.mxu0 }
  0xd3   :  { %v144_v53 = vadd.f32 %v586_v51, %v455_v36  ;;  %611 = vmatprep.mubr.bf16.mxu0 %v195_v49  ;;  %v183_v59 = vmax.f32 %v133_v52, 0.0 }
  0xd4   :  { %v135_v55 = vpop.f32.mrf.mxu0  ;;  %612 = vmatmul.mubr.bf16.vlgmr.msra.gmra.mxu0 %v196_v50 }
  0xd5   :  { %v136_v56 = vadd.f32 %v455_v36, %v135_v55  ;;  %v186_v57 = vmax.f32 %v144_v53, 0.0 }
  0xd6   :  { %v589_v58 = vpop.f32.mrf.mxu0 }
  0xd7   :  { %v184_v60 = vmax.f32 %v136_v56, 0.0  ;;  %v198_v0 = vpack.c.bf16 %v186_v57, %v185_v61  ;;  %v157_v4 = vadd.f32 %v589_v58, %v455_v36 }
  0xd8   :  { %v148_v62 = vpop.f32.mrf.mxu0 }
  0xd9   :  { %v197_v63 = vpack.c.bf16 %v184_v60, %v183_v59  ;;  %v149_v2 = vadd.f32 %v455_v36, %v148_v62  ;;  %v189_v11 = vmax.f32 %v157_v4, 0.0 }
  0xda   :  { %v590_v1 = vpop.f32.mrf.mxu0 }
  0xdb   :  { %v160_v3 = vadd.f32 %v590_v1, %v455_v36  ;;  %615 = vmatprep.mubr.bf16.mxu1 %v197_v63  ;;  %v187_v9 = vmax.f32 %v149_v2, 0.0 }
  0xdc   :  { %v151_v5 = vpop.f32.mrf.mxu0  ;;  %616 = vmatmul.mubr.bf16.vlgmr.msra.gmra.mxu1 %v198_v0 }
  0xdd   :  { %v152_v6 = vadd.f32 %v455_v36, %v151_v5  ;;  %v190_v7 = vmax.f32 %v160_v3, 0.0 }
  0xde   :  { %v593_v8 = vpop.f32.mrf.mxu0 }
  0xdf   :  { %v188_v10 = vmax.f32 %v152_v6, 0.0  ;;  %v200_v14 = vpack.c.bf16 %v190_v7, %v189_v11  ;;  %v173_v18 = vadd.f32 %v593_v8, %v455_v36 }
  0xe0   :  { %v164_v12 = vpop.f32.mrf.mxu0 }
  0xe1   :  { %v199_v13 = vpack.c.bf16 %v188_v10, %v187_v9  ;;  %v165_v16 = vadd.f32 %v455_v36, %v164_v12  ;;  %v193_v24 = vmax.f32 %v173_v18, 0.0 }
  0xe2   :  { %v594_v15 = vpop.f32.mrf.mxu0 }
  0xe3   :  { %v176_v17 = vadd.f32 %v594_v15, %v455_v36  ;;  %619 = vmatprep.mubr.bf16.mxu1 %v199_v13  ;;  %v191_v22 = vmax.f32 %v165_v16, 0.0 }
  0xe4   :  { %v167_v19 = vpop.f32.mrf.mxu0  ;;  %620 = vmatmul.mubr.bf16.gmra.mxu1 %v200_v14 }
  0xe5   :  { %v168_v20 = vadd.f32 %v455_v36, %v167_v19  ;;  %v194_v21 = vmax.f32 %v176_v17, 0.0 }
  0xe7   :  { %v192_v23 = vmax.f32 %v168_v20, 0.0  ;;  %v202_v26 = vpack.c.bf16 %v194_v21, %v193_v24 }
  0xe9   :  { %v201_v25 = vpack.c.bf16 %v192_v23, %v191_v22 }
  0xeb   :  { %623 = vmatprep.mubr.bf16.mxu1 %v201_v25 }
  0xec   :  { %624 = vmatmul.mubr.bf16.gmra.mxu1 %v202_v26 }
 0x194   :  { %v613_v27 = vpop.f32.mrf.mxu0 }
 0x195   :  { %v317_v31 = vadd.f32 %v613_v27, %v464_v28 }
 0x196   :  { %v308_v29 = vpop.f32.mrf.mxu0 }
 0x197   :  { %v309_v34 = vadd.f32 %v464_v28, %v308_v29 }
 0x198   :  { %v614_v30 = vpop.f32.mrf.mxu0 }
 0x199   :  { %v320_v32 = vadd.f32 %v614_v30, %v464_v28 }
 0x19a   :  { %v311_v33 = vpop.f32.mrf.mxu0 }
 0x19b   :  { %v513_v35 = vpack.c.bf16 %v320_v32, %v317_v31  ;;  %v312_v36 = vadd.f32 %v464_v28, %v311_v33 }
 0x19c   :  { %v617_v37 = vpop.f32.mrf.mxu1 }
 0x19d   :  { %545 = vst [vmem:[%s800_s5 + $0x8] sm:$0xff] %v513_v35   ;;  %v508_v38 = vpack.c.bf16 %v312_v36, %v309_v34  ;;  %v333_v41 = vadd.f32 %v617_v37, %v464_v28 }
 0x19e   :  { %v324_v39 = vpop.f32.mrf.mxu1 }
 0x19f   :  { %509 = vst [vmem:[%s800_s5] sm:$0xff] %v508_v38   ;;  %v325_v44 = vadd.f32 %v464_v28, %v324_v39 }
 0x1a0   :  { %v618_v40 = vpop.f32.mrf.mxu1 }
 0x1a1   :  { %v336_v42 = vadd.f32 %v618_v40, %v464_v28 }
 0x1a2   :  { %v327_v43 = vpop.f32.mrf.mxu1 }
 0x1a3   :  { %v523_v45 = vpack.c.bf16 %v336_v42, %v333_v41  ;;  %v328_v46 = vadd.f32 %v464_v28, %v327_v43 }
 0x1a4   :  { %v621_v47 = vpop.f32.mrf.mxu1 }
 0x1a5   :  { %547 = vst [vmem:[%s800_s5 + $0x18] sm:$0xff] %v523_v45   ;;  %v518_v48 = vpack.c.bf16 %v328_v46, %v325_v44  ;;  %v349_v51 = vadd.f32 %v621_v47, %v464_v28 }
 0x1a6   :  { %v340_v49 = vpop.f32.mrf.mxu1 }
 0x1a7   :  { %546 = vst [vmem:[%s800_s5 + $0x10] sm:$0xff] %v518_v48   ;;  %v341_v54 = vadd.f32 %v464_v28, %v340_v49 }
 0x1a8   :  { %v622_v50 = vpop.f32.mrf.mxu1 }
 0x1a9   :  { %v352_v52 = vadd.f32 %v622_v50, %v464_v28 }
 0x1aa   :  { %v343_v53 = vpop.f32.mrf.mxu1 }
 0x1ab   :  { %v533_v55 = vpack.c.bf16 %v352_v52, %v349_v51  ;;  %v344_v56 = vadd.f32 %v464_v28, %v343_v53 }
 0x1ac   :  { %v625_v57 = vpop.f32.mrf.mxu1 }
 0x1ad   :  { %549 = vst [vmem:[%s800_s5 + $0x28] sm:$0xff] %v533_v55   ;;  %v528_v58 = vpack.c.bf16 %v344_v56, %v341_v54  ;;  %v365_v61 = vadd.f32 %v625_v57, %v464_v28 }
 0x1ae   :  { %v356_v59 = vpop.f32.mrf.mxu1 }
 0x1af   :  { %548 = vst [vmem:[%s800_s5 + $0x20] sm:$0xff] %v528_v58   ;;  %v357_v0 = vadd.f32 %v464_v28, %v356_v59 }
 0x1b0   :  { %v626_v60 = vpop.f32.mrf.mxu1 }
 0x1b1   :  { %v368_v62 = vadd.f32 %v626_v60, %v464_v28 }
 0x1b2   :  { %v359_v63 = vpop.f32.mrf.mxu1 }
 0x1b3   :  { %v543_v1 = vpack.c.bf16 %v368_v62, %v365_v61  ;;  %v360_v2 = vadd.f32 %v464_v28, %v359_v63 }
 0x1b5   :  { %551 = vst [vmem:[%s800_s5 + $0x38] sm:$0xff] %v543_v1   ;;  %v538_v3 = vpack.c.bf16 %v360_v2, %v357_v0 }
 0x1b7   :  { %550 = vst [vmem:[%s800_s5 + $0x30] sm:$0xff] %v538_v3  }

// kernel: forward_pallas.5
= control target key start
LH: loop header
LB: loop body
LE: loop exit
PB: predicated region body
PF: predicated region fallthrough
CT: control target
= control target key end

     0   :  { %vm102_vm0 = vcmask 1042432   ;;  %vm228_vm1 = vcmask 1043456   ;;  %vm77_vm2 = vcmask 48128   ;;  %vm203_vm3 = vcmask 64512   ;;  %s1091_s3 = inlined_call_operand.vmem [shape: bf16[6,128], index: 3, kind: input, shape index: {}]   ;;  %s1092_s2 = inlined_call_operand.vmem [shape: bf16[8,128], index: 2, kind: input, shape index: {}]   ;;  %s1093_s1 = inlined_call_operand.vmem [shape: f32[128,6], index: 1, kind: input, shape index: {}]   ;;  %s1094_s0 = inlined_call_operand.vmem [shape: f32[128,8], index: 0, kind: input, shape index: {}]   ;;  %s1095_s5 = inlined_call_operand.vmem [shape: bf16[128,128], index: 5, kind: input, shape index: {}]   ;;  %s1096_s4 = inlined_call_operand.vmem [shape: f32[1,128], index: 4, kind: input, shape index: {}]   ;;  %s1097_s6 = inlined_call_operand.vmem [shape: f32[1,128], index: 6, kind: input, shape index: {}]   ;;  %s1098_s7 = inlined_call_operand.vmem [shape: bf16[128,128], index: 7, kind: output, shape index: {}]  }
   0x1   :  { %v76_v0 = vld [vmem:[%s1091_s3] sm:$0x7]  ;;  %v53_v5 = vld [vmem:[%s1093_s1 + $0x8] sm:$0xff]  ;;  %v54_v10 = vld [vmem:[%s1093_s1 + $0x10] sm:$0xff] }
   0x2   :  { %v51_v1 = vld [vmem:[%s1092_s2] sm:$0xf]  ;;  %851 = vmatprep.subr.msk.bf16.mxu0 %vm102_vm0, %v76_v0  ;;  %v104_v3 = vsel %vm102_vm0, %v76_v0, 0  ;;  %v28_v7 = vld [vmem:[%s1094_s0 + $0x8] sm:$0xff]  ;;  %v55_v11 = vld [vmem:[%s1093_s1 + $0x18] sm:$0xff] }
   0x3   :  { %v52_v2 = vld [vmem:[%s1093_s1] sm:$0xff]  ;;  %852 = vmatprep.subr.msk.bf16.mxu1 %vm228_vm1, %v51_v1  ;;  %v230_v4 = vsel %vm228_vm1, %v51_v1, 0  ;;  %768 = vmatpush3.bf16.msra.mxu0 %v104_v3  ;;  %v29_v12 = vld [vmem:[%s1094_s0 + $0x10] sm:$0xff]  ;;  %v69_v13 = vpack.c.bf16 %v55_v11, %v54_v10  ;;  %v30_v14 = vld [vmem:[%s1094_s0 + $0x18] sm:$0xff] }
   0x4   :  { %v27_v6 = vld [vmem:[%s1094_s0] sm:$0xff]  ;;  %786 = vmatpush3.bf16.msra.mxu1 %v230_v4  ;;  %v68_v8 = vpack.c.bf16 %v53_v5, %v52_v2  ;;  %v57_v16 = vld [vmem:[%s1093_s1 + $0x28] sm:$0xff]  ;;  %v44_v17 = vpack.c.bf16 %v30_v14, %v29_v12  ;;  %v58_v22 = vld [vmem:[%s1093_s1 + $0x30] sm:$0xff] }
   0x5   :  { %v43_v9 = vpack.c.bf16 %v28_v7, %v27_v6  ;;  %v56_v15 = vld [vmem:[%s1093_s1 + $0x20] sm:$0xff]  ;;  %v32_v20 = vld [vmem:[%s1094_s0 + $0x28] sm:$0xff]  ;;  %v59_v23 = vld [vmem:[%s1093_s1 + $0x38] sm:$0xff] }
   0x6   :  { %769 = vmatprep.mubr.msk.bf16.mxu0 %vm77_vm2, %v68_v8  ;;  %v70_v18 = vpack.c.bf16 %v57_v16, %v56_v15  ;;  %v31_v19 = vld [vmem:[%s1094_s0 + $0x20] sm:$0xff]  ;;  %v33_v24 = vld [vmem:[%s1094_s0 + $0x30] sm:$0xff]  ;;  %v34_v25 = vld [vmem:[%s1094_s0 + $0x38] sm:$0xff]  ;;  %v71_v30 = vpack.c.bf16 %v59_v23, %v58_v22 }
   0x7   :  { %787 = vmatprep.mubr.msk.bf16.mxu1 %vm203_vm3, %v43_v9  ;;  %770 = vmatmul.mubr.msk.bf16.vlgmr.msra.gmra.mxu0 %vm77_vm2, %v69_v13  ;;  %v45_v21 = vpack.c.bf16 %v32_v20, %v31_v19  ;;  %v60_v26 = vld [vmem:[%s1093_s1 + $0x40] sm:$0xff]  ;;  %v61_v27 = vld [vmem:[%s1093_s1 + $0x48] sm:$0xff]  ;;  %v46_v31 = vpack.c.bf16 %v34_v25, %v33_v24  ;;  %v62_v34 = vld [vmem:[%s1093_s1 + $0x50] sm:$0xff] }
   0x8   :  { %788 = vmatmul.mubr.msk.bf16.vlgmr.msra.gmra.mxu1 %vm203_vm3, %v44_v17  ;;  %773 = vmatprep.mubr.msk.bf16.mxu0 %vm77_vm2, %v70_v18  ;;  %v35_v28 = vld [vmem:[%s1094_s0 + $0x40] sm:$0xff]  ;;  %v36_v29 = vld [vmem:[%s1094_s0 + $0x48] sm:$0xff]  ;;  %v72_v32 = vpack.c.bf16 %v61_v27, %v60_v26  ;;  %v63_v35 = vld [vmem:[%s1093_s1 + $0x58] sm:$0xff] }
   0x9   :  { %791 = vmatprep.mubr.msk.bf16.mxu1 %vm203_vm3, %v45_v21  ;;  %v47_v33 = vpack.c.bf16 %v36_v29, %v35_v28  ;;  %v853_v36 = vld [vmem:[%s1095_s5 + $0x38] sm:$0xff]   ;;  %v37_v37 = vld [vmem:[%s1094_s0 + $0x50] sm:$0xff]  ;;  %v64_v39 = vld [vmem:[%s1093_s1 + $0x60] sm:$0xff]  ;;  %v73_v45 = vpack.c.bf16 %v63_v35, %v62_v34 }
   0xa   :  { %v38_v38 = vld [vmem:[%s1094_s0 + $0x58] sm:$0xff]  ;;  %v65_v40 = vld [vmem:[%s1093_s1 + $0x68] sm:$0xff]  ;;  %v854_v41 = vld [vmem:[%s1095_s5 + $0x30] sm:$0xff]   ;;  %803 = vmatprep.subr.bf16.mxu0 %v853_v36  ;;  %835 = vmatprep.subr.bf16.mxu1 %v853_v36 }
   0xb   :  { %v39_v42 = vld [vmem:[%s1094_s0 + $0x60] sm:$0xff]  ;;  %v40_v43 = vld [vmem:[%s1094_s0 + $0x68] sm:$0xff]  ;;  %804 = vmatpush3.bf16.msra.mxu0 %v853_v36  ;;  %843 = vmatpush3.bf16.msra.mxu1 %v853_v36  ;;  %v48_v46 = vpack.c.bf16 %v38_v38, %v37_v37  ;;  %v74_v47 = vpack.c.bf16 %v65_v40, %v64_v39  ;;  %v66_v50 = vld [vmem:[%s1093_s1 + $0x70] sm:$0xff] }
   0xc   :  { %v855_v44 = vld [vmem:[%s1095_s5 + $0x28] sm:$0xff]   ;;  %805 = vmatprep.subr.bf16.mxu0 %v854_v41  ;;  %836 = vmatprep.subr.bf16.mxu1 %v854_v41  ;;  %v49_v48 = vpack.c.bf16 %v40_v43, %v39_v42  ;;  %v856_v49 = vld [vmem:[%s1095_s5 + $0x20] sm:$0xff]   ;;  %v67_v51 = vld [vmem:[%s1093_s1 + $0x78] sm:$0xff] }
   0xd   :  { %v41_v52 = vld [vmem:[%s1094_s0 + $0x70] sm:$0xff]  ;;  %v42_v53 = vld [vmem:[%s1094_s0 + $0x78] sm:$0xff]  ;;  %v75_v54 = vpack.c.bf16 %v67_v51, %v66_v50  ;;  %v859_v58 = vld [vmem:[%s1095_s5 + $0x8] sm:$0xff]  }
   0xe   :  { %v50_v55 = vpack.c.bf16 %v42_v53, %v41_v52  ;;  %v857_v56 = vld [vmem:[%s1095_s5 + $0x18] sm:$0xff]   ;;  %v858_v57 = vld [vmem:[%s1095_s5 + $0x10] sm:$0xff]   ;;  %v860_v59 = vld [vmem:[%s1095_s5] sm:$0xff]  }
   0xf   :  { %774 = vmatmul.mubr.msk.bf16.gmra.mxu0 %vm77_vm2, %v71_v30  ;;  %844 = vmatpush3.bf16.msra.mxu1 %v854_v41  ;;  %v1046_v4 = vld [vmem:[%s1096_s4] ss:$0 sm:$0xff] }
  0x10   :  { %792 = vmatmul.mubr.msk.bf16.gmra.mxu1 %vm203_vm3, %v46_v31  ;;  %777 = vmatprep.mubr.msk.bf16.mxu0 %vm77_vm2, %v72_v32 }
  0x11   :  { %795 = vmatprep.mubr.msk.bf16.mxu1 %vm203_vm3, %v47_v33  ;;  %806 = vmatpush3.bf16.msra.mxu0 %v854_v41 }
  0x12   :  { %807 = vmatprep.subr.bf16.mxu0 %v855_v44  ;;  %837 = vmatprep.subr.bf16.mxu1 %v855_v44 }
  0x13   :  { %845 = vmatpush3.bf16.msra.mxu1 %v855_v44 }
  0x14   :  { %838 = vmatprep.subr.bf16.mxu1 %v856_v49 }
  0x15   :  { %808 = vmatpush3.bf16.msra.mxu0 %v855_v44 }
  0x16   :  { %809 = vmatprep.subr.bf16.mxu0 %v856_v49 }
  0x17   :  { %778 = vmatmul.mubr.msk.bf16.gmra.mxu0 %vm77_vm2, %v73_v45  ;;  %846 = vmatpush3.bf16.msra.mxu1 %v856_v49 }
  0x18   :  { %796 = vmatmul.mubr.msk.bf16.gmra.mxu1 %vm203_vm3, %v48_v46  ;;  %781 = vmatprep.mubr.msk.bf16.mxu0 %vm77_vm2, %v74_v47 }
  0x19   :  { %799 = vmatprep.mubr.msk.bf16.mxu1 %vm203_vm3, %v49_v48  ;;  %810 = vmatpush3.bf16.msra.mxu0 %v856_v49 }
  0x1a   :  { %811 = vmatprep.subr.bf16.mxu0 %v857_v56  ;;  %839 = vmatprep.subr.bf16.mxu1 %v857_v56 }
  0x1b   :  { %847 = vmatpush3.bf16.msra.mxu1 %v857_v56 }
  0x1c   :  { %840 = vmatprep.subr.bf16.mxu1 %v858_v57 }
  0x1d   :  { %812 = vmatpush3.bf16.msra.mxu0 %v857_v56 }
  0x1e   :  { %813 = vmatprep.subr.bf16.mxu0 %v858_v57 }
  0x1f   :  { %782 = vmatmul.mubr.msk.bf16.gmra.mxu0 %vm77_vm2, %v75_v54  ;;  %848 = vmatpush3.bf16.msra.mxu1 %v858_v57 }
  0x20   :  { %800 = vmatmul.mubr.msk.bf16.gmra.mxu1 %vm203_vm3, %v50_v55  ;;  %841 = vmatprep.subr.bf16.mxu1 %v859_v58 }
  0x21   :  { %814 = vmatpush3.bf16.msra.mxu0 %v858_v57 }
  0x22   :  { %815 = vmatprep.subr.bf16.mxu0 %v859_v58 }
  0x23   :  { %849 = vmatpush3.bf16.msra.mxu1 %v859_v58 }
  0x24   :  { %842 = vmatprep.subr.bf16.mxu1 %v860_v59 }
  0x25   :  { %816 = vmatpush3.bf16.msra.mxu0 %v859_v58 }
  0x26   :  { %817 = vmatprep.subr.bf16.mxu0 %v860_v59 }
  0x27   :  { %850 = vmatpush3.bf16.msra.mxu1 %v860_v59 }
  0x29   :  { %818 = vmatpush3.bf16.msra.mxu0 %v860_v59 }
  0xc7   :  { %v771_v60 = vpop.f32.mrf.mxu0 }
  0xc8   :  { %v789_v61 = vpop.f32.mrf.mxu1 }
  0xc9   :  { %v140_v62 = vpop.f32.mrf.mxu0  ;;  %v275_v2 = vadd.f32 %v789_v61, %v771_v60 }
  0xca   :  { %v266_v63 = vpop.f32.mrf.mxu1 }
  0xcb   :  { %v267_v0 = vadd.f32 %v266_v63, %v140_v62  ;;  %v772_v1 = vpop.f32.mrf.mxu0  ;;  %v338_v12 = vadd.f32 %v1046_v4, %v275_v2 }
  0xcc   :  { %v790_v3 = vpop.f32.mrf.mxu1 }
  0xcd   :  { %v278_v5 = vadd.f32 %v790_v3, %v772_v1  ;;  %v143_v6 = vpop.f32.mrf.mxu0  ;;  %v336_v8 = vadd.f32 %v1046_v4, %v267_v0  ;;  %v354_v22 = vmax.f32 %v338_v12, 0.0 }
  0xce   :  { %v269_v7 = vpop.f32.mrf.mxu1 }
  0xcf   :  { %v339_v9 = vadd.f32 %v1046_v4, %v278_v5  ;;  %v270_v10 = vadd.f32 %v269_v7, %v143_v6  ;;  %v775_v11 = vpop.f32.mrf.mxu0  ;;  %v352_v18 = vmax.f32 %v336_v8, 0.0 }
  0xd0   :  { %v793_v13 = vpop.f32.mrf.mxu1 }
  0xd1   :  { %v337_v14 = vadd.f32 %v1046_v4, %v270_v10  ;;  %v156_v15 = vpop.f32.mrf.mxu0  ;;  %v355_v16 = vmax.f32 %v339_v9, 0.0  ;;  %v291_v23 = vadd.f32 %v793_v13, %v775_v11 }
  0xd2   :  { %v282_v17 = vpop.f32.mrf.mxu1 }
  0xd3   :  { %v353_v19 = vmax.f32 %v337_v14, 0.0  ;;  %v283_v20 = vadd.f32 %v282_v17, %v156_v15  ;;  %v776_v21 = vpop.f32.mrf.mxu0  ;;  %v369_v28 = vpack.c.bf16 %v355_v16, %v354_v22  ;;  %v342_v34 = vadd.f32 %v1046_v4, %v291_v23  ;;  %v645_v23 = vld [vmem:[%s1097_s6] ss:$0 sm:$0xff] }
  0xd4   :  { %v794_v24 = vpop.f32.mrf.mxu1 }
  0xd5   :  { %v294_v25 = vadd.f32 %v794_v24, %v776_v21  ;;  %v159_v26 = vpop.f32.mrf.mxu0  ;;  %v368_v27 = vpack.c.bf16 %v353_v19, %v352_v18  ;;  %v340_v30 = vadd.f32 %v1046_v4, %v283_v20  ;;  %v358_v44 = vmax.f32 %v342_v34, 0.0 }
  0xd6   :  { %v285_v29 = vpop.f32.mrf.mxu1 }
  0xd7   :  { %v343_v31 = vadd.f32 %v1046_v4, %v294_v25  ;;  %v286_v32 = vadd.f32 %v285_v29, %v159_v26  ;;  %819 = vmatprep.mubr.bf16.mxu0 %v368_v27  ;;  %v779_v33 = vpop.f32.mrf.mxu0  ;;  %v356_v40 = vmax.f32 %v340_v30, 0.0 }
  0xd8   :  { %v797_v35 = vpop.f32.mrf.mxu1  ;;  %820 = vmatmul.mubr.bf16.vlgmr.msra.gmra.mxu0 %v369_v28 }
  0xd9   :  { %v341_v36 = vadd.f32 %v1046_v4, %v286_v32  ;;  %v172_v37 = vpop.f32.mrf.mxu0  ;;  %v359_v38 = vmax.f32 %v343_v31, 0.0  ;;  %v307_v45 = vadd.f32 %v797_v35, %v779_v33 }
  0xda   :  { %v298_v39 = vpop.f32.mrf.mxu1 }
  0xdb   :  { %v357_v41 = vmax.f32 %v341_v36, 0.0  ;;  %v299_v42 = vadd.f32 %v298_v39, %v172_v37  ;;  %v780_v43 = vpop.f32.mrf.mxu0  ;;  %v371_v51 = vpack.c.bf16 %v359_v38, %v358_v44  ;;  %v346_v56 = vadd.f32 %v1046_v4, %v307_v45 }
  0xdc   :  { %v798_v46 = vpop.f32.mrf.mxu1 }
  0xdd   :  { %v310_v47 = vadd.f32 %v798_v46, %v780_v43  ;;  %v175_v48 = vpop.f32.mrf.mxu0  ;;  %v370_v49 = vpack.c.bf16 %v357_v41, %v356_v40  ;;  %v344_v52 = vadd.f32 %v1046_v4, %v299_v42  ;;  %v362_v2 = vmax.f32 %v346_v56, 0.0 }
  0xde   :  { %v301_v50 = vpop.f32.mrf.mxu1 }
  0xdf   :  { %v347_v53 = vadd.f32 %v1046_v4, %v310_v47  ;;  %v302_v54 = vadd.f32 %v301_v50, %v175_v48  ;;  %823 = vmatprep.mubr.bf16.mxu0 %v370_v49  ;;  %v783_v55 = vpop.f32.mrf.mxu0  ;;  %v360_v62 = vmax.f32 %v344_v52, 0.0 }
  0xe0   :  { %v801_v57 = vpop.f32.mrf.mxu1  ;;  %824 = vmatmul.mubr.bf16.gmra.mxu0 %v371_v51 }
  0xe1   :  { %v345_v58 = vadd.f32 %v1046_v4, %v302_v54  ;;  %v188_v59 = vpop.f32.mrf.mxu0  ;;  %v363_v60 = vmax.f32 %v347_v53, 0.0  ;;  %v323_v3 = vadd.f32 %v801_v57, %v783_v55 }
  0xe2   :  { %v314_v61 = vpop.f32.mrf.mxu1 }
  0xe3   :  { %v361_v63 = vmax.f32 %v345_v58, 0.0  ;;  %v315_v0 = vadd.f32 %v314_v61, %v188_v59  ;;  %v784_v1 = vpop.f32.mrf.mxu0  ;;  %v373_v9 = vpack.c.bf16 %v363_v60, %v362_v2  ;;  %v350_v14 = vadd.f32 %v1046_v4, %v323_v3 }
  0xe4   :  { %v802_v5 = vpop.f32.mrf.mxu1 }
  0xe5   :  { %v326_v6 = vadd.f32 %v802_v5, %v784_v1  ;;  %v191_v7 = vpop.f32.mrf.mxu0  ;;  %v372_v8 = vpack.c.bf16 %v361_v63, %v360_v62  ;;  %v348_v11 = vadd.f32 %v1046_v4, %v315_v0  ;;  %v366_v19 = vmax.f32 %v350_v14, 0.0 }
  0xe6   :  { %v317_v10 = vpop.f32.mrf.mxu1 }
  0xe7   :  { %v351_v12 = vadd.f32 %v1046_v4, %v326_v6  ;;  %v318_v13 = vadd.f32 %v317_v10, %v191_v7  ;;  %827 = vmatprep.mubr.bf16.mxu1 %v372_v8  ;;  %v364_v17 = vmax.f32 %v348_v11, 0.0 }
  0xe8   :  { %828 = vmatmul.mubr.bf16.vlgmr.msra.gmra.mxu1 %v373_v9 }
  0xe9   :  { %v349_v15 = vadd.f32 %v1046_v4, %v318_v13  ;;  %v367_v16 = vmax.f32 %v351_v12, 0.0 }
  0xeb   :  { %v365_v18 = vmax.f32 %v349_v15, 0.0  ;;  %v375_v21 = vpack.c.bf16 %v367_v16, %v366_v19 }
  0xed   :  { %v374_v20 = vpack.c.bf16 %v365_v18, %v364_v17 }
  0xef   :  { %831 = vmatprep.mubr.bf16.mxu1 %v374_v20 }
  0xf0   :  { %832 = vmatmul.mubr.bf16.gmra.mxu1 %v375_v21 }
 0x198   :  { %v821_v22 = vpop.f32.mrf.mxu0 }
 0x199   :  { %v490_v26 = vadd.f32 %v821_v22, %v645_v23 }
 0x19a   :  { %v481_v24 = vpop.f32.mrf.mxu0 }
 0x19b   :  { %v482_v29 = vadd.f32 %v645_v23, %v481_v24 }
 0x19c   :  { %v822_v25 = vpop.f32.mrf.mxu0 }
 0x19d   :  { %v493_v27 = vadd.f32 %v822_v25, %v645_v23 }
 0x19e   :  { %v484_v28 = vpop.f32.mrf.mxu0 }
 0x19f   :  { %v694_v4 = vpack.c.bf16 %v493_v27, %v490_v26  ;;  %v485_v30 = vadd.f32 %v645_v23, %v484_v28 }
 0x1a0   :  { %v825_v31 = vpop.f32.mrf.mxu0 }
 0x1a1   :  { %726 = vst [vmem:[%s1098_s7 + $0x8] sm:$0xff] %v694_v4   ;;  %v689_v32 = vpack.c.bf16 %v485_v30, %v482_v29  ;;  %v506_v35 = vadd.f32 %v825_v31, %v645_v23 }
 0x1a2   :  { %v497_v33 = vpop.f32.mrf.mxu0 }
 0x1a3   :  { %690 = vst [vmem:[%s1098_s7] sm:$0xff] %v689_v32   ;;  %v498_v38 = vadd.f32 %v645_v23, %v497_v33 }
 0x1a4   :  { %v826_v34 = vpop.f32.mrf.mxu0 }
 0x1a5   :  { %v509_v36 = vadd.f32 %v826_v34, %v645_v23 }
 0x1a6   :  { %v500_v37 = vpop.f32.mrf.mxu0 }
 0x1a7   :  { %v704_v39 = vpack.c.bf16 %v509_v36, %v506_v35  ;;  %v501_v40 = vadd.f32 %v645_v23, %v500_v37 }
 0x1a8   :  { %v829_v41 = vpop.f32.mrf.mxu1 }
 0x1a9   :  { %728 = vst [vmem:[%s1098_s7 + $0x18] sm:$0xff] %v704_v39   ;;  %v699_v42 = vpack.c.bf16 %v501_v40, %v498_v38  ;;  %v522_v45 = vadd.f32 %v829_v41, %v645_v23 }
 0x1aa   :  { %v513_v43 = vpop.f32.mrf.mxu1 }
 0x1ab   :  { %727 = vst [vmem:[%s1098_s7 + $0x10] sm:$0xff] %v699_v42   ;;  %v514_v48 = vadd.f32 %v645_v23, %v513_v43 }
 0x1ac   :  { %v830_v44 = vpop.f32.mrf.mxu1 }
 0x1ad   :  { %v525_v46 = vadd.f32 %v830_v44, %v645_v23 }
 0x1ae   :  { %v516_v47 = vpop.f32.mrf.mxu1 }
 0x1af   :  { %v714_v49 = vpack.c.bf16 %v525_v46, %v522_v45  ;;  %v517_v50 = vadd.f32 %v645_v23, %v516_v47 }
 0x1b0   :  { %v833_v51 = vpop.f32.mrf.mxu1 }
 0x1b1   :  { %730 = vst [vmem:[%s1098_s7 + $0x28] sm:$0xff] %v714_v49   ;;  %v709_v52 = vpack.c.bf16 %v517_v50, %v514_v48  ;;  %v538_v55 = vadd.f32 %v833_v51, %v645_v23 }
 0x1b2   :  { %v529_v53 = vpop.f32.mrf.mxu1 }
 0x1b3   :  { %729 = vst [vmem:[%s1098_s7 + $0x20] sm:$0xff] %v709_v52   ;;  %v530_v58 = vadd.f32 %v645_v23, %v529_v53 }
 0x1b4   :  { %v834_v54 = vpop.f32.mrf.mxu1 }
 0x1b5   :  { %v541_v56 = vadd.f32 %v834_v54, %v645_v23 }
 0x1b6   :  { %v532_v57 = vpop.f32.mrf.mxu1 }
 0x1b7   :  { %v724_v59 = vpack.c.bf16 %v541_v56, %v538_v55  ;;  %v533_v60 = vadd.f32 %v645_v23, %v532_v57 }
 0x1b9   :  { %732 = vst [vmem:[%s1098_s7 + $0x38] sm:$0xff] %v724_v59   ;;  %v719_v61 = vpack.c.bf16 %v533_v60, %v530_v58 }
 0x1bb   :  { %731 = vst [vmem:[%s1098_s7 + $0x30] sm:$0xff] %v719_v61  }

// kernel: forward_pallas.9
= control target key start
LH: loop header
LB: loop body
LE: loop exit
PB: predicated region body
PF: predicated region fallthrough
CT: control target
= control target key end

     0   :  { %s767_s1 = inlined_call_operand.vmem [shape: bf16[128,128], index: 1, kind: input, shape index: {}]   ;;  %s768_s0 = inlined_call_operand.vmem [shape: bf16[128,128], index: 0, kind: input, shape index: {}]   ;;  %s769_s3 = inlined_call_operand.vmem [shape: bf16[128,128], index: 3, kind: input, shape index: {}]   ;;  %s770_s2 = inlined_call_operand.vmem [shape: f32[1,128], index: 2, kind: input, shape index: {}]   ;;  %s771_s4 = inlined_call_operand.vmem [shape: f32[1,128], index: 4, kind: input, shape index: {}]   ;;  %s772_s5 = inlined_call_operand.vmem [shape: f32[128,128], index: 5, kind: output, shape index: {}]  }
   0x1   :  { %v587_v0 = vld [vmem:[%s767_s1 + $0x38] sm:$0xff]   ;;  %v588_v1 = vld [vmem:[%s767_s1 + $0x30] sm:$0xff]   ;;  %v589_v2 = vld [vmem:[%s767_s1 + $0x28] sm:$0xff]  }
   0x2   :  { %523 = vmatprep.subr.bf16.mxu0 %v587_v0  ;;  %v590_v3 = vld [vmem:[%s767_s1 + $0x20] sm:$0xff]   ;;  %v591_v5 = vld [vmem:[%s767_s1 + $0x18] sm:$0xff]   ;;  %v592_v6 = vld [vmem:[%s767_s1 + $0x10] sm:$0xff]  }
   0x3   :  { %524 = vmatpush3.bf16.msra.mxu0 %v587_v0  ;;  %v595_v4 = vld [vmem:[%s768_s0] sm:$0xff]   ;;  %v603_v7 = vld [vmem:[%s769_s3 + $0x38] sm:$0xff]   ;;  %v604_v8 = vld [vmem:[%s769_s3 + $0x30] sm:$0xff]  }
   0x4   :  { %525 = vmatprep.subr.bf16.mxu0 %v588_v1  ;;  %539 = vmatprep.mubr.bf16.mxu0 %v595_v4  ;;  %v593_v9 = vld [vmem:[%s767_s1 + $0x8] sm:$0xff]   ;;  %v594_v11 = vld [vmem:[%s767_s1] sm:$0xff]   ;;  %v607_v13 = vld [vmem:[%s769_s3 + $0x18] sm:$0xff]  }
   0x5   :  { %555 = vmatprep.subr.bf16.mxu1 %v603_v7  ;;  %v605_v10 = vld [vmem:[%s769_s3 + $0x28] sm:$0xff]   ;;  %v606_v12 = vld [vmem:[%s769_s3 + $0x20] sm:$0xff]   ;;  %v597_v15 = vld [vmem:[%s768_s0 + $0x10] sm:$0xff]  }
   0x6   :  { %556 = vmatpush3.bf16.msra.mxu1 %v603_v7  ;;  %v596_v14 = vld [vmem:[%s768_s0 + $0x8] sm:$0xff]   ;;  %v598_v16 = vld [vmem:[%s768_s0 + $0x18] sm:$0xff]   ;;  %v599_v17 = vld [vmem:[%s768_s0 + $0x20] sm:$0xff]  }
   0x7   :  { %526 = vmatpush3.bf16.msra.mxu0 %v588_v1  ;;  %557 = vmatprep.subr.bf16.mxu1 %v604_v8  ;;  %v600_v18 = vld [vmem:[%s768_s0 + $0x28] sm:$0xff]   ;;  %v601_v19 = vld [vmem:[%s768_s0 + $0x30] sm:$0xff]   ;;  %v602_v20 = vld [vmem:[%s768_s0 + $0x38] sm:$0xff]  }
   0x8   :  { %527 = vmatprep.subr.bf16.mxu0 %v589_v2  ;;  %v608_v21 = vld [vmem:[%s769_s3 + $0x10] sm:$0xff]   ;;  %v609_v22 = vld [vmem:[%s769_s3 + $0x8] sm:$0xff]   ;;  %v610_v23 = vld [vmem:[%s769_s3] sm:$0xff]  }
   0x9   :  { %v465_v26 = vld [vmem:[%s770_s2] ss:$0 sm:$0xff] }
   0xa   :  { %558 = vmatpush3.bf16.msra.mxu1 %v604_v8 }
   0xb   :  { %528 = vmatpush3.bf16.msra.mxu0 %v589_v2  ;;  %559 = vmatprep.subr.bf16.mxu1 %v605_v10 }
   0xc   :  { %529 = vmatprep.subr.bf16.mxu0 %v590_v3 }
   0xe   :  { %560 = vmatpush3.bf16.msra.mxu1 %v605_v10 }
   0xf   :  { %530 = vmatpush3.bf16.msra.mxu0 %v590_v3  ;;  %561 = vmatprep.subr.bf16.mxu1 %v606_v12 }
  0x10   :  { %531 = vmatprep.subr.bf16.mxu0 %v591_v5 }
  0x12   :  { %562 = vmatpush3.bf16.msra.mxu1 %v606_v12 }
  0x13   :  { %532 = vmatpush3.bf16.msra.mxu0 %v591_v5  ;;  %563 = vmatprep.subr.bf16.mxu1 %v607_v13 }
  0x14   :  { %533 = vmatprep.subr.bf16.mxu0 %v592_v6 }
  0x16   :  { %564 = vmatpush3.bf16.msra.mxu1 %v607_v13 }
  0x17   :  { %534 = vmatpush3.bf16.msra.mxu0 %v592_v6  ;;  %565 = vmatprep.subr.bf16.mxu1 %v608_v21 }
  0x18   :  { %535 = vmatprep.subr.bf16.mxu0 %v593_v9 }
  0x1a   :  { %566 = vmatpush3.bf16.msra.mxu1 %v608_v21 }
  0x1b   :  { %536 = vmatpush3.bf16.msra.mxu0 %v593_v9  ;;  %567 = vmatprep.subr.bf16.mxu1 %v609_v22 }
  0x1c   :  { %537 = vmatprep.subr.bf16.mxu0 %v594_v11 }
  0x1e   :  { %568 = vmatpush3.bf16.msra.mxu1 %v609_v22 }
  0x1f   :  { %538 = vmatpush3.bf16.msra.mxu0 %v594_v11  ;;  %569 = vmatprep.subr.bf16.mxu1 %v610_v23 }
  0x22   :  { %540 = vmatmul.mubr.bf16.vlgmr.msra.gmra.mxu0 %v596_v14  ;;  %570 = vmatpush3.bf16.msra.mxu1 %v610_v23 }
  0x23   :  { %543 = vmatprep.mubr.bf16.mxu0 %v597_v15 }
  0x2a   :  { %544 = vmatmul.mubr.bf16.gmra.mxu0 %v598_v16 }
  0x2b   :  { %547 = vmatprep.mubr.bf16.mxu0 %v599_v17  ;;  %v482_v17 = vld [vmem:[%s771_s4] ss:$0 sm:$0xff] }
  0x32   :  { %548 = vmatmul.mubr.bf16.gmra.mxu0 %v600_v18 }
  0x33   :  { %551 = vmatprep.mubr.bf16.mxu0 %v601_v19 }
  0x3a   :  { %552 = vmatmul.mubr.bf16.gmra.mxu0 %v602_v20 }
  0xe2   :  { %v541_v24 = vpop.f32.mrf.mxu0 }
  0xe3   :  { %v199_v30 = vadd.f32 %v541_v24, %v465_v26 }
  0xe4   :  { %v190_v25 = vpop.f32.mrf.mxu0 }
  0xe5   :  { %v191_v28 = vadd.f32 %v465_v26, %v190_v25  ;;  %v255_v37 = vmax.f32 %v199_v30, 0.0 }
  0xe6   :  { %v542_v27 = vpop.f32.mrf.mxu0 }
  0xe7   :  { %v202_v29 = vadd.f32 %v542_v27, %v465_v26  ;;  %v253_v35 = vmax.f32 %v191_v28, 0.0 }
  0xe8   :  { %v193_v31 = vpop.f32.mrf.mxu0 }
  0xe9   :  { %v194_v32 = vadd.f32 %v465_v26, %v193_v31  ;;  %v256_v33 = vmax.f32 %v202_v29, 0.0 }
  0xea   :  { %v545_v34 = vpop.f32.mrf.mxu0 }
  0xeb   :  { %v254_v36 = vmax.f32 %v194_v32, 0.0  ;;  %v270_v40 = vpack.c.bf16 %v256_v33, %v255_v37  ;;  %v215_v44 = vadd.f32 %v545_v34, %v465_v26 }
  0xec   :  { %v206_v38 = vpop.f32.mrf.mxu0 }
  0xed   :  { %v269_v39 = vpack.c.bf16 %v254_v36, %v253_v35  ;;  %v207_v42 = vadd.f32 %v465_v26, %v206_v38  ;;  %v259_v51 = vmax.f32 %v215_v44, 0.0 }
  0xee   :  { %v546_v41 = vpop.f32.mrf.mxu0 }
  0xef   :  { %v218_v43 = vadd.f32 %v546_v41, %v465_v26  ;;  %571 = vmatprep.mubr.bf16.mxu1 %v269_v39  ;;  %v257_v49 = vmax.f32 %v207_v42, 0.0 }
  0xf0   :  { %v209_v45 = vpop.f32.mrf.mxu0  ;;  %572 = vmatmul.mubr.bf16.vlgmr.msra.gmra.mxu1 %v270_v40 }
  0xf1   :  { %v210_v46 = vadd.f32 %v465_v26, %v209_v45  ;;  %v260_v47 = vmax.f32 %v218_v43, 0.0 }
  0xf2   :  { %v549_v48 = vpop.f32.mrf.mxu0 }
  0xf3   :  { %v258_v50 = vmax.f32 %v210_v46, 0.0  ;;  %v272_v54 = vpack.c.bf16 %v260_v47, %v259_v51  ;;  %v231_v58 = vadd.f32 %v549_v48, %v465_v26 }
  0xf4   :  { %v222_v52 = vpop.f32.mrf.mxu0 }
  0xf5   :  { %v271_v53 = vpack.c.bf16 %v258_v50, %v257_v49  ;;  %v223_v56 = vadd.f32 %v465_v26, %v222_v52  ;;  %v263_v1 = vmax.f32 %v231_v58, 0.0 }
  0xf6   :  { %v550_v55 = vpop.f32.mrf.mxu0 }
  0xf7   :  { %v234_v57 = vadd.f32 %v550_v55, %v465_v26  ;;  %575 = vmatprep.mubr.bf16.mxu1 %v271_v53  ;;  %v261_v63 = vmax.f32 %v223_v56, 0.0 }
  0xf8   :  { %v225_v59 = vpop.f32.mrf.mxu0  ;;  %576 = vmatmul.mubr.bf16.gmra.mxu1 %v272_v54 }
  0xf9   :  { %v226_v60 = vadd.f32 %v465_v26, %v225_v59  ;;  %v264_v61 = vmax.f32 %v234_v57, 0.0 }
  0xfa   :  { %v553_v62 = vpop.f32.mrf.mxu0 }
  0xfb   :  { %v262_v0 = vmax.f32 %v226_v60, 0.0  ;;  %v274_v4 = vpack.c.bf16 %v264_v61, %v263_v1  ;;  %v247_v8 = vadd.f32 %v553_v62, %v465_v26 }
  0xfc   :  { %v238_v2 = vpop.f32.mrf.mxu0 }
  0xfd   :  { %v273_v3 = vpack.c.bf16 %v262_v0, %v261_v63  ;;  %v239_v6 = vadd.f32 %v465_v26, %v238_v2  ;;  %v267_v14 = vmax.f32 %v247_v8, 0.0 }
  0xfe   :  { %v554_v5 = vpop.f32.mrf.mxu0 }
  0xff   :  { %v250_v7 = vadd.f32 %v554_v5, %v465_v26  ;;  %579 = vmatprep.mubr.bf16.mxu1 %v273_v3  ;;  %v265_v12 = vmax.f32 %v239_v6, 0.0 }
 0x100   :  { %v241_v9 = vpop.f32.mrf.mxu0  ;;  %580 = vmatmul.mubr.bf16.gmra.mxu1 %v274_v4 }
 0x101   :  { %v242_v10 = vadd.f32 %v465_v26, %v241_v9  ;;  %v268_v11 = vmax.f32 %v250_v7, 0.0 }
 0x103   :  { %v266_v13 = vmax.f32 %v242_v10, 0.0  ;;  %v276_v16 = vpack.c.bf16 %v268_v11, %v267_v14 }
 0x105   :  { %v275_v15 = vpack.c.bf16 %v266_v13, %v265_v12 }
 0x107   :  { %583 = vmatprep.mubr.bf16.mxu1 %v275_v15 }
 0x108   :  { %584 = vmatmul.mubr.bf16.gmra.mxu1 %v276_v16 }
 0x1b0   :  { %v573_v18 = vpop.f32.mrf.mxu1 }
 0x1b1   :  { %v391_v19 = vadd.f32 %v573_v18, %v482_v17 }
 0x1b2   :  { %v382_v20 = vpop.f32.mrf.mxu1 }
 0x1b3   :  { %447 = vst [vmem:[%s772_s5 + $0x10] sm:$0xff] %v391_v19  ;;  %v383_v21 = vadd.f32 %v482_v17, %v382_v20 }
 0x1b4   :  { %v574_v22 = vpop.f32.mrf.mxu1 }
 0x1b5   :  { %445 = vst [vmem:[%s772_s5] sm:$0xff] %v383_v21  ;;  %v394_v23 = vadd.f32 %v574_v22, %v482_v17 }
 0x1b6   :  { %v385_v24 = vpop.f32.mrf.mxu1 }
 0x1b7   :  { %448 = vst [vmem:[%s772_s5 + $0x18] sm:$0xff] %v394_v23  ;;  %v386_v25 = vadd.f32 %v482_v17, %v385_v24 }
 0x1b8   :  { %v577_v26 = vpop.f32.mrf.mxu1 }
 0x1b9   :  { %446 = vst [vmem:[%s772_s5 + $0x8] sm:$0xff] %v386_v25  ;;  %v407_v27 = vadd.f32 %v577_v26, %v482_v17 }
 0x1ba   :  { %v398_v28 = vpop.f32.mrf.mxu1 }
 0x1bb   :  { %451 = vst [vmem:[%s772_s5 + $0x30] sm:$0xff] %v407_v27  ;;  %v399_v29 = vadd.f32 %v482_v17, %v398_v28 }
 0x1bc   :  { %v578_v30 = vpop.f32.mrf.mxu1 }
 0x1bd   :  { %449 = vst [vmem:[%s772_s5 + $0x20] sm:$0xff] %v399_v29  ;;  %v410_v31 = vadd.f32 %v578_v30, %v482_v17 }
 0x1be   :  { %v401_v32 = vpop.f32.mrf.mxu1 }
 0x1bf   :  { %452 = vst [vmem:[%s772_s5 + $0x38] sm:$0xff] %v410_v31  ;;  %v402_v33 = vadd.f32 %v482_v17, %v401_v32 }
 0x1c0   :  { %v581_v34 = vpop.f32.mrf.mxu1 }
 0x1c1   :  { %450 = vst [vmem:[%s772_s5 + $0x28] sm:$0xff] %v402_v33  ;;  %v423_v35 = vadd.f32 %v581_v34, %v482_v17 }
 0x1c2   :  { %v414_v36 = vpop.f32.mrf.mxu1 }
 0x1c3   :  { %455 = vst [vmem:[%s772_s5 + $0x50] sm:$0xff] %v423_v35  ;;  %v415_v37 = vadd.f32 %v482_v17, %v414_v36 }
 0x1c4   :  { %v582_v38 = vpop.f32.mrf.mxu1 }
 0x1c5   :  { %453 = vst [vmem:[%s772_s5 + $0x40] sm:$0xff] %v415_v37  ;;  %v426_v39 = vadd.f32 %v582_v38, %v482_v17 }
 0x1c6   :  { %v417_v40 = vpop.f32.mrf.mxu1 }
 0x1c7   :  { %456 = vst [vmem:[%s772_s5 + $0x58] sm:$0xff] %v426_v39  ;;  %v418_v41 = vadd.f32 %v482_v17, %v417_v40 }
 0x1c8   :  { %v585_v42 = vpop.f32.mrf.mxu1 }
 0x1c9   :  { %454 = vst [vmem:[%s772_s5 + $0x48] sm:$0xff] %v418_v41  ;;  %v439_v43 = vadd.f32 %v585_v42, %v482_v17 }
 0x1ca   :  { %v430_v44 = vpop.f32.mrf.mxu1 }
 0x1cb   :  { %459 = vst [vmem:[%s772_s5 + $0x70] sm:$0xff] %v439_v43  ;;  %v431_v45 = vadd.f32 %v482_v17, %v430_v44 }
 0x1cc   :  { %v586_v46 = vpop.f32.mrf.mxu1 }
 0x1cd   :  { %457 = vst [vmem:[%s772_s5 + $0x60] sm:$0xff] %v431_v45  ;;  %v442_v47 = vadd.f32 %v586_v46, %v482_v17 }
 0x1ce   :  { %v433_v48 = vpop.f32.mrf.mxu1 }
 0x1cf   :  { %460 = vst [vmem:[%s772_s5 + $0x78] sm:$0xff] %v442_v47  ;;  %v434_v49 = vadd.f32 %v482_v17, %v433_v48 }
 0x1d1   :  { %458 = vst [vmem:[%s772_s5 + $0x68] sm:$0xff] %v434_v49 }

// kernel: forward_pallas.7
= control target key start
LH: loop header
LB: loop body
LE: loop exit
PB: predicated region body
PF: predicated region fallthrough
CT: control target
= control target key end

     0   :  { %v2963_v0 = vmov 0   ;;  %v115_v56 = vlaneseq  ;;  %v2964_v62 = vmov 0.0   ;;  %s3661_s3 = inlined_call_operand.vmem [shape: s32[128,1], index: 3, kind: input, shape index: {}]   ;;  %s3662_s2 = inlined_call_operand.vmem [shape: s32[128,1], index: 2, kind: input, shape index: {}]   ;;  %s3663_s0 = inlined_call_operand.vmem [shape: bf16[128,128], index: 0, kind: input, shape index: {}]   ;;  %s3664_s4 = inlined_call_operand.vmem [shape: f32[128,1], index: 4, kind: input, shape index: {}]   ;;  %s3665_s5 = inlined_call_operand.vmem [shape: bf16[384,128], index: 5, kind: input, shape index: {}]   ;;  %s3666_s1 = inlined_call_operand.vmem [shape: bf16[128,128], index: 1, kind: input, shape index: {}]   ;;  %s3667_s7 = inlined_call_operand.vmem [shape: bf16[128,128], index: 7, kind: input, shape index: {}]   ;;  %s3668_s6 = inlined_call_operand.vmem [shape: f32[1,128], index: 6, kind: input, shape index: {}]   ;;  %s3669_s9 = inlined_call_operand.vmem [shape: bf16[256,128], index: 9, kind: input, shape index: {}]   ;;  %s3670_s8 = inlined_call_operand.vmem [shape: f32[1,128], index: 8, kind: input, shape index: {}]   ;;  %s3671_s13 = inlined_call_operand.vmem [shape: bf16[128,128], index: 13, kind: output, shape index: {0}]   ;;  %s3672_s11 = inlined_call_operand.vmem [shape: bf16[128,128], index: 11, kind: input, shape index: {}]   ;;  %s3673_s10 = inlined_call_operand.vmem [shape: f32[1,128], index: 10, kind: input, shape index: {}]   ;;  %s3674_s12 = inlined_call_operand.vmem [shape: f32[1,128], index: 12, kind: input, shape index: {}]   ;;  %s3675_s14 = inlined_call_operand.vmem [shape: bf16[128,128], index: 14, kind: output, shape index: {1}]  }
   0x1   :  { %2874 = vset.pattern.permute.xlu1 %v2963_v0  ;;  %2873 = vset.pattern.permute.xlu0 %v2963_v0  ;;  %v99_v1 = vld [vmem:[%s3661_s3] sm:$0xff]  ;;  %v100_v3 = vld [vmem:[%s3661_s3 + $0x8] sm:$0xff]  ;;  %v101_v5 = vld [vmem:[%s3661_s3 + $0x10] sm:$0xff] }
   0x2   :  { %v83_v2 = vld [vmem:[%s3662_s2] sm:$0xff]  ;;  %222 = vperm.xlu0 %2873, %v99_v1   ;;  %v84_v4 = vld [vmem:[%s3662_s2 + $0x8] sm:$0xff]  ;;  %v102_v6 = vld [vmem:[%s3661_s3 + $0x18] sm:$0xff]  ;;  %v3254_v57 = vand.u32 127, %v115_v56 }
   0x3   :  { %118 = vperm.xlu1 %2874, %v83_v2   ;;  %v85_v7 = vld [vmem:[%s3662_s2 + $0x10] sm:$0xff]  ;;  %v86_v8 = vld [vmem:[%s3662_s2 + $0x18] sm:$0xff]  ;;  %v103_v9 = vld [vmem:[%s3661_s3 + $0x20] sm:$0xff]  ;;  %v2965_v2 = vmov 1.0|1.0  }
   0x4   :  { %v104_v10 = vld [vmem:[%s3661_s3 + $0x28] sm:$0xff]  ;;  %v3074_v11 = vld [vmem:[%s3663_s0 + $0x38] sm:$0xff]   ;;  %v3079_v12 = vld [vmem:[%s3663_s0 + $0x30] sm:$0xff]  }
   0x5   :  { %v3084_v13 = vld [vmem:[%s3663_s0 + $0x28] sm:$0xff]   ;;  %v87_v14 = vld [vmem:[%s3662_s2 + $0x20] sm:$0xff]  ;;  %2710 = vmatprep.subr.bf16.mxu1 %v3074_v11  ;;  %2678 = vmatprep.subr.bf16.mxu0 %v3074_v11  ;;  %v105_v17 = vld [vmem:[%s3661_s3 + $0x30] sm:$0xff] }
   0x6   :  { %225 = vperm.xlu0 %2873, %v100_v3   ;;  %v88_v15 = vld [vmem:[%s3662_s2 + $0x28] sm:$0xff]  ;;  %2711 = vmatpush3.bf16.msra.mxu1 %v3074_v11  ;;  %v3101_v16 = vld [vmem:[%s3663_s0 + $0x20] sm:$0xff]   ;;  %v106_v18 = vld [vmem:[%s3661_s3 + $0x38] sm:$0xff] }
   0x7   :  { %121 = vperm.xlu1 %2874, %v84_v4   ;;  %2679 = vmatpush3.bf16.msra.mxu0 %v3074_v11  ;;  %v3116_v19 = vld [vmem:[%s3663_s0 + $0x18] sm:$0xff]   ;;  %v89_v20 = vld [vmem:[%s3662_s2 + $0x30] sm:$0xff]  ;;  %v107_v23 = vld [vmem:[%s3661_s3 + $0x40] sm:$0xff] }
   0x8   :  { %2712 = vmatprep.subr.bf16.mxu1 %v3079_v12  ;;  %2680 = vmatprep.subr.bf16.mxu0 %v3079_v12  ;;  %v90_v21 = vld [vmem:[%s3662_s2 + $0x38] sm:$0xff]  ;;  %v3131_v22 = vld [vmem:[%s3663_s0 + $0x10] sm:$0xff]   ;;  %v108_v24 = vld [vmem:[%s3661_s3 + $0x48] sm:$0xff] }
   0x9   :  { %v3146_v25 = vld [vmem:[%s3663_s0 + $0x8] sm:$0xff]   ;;  %v91_v26 = vld [vmem:[%s3662_s2 + $0x40] sm:$0xff]  ;;  %v109_v29 = vld [vmem:[%s3661_s3 + $0x50] sm:$0xff] }
   0xa   :  { %228 = vperm.xlu0 %2873, %v101_v5   ;;  %2713 = vmatpush3.bf16.msra.mxu1 %v3079_v12  ;;  %v92_v27 = vld [vmem:[%s3662_s2 + $0x48] sm:$0xff]  ;;  %v3161_v28 = vld [vmem:[%s3663_s0] sm:$0xff]   ;;  %v110_v30 = vld [vmem:[%s3661_s3 + $0x58] sm:$0xff] }
   0xb   :  { %231 = vperm.xlu1 %2874, %v102_v6   ;;  %2681 = vmatpush3.bf16.msra.mxu0 %v3079_v12  ;;  %v93_v31 = vld [vmem:[%s3662_s2 + $0x50] sm:$0xff]  ;;  %v94_v32 = vld [vmem:[%s3662_s2 + $0x58] sm:$0xff]  ;;  %v111_v33 = vld [vmem:[%s3661_s3 + $0x60] sm:$0xff] }
   0xc   :  { %2714 = vmatprep.subr.bf16.mxu1 %v3084_v13  ;;  %2682 = vmatprep.subr.bf16.mxu0 %v3084_v13  ;;  %v112_v34 = vld [vmem:[%s3661_s3 + $0x68] sm:$0xff]  ;;  %v95_v35 = vld [vmem:[%s3662_s2 + $0x60] sm:$0xff]  ;;  %v113_v37 = vld [vmem:[%s3661_s3 + $0x70] sm:$0xff] }
   0xd   :  { %v96_v36 = vld [vmem:[%s3662_s2 + $0x68] sm:$0xff]  ;;  %v114_v38 = vld [vmem:[%s3661_s3 + $0x78] sm:$0xff]  ;;  %v97_v39 = vld [vmem:[%s3662_s2 + $0x70] sm:$0xff] }
   0xe   :  { %124 = vperm.xlu0 %2873, %v85_v7   ;;  %2715 = vmatpush3.bf16.msra.mxu1 %v3084_v13  ;;  %v98_v40 = vld [vmem:[%s3662_s2 + $0x78] sm:$0xff]  ;;  %v1492_v41 = vld [vmem:[%s3664_s4] sm:$0xff]  ;;  %v1493_v42 = vld [vmem:[%s3664_s4 + $0x8] sm:$0xff] }
   0xf   :  { %127 = vperm.xlu1 %2874, %v86_v8   ;;  %2683 = vmatpush3.bf16.msra.mxu0 %v3084_v13  ;;  %v1494_v43 = vld [vmem:[%s3664_s4 + $0x10] sm:$0xff]  ;;  %v1495_v44 = vld [vmem:[%s3664_s4 + $0x18] sm:$0xff]  ;;  %v1496_v45 = vld [vmem:[%s3664_s4 + $0x20] sm:$0xff] }
  0x10   :  { %2716 = vmatprep.subr.bf16.mxu1 %v3101_v16  ;;  %2684 = vmatprep.subr.bf16.mxu0 %v3101_v16  ;;  %v1497_v46 = vld [vmem:[%s3664_s4 + $0x28] sm:$0xff]  ;;  %v1498_v47 = vld [vmem:[%s3664_s4 + $0x30] sm:$0xff]  ;;  %v1499_v48 = vld [vmem:[%s3664_s4 + $0x38] sm:$0xff] }
  0x11   :  { %v1500_v49 = vld [vmem:[%s3664_s4 + $0x40] sm:$0xff]  ;;  %v1501_v50 = vld [vmem:[%s3664_s4 + $0x48] sm:$0xff]  ;;  %v1502_v51 = vld [vmem:[%s3664_s4 + $0x50] sm:$0xff] }
  0x12   :  { %234 = vperm.xlu0 %2873, %v103_v9   ;;  %2717 = vmatpush3.bf16.msra.mxu1 %v3101_v16  ;;  %v1503_v52 = vld [vmem:[%s3664_s4 + $0x58] sm:$0xff]  ;;  %v1504_v53 = vld [vmem:[%s3664_s4 + $0x60] sm:$0xff]  ;;  %v1505_v54 = vld [vmem:[%s3664_s4 + $0x68] sm:$0xff] }
  0x13   :  { %237 = vperm.xlu1 %2874, %v104_v10   ;;  %2685 = vmatpush3.bf16.msra.mxu0 %v3101_v16  ;;  %v1506_v55 = vld [vmem:[%s3664_s4 + $0x70] sm:$0xff] }
  0x14   :  { %2718 = vmatprep.subr.bf16.mxu1 %v3116_v19  ;;  %2686 = vmatprep.subr.bf16.mxu0 %v3116_v19 }
  0x16   :  { %130 = vperm.xlu0 %2873, %v87_v14   ;;  %2719 = vmatpush3.bf16.msra.mxu1 %v3116_v19 }
  0x17   :  { %133 = vperm.xlu1 %2874, %v88_v15   ;;  %2687 = vmatpush3.bf16.msra.mxu0 %v3116_v19 }
  0x18   :  { %2720 = vmatprep.subr.bf16.mxu1 %v3131_v22  ;;  %2688 = vmatprep.subr.bf16.mxu0 %v3131_v22 }
  0x1a   :  { %240 = vperm.xlu0 %2873, %v105_v17   ;;  %2721 = vmatpush3.bf16.msra.mxu1 %v3131_v22 }
  0x1b   :  { %243 = vperm.xlu1 %2874, %v106_v18   ;;  %2689 = vmatpush3.bf16.msra.mxu0 %v3131_v22 }
  0x1c   :  { %2722 = vmatprep.subr.bf16.mxu1 %v3146_v25  ;;  %2690 = vmatprep.subr.bf16.mxu0 %v3146_v25 }
  0x1e   :  { %136 = vperm.xlu0 %2873, %v89_v20   ;;  %2723 = vmatpush3.bf16.msra.mxu1 %v3146_v25 }
  0x1f   :  { %139 = vperm.xlu1 %2874, %v90_v21   ;;  %2691 = vmatpush3.bf16.msra.mxu0 %v3146_v25 }
  0x20   :  { %2724 = vmatprep.subr.bf16.mxu1 %v3161_v28  ;;  %2692 = vmatprep.subr.bf16.mxu0 %v3161_v28 }
  0x22   :  { %246 = vperm.xlu0 %2873, %v107_v23   ;;  %2725 = vmatpush3.bf16.msra.mxu1 %v3161_v28 }
  0x23   :  { %249 = vperm.xlu1 %2874, %v108_v24   ;;  %2693 = vmatpush3.bf16.msra.mxu0 %v3161_v28 }
  0x26   :  { %142 = vperm.xlu0 %2873, %v91_v26   ;;  %v2883_v26 = vld [vmem:[%s3665_s5 + $0x78] sm:$0xff]  }
  0x27   :  { %145 = vperm.xlu1 %2874, %v92_v27   ;;  %2486 = vmatprep.subr.bf16.mxu0 %v2883_v26  ;;  %v2884_v27 = vld [vmem:[%s3665_s5 + $0x38] sm:$0xff]   ;;  %v2905_v26 = vld [vmem:[%s3665_s5] sm:$0xff]  }
  0x2a   :  { %252 = vperm.xlu0 %2873, %v109_v29   ;;  %v2885_v29 = vld [vmem:[%s3665_s5 + $0x70] sm:$0xff]  }
  0x2b   :  { %255 = vperm.xlu1 %2874, %v110_v30  }
  0x2e   :  { %148 = vperm.xlu0 %2873, %v93_v31  }
  0x2f   :  { %151 = vperm.xlu1 %2874, %v94_v32   ;;  %v2886_v32 = vld [vmem:[%s3665_s5 + $0xb8] sm:$0xff]  }
  0x30   :  { %2742 = vmatprep.subr.bf16.mxu1 %v2886_v32 }
  0x32   :  { %258 = vperm.xlu0 %2873, %v111_v33  }
  0x33   :  { %261 = vperm.xlu1 %2874, %v112_v34  }
  0x36   :  { %154 = vperm.xlu0 %2873, %v95_v35  }
  0x37   :  { %157 = vperm.xlu1 %2874, %v96_v36   ;;  %v2887_v36 = vld [vmem:[%s3665_s5 + $0x30] sm:$0xff]  }
  0x3a   :  { %264 = vperm.xlu0 %2873, %v113_v37   ;;  %v2888_v37 = vld [vmem:[%s3665_s5 + $0x68] sm:$0xff]  }
  0x3b   :  { %267 = vperm.xlu1 %2874, %v114_v38   ;;  %v2889_v38 = vld [vmem:[%s3665_s5 + $0xb0] sm:$0xff]  }
  0x3e   :  { %160 = vperm.xlu0 %2873, %v97_v39  }
  0x3f   :  { %163 = vperm.xlu1 %2874, %v98_v40  }
  0x43   :  { %1510 = vperm.xlu1 %2874, %v1492_v41   ;;  %v2890_v41 = vld [vmem:[%s3665_s5 + $0x28] sm:$0xff]  }
  0x47   :  { %1515 = vperm.xlu1 %2874, %v1493_v42   ;;  %v2891_v42 = vld [vmem:[%s3665_s5 + $0x60] sm:$0xff]  }
  0x4b   :  { %1520 = vperm.xlu1 %2874, %v1494_v43   ;;  %v2892_v43 = vld [vmem:[%s3665_s5 + $0xa8] sm:$0xff]  }
  0x4f   :  { %1525 = vperm.xlu1 %2874, %v1495_v44  }
  0x53   :  { %1530 = vperm.xlu1 %2874, %v1496_v45  }
  0x57   :  { %1535 = vperm.xlu1 %2874, %v1497_v46  }
  0x5b   :  { %1540 = vperm.xlu1 %2874, %v1498_v47  }
  0x5f   :  { %1545 = vperm.xlu1 %2874, %v1499_v48  }
  0x63   :  { %1550 = vperm.xlu1 %2874, %v1500_v49  }
  0x67   :  { %1555 = vperm.xlu1 %2874, %v1501_v50  }
  0x6b   :  { %1560 = vperm.xlu1 %2874, %v1502_v51  }
  0x6f   :  { %1565 = vperm.xlu1 %2874, %v1503_v52  }
  0x73   :  { %1570 = vperm.xlu1 %2874, %v1504_v53  }
  0x77   :  { %1575 = vperm.xlu1 %2874, %v1505_v54  }
  0x7b   :  { %1580 = vperm.xlu1 %2874, %v1506_v55  }
  0x7d   :  { %v223_v58 = vpop.permute.xlu0 %222 }
  0x7e   :  { %v119_v59 = vpop.permute.xlu1 %118  ;;  %vm269_vm3 = vcmp.eq.s32.totalorder %v223_v58, %v3254_v57 }
  0x7f   :  { %vm165_vm0 = vcmp.eq.s32.totalorder %v119_v59, %v3254_v57 }
  0x80   :  { %v2156_v63 = vsel %vm165_vm0, 1.0, %v2964_v62 }
  0x81   :  { %v226_v60 = vpop.permute.xlu0 %225 }
  0x82   :  { %v122_v61 = vpop.permute.xlu1 %121  ;;  %vm270_vm1 = vcmp.eq.s32.totalorder %v226_v60, %v3254_v57 }
  0x83   :  { %vm166_vm2 = vcmp.eq.s32.totalorder %v122_v61, %v3254_v57  ;;  %vm2212_vm5 = vmpackc.low %vm270_vm1, %vm269_vm3 }
  0x84   :  { %v2157_v0 = vsel %vm166_vm2, 1.0, %v2964_v62  ;;  %vm2196_vm4 = vmpackc.low %vm166_vm2, %vm165_vm0  ;;  %2726 = vmatprep.mubr.msk.bf16.mxu1 %vm2212_vm5, %v2965_v2 }
  0x85   :  { %v213_v1 = vpack.c.bf16 %v2157_v0, %v2156_v63  ;;  %2694 = vmatprep.mubr.msk.bf16.mxu0 %vm2196_vm4, %v2965_v2  ;;  %v229_v3 = vpop.permute.xlu0 %228 }
  0x86   :  { %v232_v4 = vpop.permute.xlu1 %231  ;;  %vm271_vm6 = vcmp.eq.s32.totalorder %v229_v3, %v3254_v57 }
  0x87   :  { %vm272_vm7 = vcmp.eq.s32.totalorder %v232_v4, %v3254_v57  ;;  %1328 = vxpose.xlu0.c.b16.start [1/8] %v213_v1, 128 }
  0x88   :  { %vm2214_vm8 = vmpackc.low %vm272_vm7, %vm271_vm6 }
  0x89   :  { %2727 = vmatmul.mubr.msk.bf16.vlgmr.msra.gmra.mxu1 %vm2214_vm8, %v2965_v2  ;;  %v125_v5 = vpop.permute.xlu0 %124 }
  0x8a   :  { %v128_v6 = vpop.permute.xlu1 %127  ;;  %vm167_vm9 = vcmp.eq.s32.totalorder %v125_v5, %v3254_v57  ;;  %2743 = vmatpush3.bf16.msra.mxu1 %v2886_v32  ;;  %v2910_v32 = vld [vmem:[%s3666_s1 + $0x18] sm:$0xff]  }
  0x8b   :  { %vm168_vm10 = vcmp.eq.s32.totalorder %v128_v6, %v3254_v57  ;;  %v2158_v7 = vsel %vm167_vm9, 1.0, %v2964_v62  ;;  %2744 = vmatprep.subr.bf16.mxu1 %v2889_v38 }
  0x8c   :  { %v2159_v8 = vsel %vm168_vm10, 1.0, %v2964_v62  ;;  %vm2198_vm11 = vmpackc.low %vm168_vm10, %vm167_vm9 }
  0x8d   :  { %v214_v9 = vpack.c.bf16 %v2159_v8, %v2158_v7  ;;  %2695 = vmatmul.mubr.msk.bf16.vlgmr.msra.gmra.mxu0 %vm2198_vm11, %v2965_v2  ;;  %v235_v10 = vpop.permute.xlu0 %234 }
  0x8e   :  { %v238_v14 = vpop.permute.xlu1 %237  ;;  %vm273_vm12 = vcmp.eq.s32.totalorder %v235_v10, %v3254_v57  ;;  %2487 = vmatpush3.bf16.msra.mxu0 %v2884_v27  ;;  %2745 = vmatpush3.bf16.msra.mxu1 %v2889_v38  ;;  %v2894_v10 = vld [vmem:[%s3665_s5 + $0x58] sm:$0xff]   ;;  %v2906_v27 = vld [vmem:[%s3665_s5 + $0x80] sm:$0xff]   ;;  %v2916_v38 = vld [vmem:[%s3667_s7 + $0x30] sm:$0xff]  }
  0x8f   :  { %vm274_vm13 = vcmp.eq.s32.totalorder %v238_v14, %v3254_v57  ;;  %1329 = vxpose.xlu0.c.b16.cont [2/8] %v214_v9, 128  ;;  %2488 = vmatprep.subr.bf16.mxu0 %v2885_v29  ;;  %v2893_v9 = vld [vmem:[%s3665_s5 + $0x20] sm:$0xff]   ;;  %v2897_v14 = vld [vmem:[%s3665_s5 + $0x50] sm:$0xff]  }
  0x90   :  { %vm2216_vm14 = vmpackc.low %vm274_vm13, %vm273_vm12  ;;  %2746 = vmatprep.subr.bf16.mxu1 %v2892_v43  ;;  %v2907_v29 = vld [vmem:[%s3666_s1] sm:$0xff]  }
  0x91   :  { %2730 = vmatprep.mubr.msk.bf16.mxu1 %vm2216_vm14, %v2965_v2  ;;  %v131_v15 = vpop.permute.xlu0 %130 }
  0x92   :  { %v134_v17 = vpop.permute.xlu1 %133  ;;  %vm169_vm15 = vcmp.eq.s32.totalorder %v131_v15, %v3254_v57  ;;  %2489 = vmatpush3.bf16.msra.mxu0 %v2887_v36  ;;  %2747 = vmatpush3.bf16.msra.mxu1 %v2892_v43  ;;  %v2898_v15 = vld [vmem:[%s3665_s5 + $0x98] sm:$0xff]  }
  0x93   :  { %vm170_vm0 = vcmp.eq.s32.totalorder %v134_v17, %v3254_v57  ;;  %v2160_v18 = vsel %vm169_vm15, 1.0, %v2964_v62  ;;  %2490 = vmatprep.subr.bf16.mxu0 %v2888_v37  ;;  %v2899_v17 = vld [vmem:[%s3665_s5 + $0x10] sm:$0xff]   ;;  %v2914_v36 = vld [vmem:[%s3666_s1 + $0x38] sm:$0xff]  }
  0x94   :  { %v2161_v20 = vsel %vm170_vm0, 1.0, %v2964_v62  ;;  %vm2200_vm1 = vmpackc.low %vm170_vm0, %vm169_vm15  ;;  %v2915_v37 = vld [vmem:[%s3667_s7 + $0x38] sm:$0xff]  }
  0x95   :  { %v215_v21 = vpack.c.bf16 %v2161_v20, %v2160_v18  ;;  %2698 = vmatprep.mubr.msk.bf16.mxu0 %vm2200_vm1, %v2965_v2  ;;  %v241_v23 = vpop.permute.xlu0 %240  ;;  %v2900_v18 = vld [vmem:[%s3665_s5 + $0x48] sm:$0xff]   ;;  %v2901_v20 = vld [vmem:[%s3665_s5 + $0x90] sm:$0xff]  }
  0x96   :  { %v244_v24 = vpop.permute.xlu1 %243  ;;  %vm275_vm2 = vcmp.eq.s32.totalorder %v241_v23, %v3254_v57  ;;  %2491 = vmatpush3.bf16.msra.mxu0 %v2890_v41  ;;  %v2903_v23 = vld [vmem:[%s3665_s5 + $0x40] sm:$0xff]  }
  0x97   :  { %vm276_vm3 = vcmp.eq.s32.totalorder %v244_v24, %v3254_v57  ;;  %1330 = vxpose.xlu0.c.b16.cont [3/8] %v215_v21, 128  ;;  %2492 = vmatprep.subr.bf16.mxu0 %v2891_v42  ;;  %v2902_v21 = vld [vmem:[%s3665_s5 + $0x8] sm:$0xff]  }
  0x98   :  { %vm2218_vm4 = vmpackc.low %vm276_vm3, %vm275_vm2  ;;  %v2904_v24 = vld [vmem:[%s3665_s5 + $0x88] sm:$0xff]  }
  0x99   :  { %2731 = vmatmul.mubr.msk.bf16.gmra.mxu1 %vm2218_vm4, %v2965_v2  ;;  %v137_v30 = vpop.permute.xlu0 %136 }
  0x9a   :  { %v140_v31 = vpop.permute.xlu1 %139  ;;  %vm171_vm5 = vcmp.eq.s32.totalorder %v137_v30, %v3254_v57  ;;  %2493 = vmatpush3.bf16.msra.mxu0 %v2893_v9  ;;  %v2908_v30 = vld [vmem:[%s3666_s1 + $0x8] sm:$0xff]  }
  0x9b   :  { %vm172_vm6 = vcmp.eq.s32.totalorder %v140_v31, %v3254_v57  ;;  %v2162_v33 = vsel %vm171_vm5, 1.0, %v2964_v62  ;;  %2494 = vmatprep.subr.bf16.mxu0 %v2894_v10  ;;  %v2909_v31 = vld [vmem:[%s3666_s1 + $0x10] sm:$0xff]  }
  0x9c   :  { %v2163_v34 = vsel %vm172_vm6, 1.0, %v2964_v62  ;;  %vm2202_vm7 = vmpackc.low %vm172_vm6, %vm171_vm5 }
  0x9d   :  { %v216_v35 = vpack.c.bf16 %v2163_v34, %v2162_v33  ;;  %2699 = vmatmul.mubr.msk.bf16.gmra.mxu0 %vm2202_vm7, %v2965_v2  ;;  %v247_v39 = vpop.permute.xlu0 %246  ;;  %v2911_v33 = vld [vmem:[%s3666_s1 + $0x20] sm:$0xff]   ;;  %v2912_v34 = vld [vmem:[%s3666_s1 + $0x28] sm:$0xff]  }
  0x9e   :  { %v250_v40 = vpop.permute.xlu1 %249  ;;  %vm277_vm8 = vcmp.eq.s32.totalorder %v247_v39, %v3254_v57 }
  0x9f   :  { %vm278_vm9 = vcmp.eq.s32.totalorder %v250_v40, %v3254_v57  ;;  %1331 = vxpose.xlu0.c.b16.cont [4/8] %v216_v35, 128  ;;  %v2913_v35 = vld [vmem:[%s3666_s1 + $0x30] sm:$0xff]  }
  0xa0   :  { %vm2220_vm10 = vmpackc.low %vm278_vm9, %vm277_vm8 }
  0xa1   :  { %2734 = vmatprep.mubr.msk.bf16.mxu1 %vm2220_vm10, %v2965_v2  ;;  %v143_v44 = vpop.permute.xlu0 %142 }
  0xa2   :  { %v146_v45 = vpop.permute.xlu1 %145  ;;  %vm173_vm11 = vcmp.eq.s32.totalorder %v143_v44, %v3254_v57 }
  0xa3   :  { %vm174_vm12 = vcmp.eq.s32.totalorder %v146_v45, %v3254_v57  ;;  %v2164_v46 = vsel %vm173_vm11, 1.0, %v2964_v62 }
  0xa4   :  { %v2165_v47 = vsel %vm174_vm12, 1.0, %v2964_v62  ;;  %vm2204_vm13 = vmpackc.low %vm174_vm12, %vm173_vm11 }
  0xa5   :  { %v217_v48 = vpack.c.bf16 %v2165_v47, %v2164_v46  ;;  %2702 = vmatprep.mubr.msk.bf16.mxu0 %vm2204_vm13, %v2965_v2  ;;  %v253_v49 = vpop.permute.xlu0 %252 }
  0xa6   :  { %v256_v50 = vpop.permute.xlu1 %255  ;;  %vm279_vm14 = vcmp.eq.s32.totalorder %v253_v49, %v3254_v57 }
  0xa7   :  { %vm280_vm15 = vcmp.eq.s32.totalorder %v256_v50, %v3254_v57  ;;  %1332 = vxpose.xlu0.c.b16.cont [5/8] %v217_v48, 128 }
  0xa8   :  { %vm2222_vm0 = vmpackc.low %vm280_vm15, %vm279_vm14 }
  0xa9   :  { %2735 = vmatmul.mubr.msk.bf16.gmra.mxu1 %vm2222_vm0, %v2965_v2  ;;  %v149_v51 = vpop.permute.xlu0 %148 }
  0xaa   :  { %v152_v52 = vpop.permute.xlu1 %151  ;;  %vm175_vm1 = vcmp.eq.s32.totalorder %v149_v51, %v3254_v57 }
  0xab   :  { %vm176_vm2 = vcmp.eq.s32.totalorder %v152_v52, %v3254_v57  ;;  %v2166_v53 = vsel %vm175_vm1, 1.0, %v2964_v62 }
  0xac   :  { %v2167_v54 = vsel %vm176_vm2, 1.0, %v2964_v62  ;;  %vm2206_vm3 = vmpackc.low %vm176_vm2, %vm175_vm1 }
  0xad   :  { %v218_v55 = vpack.c.bf16 %v2167_v54, %v2166_v53  ;;  %2703 = vmatmul.mubr.msk.bf16.gmra.mxu0 %vm2206_vm3, %v2965_v2  ;;  %v259_v56 = vpop.permute.xlu0 %258 }
  0xae   :  { %v262_v58 = vpop.permute.xlu1 %261  ;;  %vm281_vm4 = vcmp.eq.s32.totalorder %v259_v56, %v3254_v57 }
  0xaf   :  { %vm282_vm5 = vcmp.eq.s32.totalorder %v262_v58, %v3254_v57  ;;  %1333 = vxpose.xlu0.c.b16.cont [6/8] %v218_v55, 128 }
  0xb0   :  { %vm2224_vm6 = vmpackc.low %vm282_vm5, %vm281_vm4 }
  0xb1   :  { %2738 = vmatprep.mubr.msk.bf16.mxu1 %vm2224_vm6, %v2965_v2  ;;  %v155_v59 = vpop.permute.xlu0 %154 }
  0xb2   :  { %v158_v60 = vpop.permute.xlu1 %157  ;;  %vm177_vm7 = vcmp.eq.s32.totalorder %v155_v59, %v3254_v57 }
  0xb3   :  { %vm178_vm8 = vcmp.eq.s32.totalorder %v158_v60, %v3254_v57  ;;  %v2168_v61 = vsel %vm177_vm7, 1.0, %v2964_v62 }
  0xb4   :  { %v2169_v63 = vsel %vm178_vm8, 1.0, %v2964_v62  ;;  %vm2208_vm9 = vmpackc.low %vm178_vm8, %vm177_vm7 }
  0xb5   :  { %v219_v0 = vpack.c.bf16 %v2169_v63, %v2168_v61  ;;  %2706 = vmatprep.mubr.msk.bf16.mxu0 %vm2208_vm9, %v2965_v2  ;;  %v265_v1 = vpop.permute.xlu0 %264 }
  0xb6   :  { %v268_v3 = vpop.permute.xlu1 %267  ;;  %vm283_vm10 = vcmp.eq.s32.totalorder %v265_v1, %v3254_v57 }
  0xb7   :  { %vm284_vm11 = vcmp.eq.s32.totalorder %v268_v3, %v3254_v57  ;;  %1334 = vxpose.xlu0.c.b16.cont [7/8] %v219_v0, 128 }
  0xb8   :  { %vm2226_vm12 = vmpackc.low %vm284_vm11, %vm283_vm10 }
  0xb9   :  { %2739 = vmatmul.mubr.msk.bf16.gmra.mxu1 %vm2226_vm12, %v2965_v2  ;;  %v161_v4 = vpop.permute.xlu0 %160 }
  0xba   :  { %v164_v5 = vpop.permute.xlu1 %163  ;;  %vm179_vm13 = vcmp.eq.s32.totalorder %v161_v4, %v3254_v57  ;;  %2758 = vmatprep.mubr.bf16.mxu1 %v2907_v29 }
  0xbb   :  { %vm180_vm14 = vcmp.eq.s32.totalorder %v164_v5, %v3254_v57  ;;  %v2170_v6 = vsel %vm179_vm13, 1.0, %v2964_v62  ;;  %v2895_v57 = vld [vmem:[%s3665_s5 + $0xa0] sm:$0xff]  }
  0xbc   :  { %v2171_v7 = vsel %vm180_vm14, 1.0, %v2964_v62  ;;  %vm2210_vm15 = vmpackc.low %vm180_vm14, %vm179_vm13  ;;  %v2896_v62 = vld [vmem:[%s3665_s5 + $0x18] sm:$0xff]   ;;  %2748 = vmatprep.subr.bf16.mxu1 %v2895_v57 }
  0xbd   :  { %v220_v8 = vpack.c.bf16 %v2171_v7, %v2170_v6  ;;  %2707 = vmatmul.mubr.msk.bf16.gmra.mxu0 %vm2210_vm15, %v2965_v2  ;;  %v1507_v2 = vld [vmem:[%s3664_s4 + $0x78] sm:$0xff]  ;;  %2749 = vmatpush3.bf16.msra.mxu1 %v2895_v57 }
  0xbe   :  { %2495 = vmatpush3.bf16.msra.mxu0 %v2896_v62  ;;  %2750 = vmatprep.subr.bf16.mxu1 %v2898_v15 }
  0xbf   :  { %1335 = vxpose.xlu0.c.b16.end [8/8] %v220_v8, 128  ;;  %2496 = vmatprep.subr.bf16.mxu0 %v2897_v14 }
  0xc1   :  { %2751 = vmatpush3.bf16.msra.mxu1 %v2898_v15 }
  0xc2   :  { %2497 = vmatpush3.bf16.msra.mxu0 %v2899_v17  ;;  %2752 = vmatprep.subr.bf16.mxu1 %v2901_v20 }
  0xc3   :  { %2498 = vmatprep.subr.bf16.mxu0 %v2900_v18 }
  0xc5   :  { %2753 = vmatpush3.bf16.msra.mxu1 %v2901_v20 }
  0xc6   :  { %2499 = vmatpush3.bf16.msra.mxu0 %v2902_v21  ;;  %2754 = vmatprep.subr.bf16.mxu1 %v2904_v24 }
  0xc7   :  { %2500 = vmatprep.subr.bf16.mxu0 %v2903_v23 }
  0xc8   :  { %1585 = vperm.xlu0 %2873, %v1507_v2  }
  0xc9   :  { %2755 = vmatpush3.bf16.msra.mxu1 %v2904_v24 }
  0xca   :  { %2501 = vmatpush3.bf16.msra.mxu0 %v2905_v26  ;;  %2756 = vmatprep.subr.bf16.mxu1 %v2906_v27 }
  0xcd   :  { %2757 = vmatpush3.bf16.msra.mxu1 %v2906_v27 }
  0xce   :  { %2774 = vmatprep.subr.bf16.mxu1 %v2915_v37 }
  0xd0   :  { %2759 = vmatmul.mubr.bf16.vlgmr.msra.gmra.mxu1 %v2908_v30 }
  0xd1   :  { %2762 = vmatprep.mubr.bf16.mxu1 %v2909_v31  ;;  %2775 = vmatpush3.bf16.msra.mxu1 %v2915_v37  ;;  %v2922_v37 = vld [vmem:[%s3667_s7] sm:$0xff]  }
  0xd2   :  { %2776 = vmatprep.subr.bf16.mxu1 %v2916_v38 }
  0xd5   :  { %2777 = vmatpush3.bf16.msra.mxu1 %v2916_v38 }
  0xd8   :  { %2763 = vmatmul.mubr.bf16.gmra.mxu1 %v2910_v32  ;;  %v2917_v32 = vld [vmem:[%s3667_s7 + $0x28] sm:$0xff]  }
  0xd9   :  { %2766 = vmatprep.mubr.bf16.mxu1 %v2911_v33  ;;  %2778 = vmatprep.subr.bf16.mxu1 %v2917_v32  ;;  %v2918_v33 = vld [vmem:[%s3667_s7 + $0x20] sm:$0xff]  }
  0xda   :  { %2779 = vmatpush3.bf16.msra.mxu1 %v2917_v32 }
  0xdb   :  { %2780 = vmatprep.subr.bf16.mxu1 %v2918_v33 }
  0xde   :  { %2781 = vmatpush3.bf16.msra.mxu1 %v2918_v33 }
  0xe0   :  { %2767 = vmatmul.mubr.bf16.gmra.mxu1 %v2912_v34  ;;  %v2919_v34 = vld [vmem:[%s3667_s7 + $0x18] sm:$0xff]  }
  0xe1   :  { %2770 = vmatprep.mubr.bf16.mxu1 %v2913_v35  ;;  %2782 = vmatprep.subr.bf16.mxu1 %v2919_v34  ;;  %v2920_v35 = vld [vmem:[%s3667_s7 + $0x10] sm:$0xff]  }
  0xe2   :  { %2783 = vmatpush3.bf16.msra.mxu1 %v2919_v34 }
  0xe3   :  { %2784 = vmatprep.subr.bf16.mxu1 %v2920_v35 }
  0xe6   :  { %2785 = vmatpush3.bf16.msra.mxu1 %v2920_v35 }
  0xe8   :  { %2771 = vmatmul.mubr.bf16.gmra.mxu1 %v2914_v36  ;;  %v2921_v36 = vld [vmem:[%s3667_s7 + $0x8] sm:$0xff]  }
  0xe9   :  { %2786 = vmatprep.subr.bf16.mxu1 %v2921_v36 }
  0xea   :  { %2787 = vmatpush3.bf16.msra.mxu1 %v2921_v36 }
  0xeb   :  { %2788 = vmatprep.subr.bf16.mxu1 %v2922_v37 }
  0xee   :  { %2789 = vmatpush3.bf16.msra.mxu1 %v2922_v37 }
 0x105   :  { %v1336_v31 = vpop.trf.xlu0 }
 0x149   :  { %v2728_v39 = vpop.f32.mrf.mxu1 }
 0x14b   :  { %v512_v40 = vpop.f32.mrf.mxu1 }
 0x14d   :  { %v2696_v41 = vpop.f32.mrf.mxu0  ;;  %v2729_v42 = vpop.f32.mrf.mxu1 }
 0x14e   :  { %v576_v49 = vpack.c.bf16 %v2729_v42, %v2728_v39  ;;  %v3446_v42 = vld [vmem:[%s3668_s6] ss:$0 sm:$0xff] }
 0x14f   :  { %v407_v43 = vpop.f32.mrf.mxu0  ;;  %v515_v44 = vpop.f32.mrf.mxu1 }
 0x150   :  { %v575_v45 = vpack.c.bf16 %v515_v44, %v512_v40 }
 0x151   :  { %v2697_v46 = vpop.f32.mrf.mxu0 }
 0x152   :  { %878 = vmatprep.mubr.bf16.mxu0 %v575_v45  ;;  %v471_v52 = vpack.c.bf16 %v2697_v46, %v2696_v41 }
 0x153   :  { %v410_v47 = vpop.f32.mrf.mxu0 }
 0x154   :  { %v470_v48 = vpack.c.bf16 %v410_v47, %v407_v43 }
 0x156   :  { %879 = vmatmul.mubr.bf16.vlgmr.msra.gmra.mxu0 %v470_v48 }
 0x157   :  { %886 = vmatprep.mubr.bf16.mxu0 %v576_v49 }
 0x159   :  { %v2732_v50 = vpop.f32.mrf.mxu1 }
 0x15b   :  { %v528_v51 = vpop.f32.mrf.mxu1 }
 0x15d   :  { %v2700_v53 = vpop.f32.mrf.mxu0  ;;  %v2733_v54 = vpop.f32.mrf.mxu1 }
 0x15e   :  { %887 = vmatmul.mubr.bf16.gmra.mxu0 %v471_v52  ;;  %v578_v63 = vpack.c.bf16 %v2733_v54, %v2732_v50 }
 0x15f   :  { %v423_v55 = vpop.f32.mrf.mxu0  ;;  %v531_v56 = vpop.f32.mrf.mxu1 }
 0x160   :  { %v577_v58 = vpack.c.bf16 %v531_v56, %v528_v51 }
 0x161   :  { %v2701_v59 = vpop.f32.mrf.mxu0 }
 0x162   :  { %894 = vmatprep.mubr.bf16.mxu0 %v577_v58  ;;  %v473_v3 = vpack.c.bf16 %v2701_v59, %v2700_v53 }
 0x163   :  { %v426_v60 = vpop.f32.mrf.mxu0 }
 0x164   :  { %v472_v61 = vpack.c.bf16 %v426_v60, %v423_v55 }
 0x166   :  { %895 = vmatmul.mubr.bf16.gmra.mxu0 %v472_v61 }
 0x167   :  { %902 = vmatprep.mubr.bf16.mxu0 %v578_v63 }
 0x169   :  { %v2736_v0 = vpop.f32.mrf.mxu1 }
 0x16b   :  { %v544_v1 = vpop.f32.mrf.mxu1 }
 0x16d   :  { %v2704_v4 = vpop.f32.mrf.mxu0  ;;  %v2737_v5 = vpop.f32.mrf.mxu1 }
 0x16e   :  { %903 = vmatmul.mubr.bf16.gmra.mxu0 %v473_v3  ;;  %v580_v62 = vpack.c.bf16 %v2737_v5, %v2736_v0 }
 0x16f   :  { %v439_v6 = vpop.f32.mrf.mxu0  ;;  %v547_v7 = vpop.f32.mrf.mxu1 }
 0x170   :  { %v579_v8 = vpack.c.bf16 %v547_v7, %v544_v1 }
 0x171   :  { %v2705_v9 = vpop.f32.mrf.mxu0 }
 0x172   :  { %910 = vmatprep.mubr.bf16.mxu0 %v579_v8  ;;  %v475_v15 = vpack.c.bf16 %v2705_v9, %v2704_v4 }
 0x173   :  { %v442_v10 = vpop.f32.mrf.mxu0 }
 0x174   :  { %v474_v57 = vpack.c.bf16 %v442_v10, %v439_v6 }
 0x176   :  { %911 = vmatmul.mubr.bf16.gmra.mxu0 %v474_v57 }
 0x177   :  { %918 = vmatprep.mubr.bf16.mxu0 %v580_v62 }
 0x179   :  { %v2740_v2 = vpop.f32.mrf.mxu1 }
 0x17b   :  { %v560_v14 = vpop.f32.mrf.mxu1 }
 0x17d   :  { %v2708_v17 = vpop.f32.mrf.mxu0  ;;  %v2741_v18 = vpop.f32.mrf.mxu1 }
 0x17e   :  { %919 = vmatmul.mubr.bf16.gmra.mxu0 %v475_v15  ;;  %v582_v29 = vpack.c.bf16 %v2741_v18, %v2740_v2 }
 0x17f   :  { %v455_v20 = vpop.f32.mrf.mxu0  ;;  %v563_v21 = vpop.f32.mrf.mxu1 }
 0x180   :  { %v581_v23 = vpack.c.bf16 %v563_v21, %v560_v14 }
 0x181   :  { %v2709_v24 = vpop.f32.mrf.mxu0 }
 0x182   :  { %926 = vmatprep.mubr.bf16.mxu0 %v581_v23  ;;  %v477_v30 = vpack.c.bf16 %v2709_v24, %v2708_v17 }
 0x183   :  { %v458_v26 = vpop.f32.mrf.mxu0 }
 0x184   :  { %v476_v27 = vpack.c.bf16 %v458_v26, %v455_v20 }
 0x186   :  { %927 = vmatmul.mubr.bf16.gmra.mxu0 %v476_v27 }
 0x187   :  { %934 = vmatprep.mubr.bf16.mxu0 %v582_v29 }
 0x18e   :  { %935 = vmatmul.mubr.bf16.gmra.mxu0 %v477_v30 }
 0x18f   :  { %2822 = vmatprep.mubr.bf16.mxu0 %v1336_v31 }
 0x190   :  { %v2760_v38 = vpop.f32.mrf.mxu1 }
 0x192   :  { %v977_v40 = vpop.f32.mrf.mxu1 }
 0x194   :  { %v2761_v45 = vpop.f32.mrf.mxu1 }
 0x196   :  { %v980_v50 = vpop.f32.mrf.mxu1 }
 0x198   :  { %v2764_v58 = vpop.f32.mrf.mxu1 }
 0x19a   :  { %v993_v4 = vpop.f32.mrf.mxu1 }
 0x19c   :  { %v2765_v57 = vpop.f32.mrf.mxu1 }
 0x19e   :  { %v996_v21 = vpop.f32.mrf.mxu1 }
 0x1a0   :  { %v2768_v31 = vpop.f32.mrf.mxu1 }
 0x216   :  { %v2502_v39 = vpop.f32.mrf.mxu0 }
 0x218   :  { %v2503_v41 = vpop.f32.mrf.mxu0 }
 0x219   :  { %v2504_v43 = vadd.f32 %v2503_v41, %v2502_v39  ;;  %v1009_v39 = vpop.f32.mrf.mxu1 }
 0x21a   :  { %v2505_v44 = vpop.f32.mrf.mxu0 }
 0x21b   :  { %v881_v46 = vadd.f32 %v2504_v43, %v3446_v42 }
 0x21c   :  { %v2506_v47 = vpop.f32.mrf.mxu0 }
 0x21d   :  { %v2507_v48 = vadd.f32 %v2506_v47, %v2505_v44  ;;  %v978_v51 = vadd.f32 %v977_v40, %v881_v46  ;;  %v2769_v47 = vpop.f32.mrf.mxu1 }
 0x21e   :  { %v2508_v49 = vpop.f32.mrf.mxu0 }
 0x21f   :  { %v884_v52 = vadd.f32 %v2507_v48, %v3446_v42  ;;  %v1040_v59 = vmax.f32 %v978_v51, 0.0 }
 0x220   :  { %v2509_v53 = vpop.f32.mrf.mxu0 }
 0x221   :  { %v2510_v54 = vadd.f32 %v2509_v53, %v2508_v49  ;;  %v981_v55 = vadd.f32 %v980_v50, %v884_v52 }
 0x222   :  { %v2511_v56 = vpop.f32.mrf.mxu0 }
 0x223   :  { %v889_v60 = vadd.f32 %v2510_v54, %v3446_v42  ;;  %v1041_v61 = vmax.f32 %v981_v55, 0.0  ;;  %v1012_v55 = vpop.f32.mrf.mxu1 }
 0x224   :  { %v2512_v63 = vpop.f32.mrf.mxu0 }
 0x225   :  { %v1056_v0 = vpack.c.bf16 %v1041_v61, %v1040_v59  ;;  %v2513_v1 = vadd.f32 %v2512_v63, %v2511_v56  ;;  %v986_v5 = vadd.f32 %v2760_v38, %v889_v60 }
 0x226   :  { %v2514_v3 = vpop.f32.mrf.mxu0 }
 0x227   :  { %v892_v6 = vadd.f32 %v2513_v1, %v3446_v42  ;;  %2790 = vmatprep.mubr.bf16.mxu1 %v1056_v0  ;;  %v1042_v62 = vmax.f32 %v986_v5, 0.0  ;;  %v2772_v0 = vpop.f32.mrf.mxu1 }
 0x228   :  { %v2515_v7 = vpop.f32.mrf.mxu0 }
 0x229   :  { %v989_v8 = vadd.f32 %v2761_v45, %v892_v6  ;;  %v2516_v9 = vadd.f32 %v2515_v7, %v2514_v3 }
 0x22a   :  { %v2517_v10 = vpop.f32.mrf.mxu0 }
 0x22b   :  { %v1043_v2 = vmax.f32 %v989_v8, 0.0  ;;  %v897_v14 = vadd.f32 %v2516_v9, %v3446_v42  ;;  %v1025_v9 = vpop.f32.mrf.mxu1 }
 0x22c   :  { %v2518_v15 = vpop.f32.mrf.mxu0 }
 0x22d   :  { %v1057_v17 = vpack.c.bf16 %v1043_v2, %v1042_v62  ;;  %v2519_v18 = vadd.f32 %v2518_v15, %v2517_v10  ;;  %v994_v23 = vadd.f32 %v993_v4, %v897_v14 }
 0x22e   :  { %v2520_v20 = vpop.f32.mrf.mxu0 }
 0x22f   :  { %2791 = vmatmul.mubr.bf16.vlgmr.msra.gmra.mxu1 %v1057_v17  ;;  %v900_v24 = vadd.f32 %v2519_v18, %v3446_v42  ;;  %v1044_v32 = vmax.f32 %v994_v23, 0.0  ;;  %v2773_v17 = vpop.f32.mrf.mxu1 }
 0x230   :  { %v2521_v26 = vpop.f32.mrf.mxu0 }
 0x231   :  { %v2522_v27 = vadd.f32 %v2521_v26, %v2520_v20  ;;  %v997_v29 = vadd.f32 %v996_v21, %v900_v24 }
 0x232   :  { %v2523_v30 = vpop.f32.mrf.mxu0 }
 0x233   :  { %v905_v33 = vadd.f32 %v2522_v27, %v3446_v42  ;;  %v1045_v34 = vmax.f32 %v997_v29, 0.0  ;;  %v1028_v29 = vpop.f32.mrf.mxu1 }
 0x234   :  { %v2524_v35 = vpop.f32.mrf.mxu0 }
 0x235   :  { %v1058_v36 = vpack.c.bf16 %v1045_v34, %v1044_v32  ;;  %v2525_v37 = vadd.f32 %v2524_v35, %v2523_v30  ;;  %v1002_v40 = vadd.f32 %v2764_v58, %v905_v33 }
 0x236   :  { %v2526_v38 = vpop.f32.mrf.mxu0 }
 0x237   :  { %v908_v41 = vadd.f32 %v2525_v37, %v3446_v42  ;;  %2794 = vmatprep.mubr.bf16.mxu1 %v1058_v36  ;;  %v1046_v48 = vmax.f32 %v1002_v40, 0.0 }
 0x238   :  { %v2527_v43 = vpop.f32.mrf.mxu0 }
 0x239   :  { %v1005_v44 = vadd.f32 %v2765_v57, %v908_v41  ;;  %v2528_v45 = vadd.f32 %v2527_v43, %v2526_v38 }
 0x23a   :  { %v2529_v46 = vpop.f32.mrf.mxu0 }
 0x23b   :  { %v1047_v49 = vmax.f32 %v1005_v44, 0.0  ;;  %v913_v50 = vadd.f32 %v2528_v45, %v3446_v42 }
 0x23c   :  { %v2530_v51 = vpop.f32.mrf.mxu0 }
 0x23d   :  { %v2531_v52 = vadd.f32 %v2530_v51, %v2529_v46  ;;  %v1059_v53 = vpack.c.bf16 %v1047_v49, %v1046_v48  ;;  %v1010_v56 = vadd.f32 %v1009_v39, %v913_v50  ;;  %v2923_v49 = vld [vmem:[%s3669_s9 + $0x78] sm:$0xff]   ;;  %v2925_v51 = vld [vmem:[%s3669_s9 + $0x70] sm:$0xff]  }
 0x23e   :  { %v2532_v54 = vpop.f32.mrf.mxu0  ;;  %v2924_v50 = vld [vmem:[%s3669_s9 + $0x38] sm:$0xff]   ;;  %2598 = vmatprep.subr.bf16.mxu1 %v2923_v49 }
 0x23f   :  { %2795 = vmatmul.mubr.bf16.gmra.mxu1 %v1059_v53  ;;  %v916_v58 = vadd.f32 %v2531_v52, %v3446_v42  ;;  %v1048_v1 = vmax.f32 %v1010_v56, 0.0  ;;  %v2927_v52 = vld [vmem:[%s3669_s9 + $0x68] sm:$0xff]   ;;  %v2931_v56 = vld [vmem:[%s3669_s9 + $0x58] sm:$0xff]  }
 0x240   :  { %v2533_v59 = vpop.f32.mrf.mxu0  ;;  %2599 = vmatpush3.bf16.msra.mxu1 %v2924_v50  ;;  %v2928_v53 = vld [vmem:[%s3669_s9 + $0x28] sm:$0xff]  }
 0x241   :  { %v2534_v60 = vadd.f32 %v2533_v59, %v2532_v54  ;;  %v1013_v61 = vadd.f32 %v1012_v55, %v916_v58  ;;  %2600 = vmatprep.subr.bf16.mxu1 %v2925_v51  ;;  %v2929_v54 = vld [vmem:[%s3669_s9 + $0x60] sm:$0xff]   ;;  %v2932_v59 = vld [vmem:[%s3669_s9 + $0x18] sm:$0xff]   ;;  %v2933_v51 = vld [vmem:[%s3669_s9 + $0x50] sm:$0xff]  }
 0x242   :  { %v2535_v63 = vpop.f32.mrf.mxu0  ;;  %v2930_v55 = vld [vmem:[%s3669_s9 + $0x20] sm:$0xff]  }
 0x243   :  { %v921_v3 = vadd.f32 %v2534_v60, %v3446_v42  ;;  %v1049_v4 = vmax.f32 %v1013_v61, 0.0  ;;  %v2261_v60 = vld [vmem:[%s3670_s8] ss:$0 sm:$0xff] }
 0x244   :  { %v2536_v5 = vpop.f32.mrf.mxu0 }
 0x245   :  { %v1060_v6 = vpack.c.bf16 %v1049_v4, %v1048_v1  ;;  %v2537_v7 = vadd.f32 %v2536_v5, %v2535_v63  ;;  %v1018_v10 = vadd.f32 %v2768_v31, %v921_v3 }
 0x246   :  { %v2538_v8 = vpop.f32.mrf.mxu0 }
 0x247   :  { %v924_v57 = vadd.f32 %v2537_v7, %v3446_v42  ;;  %2798 = vmatprep.mubr.bf16.mxu1 %v1060_v6  ;;  %v1050_v18 = vmax.f32 %v1018_v10, 0.0 }
 0x248   :  { %v2539_v62 = vpop.f32.mrf.mxu0 }
 0x249   :  { %v1021_v2 = vadd.f32 %v2769_v47, %v924_v57  ;;  %v2540_v14 = vadd.f32 %v2539_v62, %v2538_v8 }
 0x24a   :  { %v2541_v15 = vpop.f32.mrf.mxu0 }
 0x24b   :  { %v1051_v20 = vmax.f32 %v1021_v2, 0.0  ;;  %v929_v21 = vadd.f32 %v2540_v14, %v3446_v42 }
 0x24c   :  { %v2542_v23 = vpop.f32.mrf.mxu0 }
 0x24d   :  { %v2543_v24 = vadd.f32 %v2542_v23, %v2541_v15  ;;  %v1061_v26 = vpack.c.bf16 %v1051_v20, %v1050_v18  ;;  %v1026_v30 = vadd.f32 %v1025_v9, %v929_v21 }
 0x24e   :  { %v2544_v27 = vpop.f32.mrf.mxu0 }
 0x24f   :  { %2799 = vmatmul.mubr.bf16.gmra.mxu1 %v1061_v26  ;;  %v932_v31 = vadd.f32 %v2543_v24, %v3446_v42  ;;  %v1052_v36 = vmax.f32 %v1026_v30, 0.0 }
 0x250   :  { %v2545_v32 = vpop.f32.mrf.mxu0 }
 0x251   :  { %v2546_v33 = vadd.f32 %v2545_v32, %v2544_v27  ;;  %v1029_v34 = vadd.f32 %v1028_v29, %v932_v31 }
 0x252   :  { %v2547_v35 = vpop.f32.mrf.mxu0 }
 0x253   :  { %v937_v37 = vadd.f32 %v2546_v33, %v3446_v42  ;;  %v1053_v38 = vmax.f32 %v1029_v34, 0.0 }
 0x254   :  { %v2548_v39 = vpop.f32.mrf.mxu0 }
 0x255   :  { %v1062_v40 = vpack.c.bf16 %v1053_v38, %v1052_v36  ;;  %v2549_v41 = vadd.f32 %v2548_v39, %v2547_v35  ;;  %v1034_v43 = vadd.f32 %v2772_v0, %v937_v37 }
 0x257   :  { %v940_v44 = vadd.f32 %v2549_v41, %v3446_v42  ;;  %2802 = vmatprep.mubr.bf16.mxu1 %v1062_v40  ;;  %v1054_v46 = vmax.f32 %v1034_v43, 0.0  ;;  %v2926_v42 = vld [vmem:[%s3669_s9 + $0x30] sm:$0xff]  }
 0x258   :  { %2601 = vmatpush3.bf16.msra.mxu1 %v2926_v42  ;;  %v2934_v42 = vld [vmem:[%s3669_s9 + $0x10] sm:$0xff]  }
 0x259   :  { %v1037_v45 = vadd.f32 %v2773_v17, %v940_v44  ;;  %2602 = vmatprep.subr.bf16.mxu1 %v2927_v52  ;;  %v1337_v44 = vpop.trf.xlu0  ;;  %v2935_v52 = vld [vmem:[%s3669_s9 + $0x48] sm:$0xff]  }
 0x25b   :  { %v1055_v47 = vmax.f32 %v1037_v45, 0.0 }
 0x25c   :  { %2603 = vmatpush3.bf16.msra.mxu1 %v2928_v53  ;;  %v2936_v53 = vld [vmem:[%s3669_s9 + $0x8] sm:$0xff]  }
 0x25d   :  { %v1063_v48 = vpack.c.bf16 %v1055_v47, %v1054_v46  ;;  %2604 = vmatprep.subr.bf16.mxu1 %v2929_v54  ;;  %v1338_v45 = vpop.trf.xlu0  ;;  %v2937_v54 = vld [vmem:[%s3669_s9 + $0x40] sm:$0xff]  }
 0x25f   :  { %2803 = vmatmul.mubr.bf16.gmra.mxu1 %v1063_v48 }
 0x260   :  { %2605 = vmatpush3.bf16.msra.mxu1 %v2930_v55  ;;  %v2938_v55 = vld [vmem:[%s3669_s9] sm:$0xff]  }
 0x261   :  { %2606 = vmatprep.subr.bf16.mxu1 %v2931_v56  ;;  %v1339_v46 = vpop.trf.xlu0  ;;  %v2939_v56 = vld [vmem:[%s3672_s11 + $0x38] sm:$0xff]  }
 0x264   :  { %2607 = vmatpush3.bf16.msra.mxu1 %v2932_v59  ;;  %v2941_v59 = vld [vmem:[%s3672_s11 + $0x28] sm:$0xff]  }
 0x265   :  { %v1340_v47 = vpop.trf.xlu0  ;;  %2608 = vmatprep.subr.bf16.mxu1 %v2933_v51 }
 0x268   :  { %2609 = vmatpush3.bf16.msra.mxu1 %v2934_v42 }
 0x269   :  { %v1341_v48 = vpop.trf.xlu0  ;;  %2610 = vmatprep.subr.bf16.mxu1 %v2935_v52 }
 0x26c   :  { %2611 = vmatpush3.bf16.msra.mxu1 %v2936_v53 }
 0x26d   :  { %v1342_v49 = vpop.trf.xlu0  ;;  %2612 = vmatprep.subr.bf16.mxu1 %v2937_v54 }
 0x270   :  { %2613 = vmatpush3.bf16.msra.mxu1 %v2938_v55  ;;  %v2944_v55 = vld [vmem:[%s3672_s11 + $0x10] sm:$0xff]  }
 0x271   :  { %v1343_v50 = vpop.trf.xlu0 }
 0x275   :  { %v1586_v42 = vpop.permute.xlu0 %1585 }
 0x2ef   :  { %v2792_v58 = vpop.f32.mrf.mxu1 }
 0x2f0   :  { %v1178_v0 = vadd.f32 %v2792_v58, %v2261_v60  ;;  %v2940_v58 = vld [vmem:[%s3672_s11 + $0x30] sm:$0xff]  }
 0x2f1   :  { %v1169_v61 = vpop.f32.mrf.mxu1 }
 0x2f2   :  { %v1170_v4 = vadd.f32 %v2261_v60, %v1169_v61 }
 0x2f3   :  { %v2793_v63 = vpop.f32.mrf.mxu1 }
 0x2f4   :  { %v1181_v1 = vadd.f32 %v2793_v63, %v2261_v60 }
 0x2f5   :  { %v1172_v3 = vpop.f32.mrf.mxu1 }
 0x2f6   :  { %v1233_v5 = vpack.c.bf16 %v1181_v1, %v1178_v0  ;;  %v1173_v6 = vadd.f32 %v2261_v60, %v1172_v3 }
 0x2f8   :  { %2440 = vst [vmem:[%s3671_s13 + $0x8] sm:$0xff] %v1233_v5   ;;  %v1232_v7 = vpack.c.bf16 %v1173_v6, %v1170_v4 }
 0x2fa   :  { %2364 = vst [vmem:[%s3671_s13] sm:$0xff] %v1232_v7  }
 0x2ff   :  { %v2796_v8 = vpop.f32.mrf.mxu1 }
 0x300   :  { %v1194_v57 = vadd.f32 %v2796_v8, %v2261_v60 }
 0x301   :  { %v1185_v9 = vpop.f32.mrf.mxu1 }
 0x302   :  { %v1186_v14 = vadd.f32 %v2261_v60, %v1185_v9 }
 0x303   :  { %v2797_v10 = vpop.f32.mrf.mxu1 }
 0x304   :  { %v1197_v62 = vadd.f32 %v2797_v10, %v2261_v60 }
 0x305   :  { %v1188_v2 = vpop.f32.mrf.mxu1 }
 0x306   :  { %v1235_v15 = vpack.c.bf16 %v1197_v62, %v1194_v57  ;;  %v1189_v17 = vadd.f32 %v2261_v60, %v1188_v2 }
 0x308   :  { %2442 = vst [vmem:[%s3671_s13 + $0x18] sm:$0xff] %v1235_v15   ;;  %v1234_v18 = vpack.c.bf16 %v1189_v17, %v1186_v14 }
 0x30a   :  { %2441 = vst [vmem:[%s3671_s13 + $0x10] sm:$0xff] %v1234_v18  }
 0x30f   :  { %v2800_v20 = vpop.f32.mrf.mxu1 }
 0x310   :  { %v1210_v24 = vadd.f32 %v2800_v20, %v2261_v60 }
 0x311   :  { %v1201_v21 = vpop.f32.mrf.mxu1 }
 0x312   :  { %v1202_v29 = vadd.f32 %v2261_v60, %v1201_v21 }
 0x313   :  { %v2801_v23 = vpop.f32.mrf.mxu1 }
 0x314   :  { %v1213_v26 = vadd.f32 %v2801_v23, %v2261_v60 }
 0x315   :  { %v1204_v27 = vpop.f32.mrf.mxu1 }
 0x316   :  { %v1237_v30 = vpack.c.bf16 %v1213_v26, %v1210_v24  ;;  %v1205_v31 = vadd.f32 %v2261_v60, %v1204_v27 }
 0x318   :  { %2444 = vst [vmem:[%s3671_s13 + $0x28] sm:$0xff] %v1237_v30   ;;  %v1236_v32 = vpack.c.bf16 %v1205_v31, %v1202_v29 }
 0x31a   :  { %2443 = vst [vmem:[%s3671_s13 + $0x20] sm:$0xff] %v1236_v32  }
 0x31f   :  { %v2804_v33 = vpop.f32.mrf.mxu1 }
 0x320   :  { %v1226_v36 = vadd.f32 %v2804_v33, %v2261_v60 }
 0x321   :  { %v1217_v34 = vpop.f32.mrf.mxu1 }
 0x322   :  { %v1218_v39 = vadd.f32 %v2261_v60, %v1217_v34 }
 0x323   :  { %v2805_v35 = vpop.f32.mrf.mxu1 }
 0x324   :  { %v1229_v37 = vadd.f32 %v2805_v35, %v2261_v60 }
 0x325   :  { %v1220_v38 = vpop.f32.mrf.mxu1 }
 0x326   :  { %v1239_v40 = vpack.c.bf16 %v1229_v37, %v1226_v36  ;;  %v1221_v41 = vadd.f32 %v2261_v60, %v1220_v38  ;;  %v1511_v60 = vpop.permute.xlu1 %1510 }
 0x328   :  { %2446 = vst [vmem:[%s3671_s13 + $0x38] sm:$0xff] %v1239_v40   ;;  %v1238_v43 = vpack.c.bf16 %v1221_v41, %v1218_v39  ;;  %2806 = vmatprep.subr.bf16.mxu0 %v1239_v40 }
 0x329   :  { %2807 = vmatpush3.bf16.msra.mxu0 %v1239_v40 }
 0x32a   :  { %2445 = vst [vmem:[%s3671_s13 + $0x30] sm:$0xff] %v1238_v43   ;;  %2808 = vmatprep.subr.bf16.mxu0 %v1238_v43  ;;  %v1516_v61 = vpop.permute.xlu1 %1515 }
 0x32d   :  { %2809 = vmatpush3.bf16.msra.mxu0 %v1238_v43 }
 0x32e   :  { %2810 = vmatprep.subr.bf16.mxu0 %v1237_v30  ;;  %v1521_v63 = vpop.permute.xlu1 %1520 }
 0x331   :  { %2811 = vmatpush3.bf16.msra.mxu0 %v1237_v30 }
 0x332   :  { %2812 = vmatprep.subr.bf16.mxu0 %v1236_v32  ;;  %v1526_v0 = vpop.permute.xlu1 %1525 }
 0x335   :  { %2813 = vmatpush3.bf16.msra.mxu0 %v1236_v32 }
 0x336   :  { %2814 = vmatprep.subr.bf16.mxu0 %v1235_v15  ;;  %v1531_v1 = vpop.permute.xlu1 %1530 }
 0x339   :  { %2815 = vmatpush3.bf16.msra.mxu0 %v1235_v15 }
 0x33a   :  { %2816 = vmatprep.subr.bf16.mxu0 %v1234_v18  ;;  %v1536_v3 = vpop.permute.xlu1 %1535 }
 0x33d   :  { %2817 = vmatpush3.bf16.msra.mxu0 %v1234_v18 }
 0x33e   :  { %2818 = vmatprep.subr.bf16.mxu0 %v1233_v5  ;;  %v1541_v6 = vpop.permute.xlu1 %1540 }
 0x341   :  { %2819 = vmatpush3.bf16.msra.mxu0 %v1233_v5 }
 0x342   :  { %2820 = vmatprep.subr.bf16.mxu0 %v1232_v7  ;;  %v1546_v15 = vpop.permute.xlu1 %1545 }
 0x345   :  { %2821 = vmatpush3.bf16.msra.mxu0 %v1232_v7 }
 0x346   :  { %2838 = vmatprep.subr.bf16.mxu0 %v2939_v56  ;;  %v1551_v24 = vpop.permute.xlu1 %1550 }
 0x348   :  { %2823 = vmatmul.mubr.bf16.vlgmr.msra.gmra.mxu0 %v1337_v44 }
 0x349   :  { %2826 = vmatprep.mubr.bf16.mxu0 %v1338_v45  ;;  %2839 = vmatpush3.bf16.msra.mxu0 %v2939_v56 }
 0x34a   :  { %2840 = vmatprep.subr.bf16.mxu0 %v2940_v58  ;;  %v1556_v31 = vpop.permute.xlu1 %1555 }
 0x34d   :  { %2841 = vmatpush3.bf16.msra.mxu0 %v2940_v58 }
 0x34e   :  { %2842 = vmatprep.subr.bf16.mxu0 %v2941_v59  ;;  %v1561_v36 = vpop.permute.xlu1 %1560 }
 0x350   :  { %2827 = vmatmul.mubr.bf16.gmra.mxu0 %v1339_v46 }
 0x351   :  { %2830 = vmatprep.mubr.bf16.mxu0 %v1340_v47  ;;  %2843 = vmatpush3.bf16.msra.mxu0 %v2941_v59 }
 0x352   :  { %v1566_v40 = vpop.permute.xlu1 %1565 }
 0x356   :  { %v1571_v44 = vpop.permute.xlu1 %1570 }
 0x358   :  { %2831 = vmatmul.mubr.bf16.gmra.mxu0 %v1341_v48 }
 0x359   :  { %2834 = vmatprep.mubr.bf16.mxu0 %v1342_v49 }
 0x360   :  { %2835 = vmatmul.mubr.bf16.gmra.mxu0 %v1343_v50 }
 0x408   :  { %v2824_v4 = vpop.f32.mrf.mxu0 }
 0x409   :  { %v1590_v2 = vmul.f32 %v2824_v4, %v1521_v63 }
 0x40a   :  { %v1378_v5 = vpop.f32.mrf.mxu0 }
 0x40b   :  { %v1588_v9 = vmul.f32 %v1511_v60, %v1378_v5  ;;  %v3574_v60 = vld [vmem:[%s3673_s10] ss:$0 sm:$0xff] }
 0x40c   :  { %v2825_v7 = vpop.f32.mrf.mxu0 }
 0x40d   :  { %v1591_v10 = vmul.f32 %v2825_v7, %v1526_v0 }
 0x40e   :  { %v1381_v8 = vpop.f32.mrf.mxu0 }
 0x40f   :  { %v1589_v57 = vmul.f32 %v1516_v61, %v1381_v8  ;;  %v1605_v18 = vpack.c.bf16 %v1591_v10, %v1590_v2 }
 0x410   :  { %v2828_v62 = vpop.f32.mrf.mxu0 }
 0x411   :  { %v1604_v14 = vpack.c.bf16 %v1589_v57, %v1588_v9  ;;  %v1594_v34 = vmul.f32 %v2828_v62, %v1541_v6 }
 0x412   :  { %v1394_v17 = vpop.f32.mrf.mxu0 }
 0x413   :  { %1779 = vmatprep.mubr.bf16.mxu1 %v1604_v14  ;;  %v1592_v27 = vmul.f32 %v1531_v1, %v1394_v17 }
 0x414   :  { %v2829_v20 = vpop.f32.mrf.mxu0  ;;  %1780 = vmatmul.mubr.bf16.vlgmr.msra.gmra.mxu1 %v3161_v28 }
 0x415   :  { %1787 = vmatprep.mubr.bf16.mxu1 %v1605_v18  ;;  %v1595_v32 = vmul.f32 %v2829_v20, %v1546_v15 }
 0x416   :  { %v1397_v21 = vpop.f32.mrf.mxu0 }
 0x417   :  { %v1593_v23 = vmul.f32 %v1536_v3, %v1397_v21  ;;  %v1607_v35 = vpack.c.bf16 %v1595_v32, %v1594_v34 }
 0x418   :  { %v2832_v26 = vpop.f32.mrf.mxu0 }
 0x419   :  { %v1606_v29 = vpack.c.bf16 %v1593_v23, %v1592_v27  ;;  %v1598_v46 = vmul.f32 %v2832_v26, %v1561_v36 }
 0x41a   :  { %v1410_v30 = vpop.f32.mrf.mxu0 }
 0x41b   :  { %v1596_v39 = vmul.f32 %v1551_v24, %v1410_v30 }
 0x41c   :  { %1788 = vmatmul.mubr.bf16.gmra.mxu1 %v3146_v25  ;;  %v2833_v33 = vpop.f32.mrf.mxu0 }
 0x41d   :  { %1795 = vmatprep.mubr.bf16.mxu1 %v1606_v29  ;;  %v1599_v25 = vmul.f32 %v2833_v33, %v1566_v40 }
 0x41e   :  { %v1413_v37 = vpop.f32.mrf.mxu0 }
 0x41f   :  { %v1597_v28 = vmul.f32 %v1556_v31, %v1413_v37  ;;  %v1609_v47 = vpack.c.bf16 %v1599_v25, %v1598_v46 }
 0x420   :  { %v2836_v38 = vpop.f32.mrf.mxu0 }
 0x421   :  { %v1608_v41 = vpack.c.bf16 %v1597_v28, %v1596_v39 }
 0x422   :  { %v1426_v43 = vpop.f32.mrf.mxu0 }
 0x423   :  { %v1600_v50 = vmul.f32 %v1571_v44, %v1426_v43 }
 0x424   :  { %1796 = vmatmul.mubr.bf16.gmra.mxu1 %v3131_v22  ;;  %v2837_v45 = vpop.f32.mrf.mxu0  ;;  %v1576_v22 = vpop.permute.xlu1 %1575 }
 0x425   :  { %1803 = vmatprep.mubr.bf16.mxu1 %v1607_v35  ;;  %v1603_v52 = vmul.f32 %v2837_v45, %v1586_v42 }
 0x426   :  { %v1429_v48 = vpop.f32.mrf.mxu0 }
 0x427   :  { %v1601_v49 = vmul.f32 %v1576_v22, %v1429_v48 }
 0x429   :  { %v1610_v51 = vpack.c.bf16 %v1601_v49, %v1600_v50 }
 0x42c   :  { %1804 = vmatmul.mubr.bf16.gmra.mxu1 %v3116_v19  ;;  %v1581_v19 = vpop.permute.xlu1 %1580 }
 0x42d   :  { %1811 = vmatprep.mubr.bf16.mxu1 %v1608_v41  ;;  %v1602_v53 = vmul.f32 %v2836_v38, %v1581_v19 }
 0x42f   :  { %v1611_v54 = vpack.c.bf16 %v1603_v52, %v1602_v53 }
 0x434   :  { %1812 = vmatmul.mubr.bf16.gmra.mxu1 %v3101_v16  ;;  %v2942_v16 = vld [vmem:[%s3672_s11 + $0x20] sm:$0xff]  }
 0x435   :  { %1819 = vmatprep.mubr.bf16.mxu1 %v1609_v47  ;;  %2844 = vmatprep.subr.bf16.mxu0 %v2942_v16 }
 0x436   :  { %2845 = vmatpush3.bf16.msra.mxu0 %v2942_v16 }
 0x43c   :  { %1820 = vmatmul.mubr.bf16.gmra.mxu1 %v3084_v13  ;;  %v2943_v13 = vld [vmem:[%s3672_s11 + $0x18] sm:$0xff]  }
 0x43d   :  { %1827 = vmatprep.mubr.bf16.mxu1 %v1610_v51  ;;  %2846 = vmatprep.subr.bf16.mxu0 %v2943_v13 }
 0x43e   :  { %2847 = vmatpush3.bf16.msra.mxu0 %v2943_v13 }
 0x43f   :  { %2848 = vmatprep.subr.bf16.mxu0 %v2944_v55 }
 0x442   :  { %2849 = vmatpush3.bf16.msra.mxu0 %v2944_v55 }
 0x444   :  { %1828 = vmatmul.mubr.bf16.gmra.mxu1 %v3079_v12  ;;  %v2946_v12 = vld [vmem:[%s3672_s11] sm:$0xff]  }
 0x445   :  { %1835 = vmatprep.mubr.bf16.mxu1 %v1611_v54 }
 0x44c   :  { %1836 = vmatmul.mubr.bf16.gmra.mxu1 %v3074_v11  ;;  %v2945_v11 = vld [vmem:[%s3672_s11 + $0x8] sm:$0xff]  }
 0x44d   :  { %2850 = vmatprep.subr.bf16.mxu0 %v2945_v11 }
 0x44e   :  { %2851 = vmatpush3.bf16.msra.mxu0 %v2945_v11 }
 0x44f   :  { %2852 = vmatprep.subr.bf16.mxu0 %v2946_v12 }
 0x452   :  { %2853 = vmatpush3.bf16.msra.mxu0 %v2946_v12 }
 0x4d4   :  { %v2614_v56 = vpop.f32.mrf.mxu1 }
 0x4d6   :  { %v2615_v58 = vpop.f32.mrf.mxu1 }
 0x4d7   :  { %v2616_v59 = vadd.f32 %v2615_v58, %v2614_v56 }
 0x4d8   :  { %v2617_v61 = vpop.f32.mrf.mxu1 }
 0x4d9   :  { %v1782_v0 = vadd.f32 %v2616_v59, %v3574_v60 }
 0x4da   :  { %v2618_v63 = vpop.f32.mrf.mxu1 }
 0x4db   :  { %v2619_v1 = vadd.f32 %v2618_v63, %v2617_v61  ;;  %v1844_v6 = vmax.f32 %v1782_v0, 0.0 }
 0x4dc   :  { %v2620_v3 = vpop.f32.mrf.mxu1 }
 0x4dd   :  { %v1785_v4 = vadd.f32 %v2619_v1, %v3574_v60 }
 0x4de   :  { %v2621_v5 = vpop.f32.mrf.mxu1 }
 0x4df   :  { %v1845_v7 = vmax.f32 %v1785_v4, 0.0  ;;  %v2622_v8 = vadd.f32 %v2621_v5, %v2620_v3 }
 0x4e0   :  { %v2623_v9 = vpop.f32.mrf.mxu1 }
 0x4e1   :  { %v1860_v10 = vpack.c.bf16 %v1845_v7, %v1844_v6  ;;  %v1790_v62 = vadd.f32 %v2622_v8, %v3574_v60 }
 0x4e2   :  { %v2624_v57 = vpop.f32.mrf.mxu1 }
 0x4e3   :  { %v2625_v2 = vadd.f32 %v2624_v57, %v2623_v9  ;;  %2854 = vmatprep.mubr.bf16.mxu0 %v1860_v10  ;;  %v1846_v18 = vmax.f32 %v1790_v62, 0.0 }
 0x4e4   :  { %v2626_v14 = vpop.f32.mrf.mxu1 }
 0x4e5   :  { %v1793_v15 = vadd.f32 %v2625_v2, %v3574_v60 }
 0x4e6   :  { %v2627_v17 = vpop.f32.mrf.mxu1 }
 0x4e7   :  { %v1847_v20 = vmax.f32 %v1793_v15, 0.0  ;;  %v2628_v21 = vadd.f32 %v2627_v17, %v2626_v14 }
 0x4e8   :  { %v2629_v23 = vpop.f32.mrf.mxu1 }
 0x4e9   :  { %v1861_v24 = vpack.c.bf16 %v1847_v20, %v1846_v18  ;;  %v1798_v27 = vadd.f32 %v2628_v21, %v3574_v60 }
 0x4ea   :  { %v2630_v26 = vpop.f32.mrf.mxu1 }
 0x4eb   :  { %v2631_v29 = vadd.f32 %v2630_v26, %v2629_v23  ;;  %2855 = vmatmul.mubr.bf16.vlgmr.msra.gmra.mxu0 %v1861_v24  ;;  %v1848_v33 = vmax.f32 %v1798_v27, 0.0  ;;  %v3595_v26 = vld [vmem:[%s3674_s12] ss:$0 sm:$0xff] }
 0x4ec   :  { %v2632_v30 = vpop.f32.mrf.mxu1 }
 0x4ed   :  { %v1801_v31 = vadd.f32 %v2631_v29, %v3574_v60 }
 0x4ee   :  { %v2633_v32 = vpop.f32.mrf.mxu1 }
 0x4ef   :  { %v1849_v34 = vmax.f32 %v1801_v31, 0.0  ;;  %v2634_v35 = vadd.f32 %v2633_v32, %v2632_v30  ;;  %v2955_v30 = vld [vmem:[%s3663_s0 + $0x8] sm:$0xff]  }
 0x4f0   :  { %v2635_v36 = vpop.f32.mrf.mxu1  ;;  %v2038_v31 = vunpack.c.l.bf16 %v2955_v30  ;;  %v2039_v32 = vunpack.c.h.bf16 %v2955_v30 }
 0x4f1   :  { %v1862_v37 = vpack.c.bf16 %v1849_v34, %v1848_v33  ;;  %v1806_v38 = vadd.f32 %v2634_v35, %v3574_v60  ;;  %v2956_v34 = vld [vmem:[%s3663_s0] sm:$0xff]  }
 0x4f2   :  { %v2636_v28 = vpop.f32.mrf.mxu1  ;;  %v2036_v35 = vunpack.c.l.bf16 %v2956_v34 }
 0x4f3   :  { %v2637_v39 = vadd.f32 %v2636_v28, %v2635_v36  ;;  %2858 = vmatprep.mubr.bf16.mxu0 %v1862_v37  ;;  %v1850_v25 = vmax.f32 %v1806_v38, 0.0  ;;  %v2037_v37 = vunpack.c.h.bf16 %v2956_v34 }
 0x4f4   :  { %v2638_v40 = vpop.f32.mrf.mxu1 }
 0x4f5   :  { %v1809_v41 = vadd.f32 %v2637_v39, %v3574_v60 }
 0x4f6   :  { %v2639_v43 = vpop.f32.mrf.mxu1 }
 0x4f7   :  { %v1851_v44 = vmax.f32 %v1809_v41, 0.0  ;;  %v2640_v45 = vadd.f32 %v2639_v43, %v2638_v40 }
 0x4f8   :  { %v2641_v46 = vpop.f32.mrf.mxu1 }
 0x4f9   :  { %v1863_v47 = vpack.c.bf16 %v1851_v44, %v1850_v25  ;;  %v1814_v22 = vadd.f32 %v2640_v45, %v3574_v60 }
 0x4fa   :  { %v2642_v48 = vpop.f32.mrf.mxu1 }
 0x4fb   :  { %v2643_v49 = vadd.f32 %v2642_v48, %v2641_v46  ;;  %2859 = vmatmul.mubr.bf16.gmra.mxu0 %v1863_v47  ;;  %v1852_v52 = vmax.f32 %v1814_v22, 0.0  ;;  %v2957_v48 = vld [vmem:[%s3663_s0 + $0x18] sm:$0xff]  }
 0x4fc   :  { %v2644_v50 = vpop.f32.mrf.mxu1  ;;  %v2042_v22 = vunpack.c.l.bf16 %v2957_v48 }
 0x4fd   :  { %v1817_v51 = vadd.f32 %v2643_v49, %v3574_v60  ;;  %v2043_v49 = vunpack.c.h.bf16 %v2957_v48 }
 0x4fe   :  { %v2645_v42 = vpop.f32.mrf.mxu1 }
 0x4ff   :  { %v1853_v19 = vmax.f32 %v1817_v51, 0.0  ;;  %v2646_v53 = vadd.f32 %v2645_v42, %v2644_v50  ;;  %v2958_v42 = vld [vmem:[%s3663_s0 + $0x10] sm:$0xff]  }
 0x500   :  { %v2647_v54 = vpop.f32.mrf.mxu1 }
 0x501   :  { %v1864_v16 = vpack.c.bf16 %v1853_v19, %v1852_v52  ;;  %v1822_v55 = vadd.f32 %v2646_v53, %v3574_v60  ;;  %v2040_v52 = vunpack.c.l.bf16 %v2958_v42  ;;  %v2041_v53 = vunpack.c.h.bf16 %v2958_v42 }
 0x502   :  { %v2648_v13 = vpop.f32.mrf.mxu1 }
 0x503   :  { %v2649_v11 = vadd.f32 %v2648_v13, %v2647_v54  ;;  %2862 = vmatprep.mubr.bf16.mxu0 %v1864_v16  ;;  %v1854_v59 = vmax.f32 %v1822_v55, 0.0 }
 0x504   :  { %v2650_v12 = vpop.f32.mrf.mxu1 }
 0x505   :  { %v1825_v56 = vadd.f32 %v2649_v11, %v3574_v60 }
 0x506   :  { %v2651_v58 = vpop.f32.mrf.mxu1 }
 0x507   :  { %v1855_v61 = vmax.f32 %v1825_v56, 0.0  ;;  %v2652_v63 = vadd.f32 %v2651_v58, %v2650_v12 }
 0x508   :  { %v2653_v0 = vpop.f32.mrf.mxu1 }
 0x509   :  { %v1865_v1 = vpack.c.bf16 %v1855_v61, %v1854_v59  ;;  %v1830_v4 = vadd.f32 %v2652_v63, %v3574_v60 }
 0x50a   :  { %v2654_v3 = vpop.f32.mrf.mxu1 }
 0x50b   :  { %v2655_v5 = vadd.f32 %v2654_v3, %v2653_v0  ;;  %2863 = vmatmul.mubr.bf16.gmra.mxu0 %v1865_v1  ;;  %v1856_v9 = vmax.f32 %v1830_v4, 0.0  ;;  %v2959_v0 = vld [vmem:[%s3663_s0 + $0x28] sm:$0xff]  }
 0x50c   :  { %v2656_v6 = vpop.f32.mrf.mxu1  ;;  %v2046_v1 = vunpack.c.l.bf16 %v2959_v0  ;;  %v2047_v3 = vunpack.c.h.bf16 %v2959_v0 }
 0x50d   :  { %v1833_v7 = vadd.f32 %v2655_v5, %v3574_v60 }
 0x50e   :  { %v2657_v8 = vpop.f32.mrf.mxu1 }
 0x50f   :  { %v1857_v10 = vmax.f32 %v1833_v7, 0.0  ;;  %v2658_v57 = vadd.f32 %v2657_v8, %v2656_v6  ;;  %v2960_v6 = vld [vmem:[%s3663_s0 + $0x20] sm:$0xff]  }
 0x510   :  { %v2659_v62 = vpop.f32.mrf.mxu1  ;;  %v2044_v7 = vunpack.c.l.bf16 %v2960_v6 }
 0x511   :  { %v1866_v2 = vpack.c.bf16 %v1857_v10, %v1856_v9  ;;  %v1838_v15 = vadd.f32 %v2658_v57, %v3574_v60  ;;  %v2045_v9 = vunpack.c.h.bf16 %v2960_v6 }
 0x512   :  { %v2660_v14 = vpop.f32.mrf.mxu1 }
 0x513   :  { %v2661_v17 = vadd.f32 %v2660_v14, %v2659_v62  ;;  %2866 = vmatprep.mubr.bf16.mxu0 %v1866_v2  ;;  %v1858_v20 = vmax.f32 %v1838_v15, 0.0 }
 0x515   :  { %v1841_v18 = vadd.f32 %v2661_v17, %v3574_v60 }
 0x517   :  { %v1859_v21 = vmax.f32 %v1841_v18, 0.0 }
 0x519   :  { %v1867_v23 = vpack.c.bf16 %v1859_v21, %v1858_v20 }
 0x51b   :  { %2867 = vmatmul.mubr.bf16.gmra.mxu0 %v1867_v23 }
 0x5ab   :  { %v2856_v24 = vpop.f32.mrf.mxu0 }
 0x5ac   :  { %v1982_v29 = vadd.f32 %v2856_v24, %v3595_v26  ;;  %v2961_v24 = vld [vmem:[%s3663_s0 + $0x38] sm:$0xff]  }
 0x5ad   :  { %v1973_v27 = vpop.f32.mrf.mxu0 }
 0x5ae   :  { %v1974_v33 = vadd.f32 %v3595_v26, %v1973_v27  ;;  %v2054_v38 = vadd.f32 %v2038_v31, %v1982_v29  ;;  %v2050_v27 = vunpack.c.l.bf16 %v2961_v24  ;;  %v2051_v29 = vunpack.c.h.bf16 %v2961_v24 }
 0x5af   :  { %v2857_v60 = vpop.f32.mrf.mxu0 }
 0x5b0   :  { %v1985_v36 = vadd.f32 %v2857_v60, %v3595_v26  ;;  %v2052_v41 = vadd.f32 %v2036_v35, %v1974_v33 }
 0x5b1   :  { %v1976_v28 = vpop.f32.mrf.mxu0 }
 0x5b2   :  { %v2055_v39 = vadd.f32 %v2039_v32, %v1985_v36  ;;  %v1977_v40 = vadd.f32 %v3595_v26, %v1976_v28  ;;  %v2962_v32 = vld [vmem:[%s3663_s0 + $0x30] sm:$0xff]  }
 0x5b3   :  { %v2048_v60 = vunpack.c.l.bf16 %v2962_v32  ;;  %v2049_v34 = vunpack.c.h.bf16 %v2962_v32 }
 0x5b4   :  { %v2408_v43 = vpack.c.bf16 %v2055_v39, %v2054_v38  ;;  %v2053_v25 = vadd.f32 %v2037_v37, %v1977_v40 }
 0x5b6   :  { %2447 = vst [vmem:[%s3675_s14 + $0x8] sm:$0xff] %v2408_v43   ;;  %v2403_v44 = vpack.c.bf16 %v2053_v25, %v2052_v41 }
 0x5b8   :  { %2404 = vst [vmem:[%s3675_s14] sm:$0xff] %v2403_v44  }
 0x5bb   :  { %v2860_v45 = vpop.f32.mrf.mxu0 }
 0x5bc   :  { %v1998_v47 = vadd.f32 %v2860_v45, %v3595_v26 }
 0x5bd   :  { %v1989_v46 = vpop.f32.mrf.mxu0 }
 0x5be   :  { %v1990_v51 = vadd.f32 %v3595_v26, %v1989_v46  ;;  %v2058_v16 = vadd.f32 %v2042_v22, %v1998_v47 }
 0x5bf   :  { %v2861_v50 = vpop.f32.mrf.mxu0 }
 0x5c0   :  { %v2001_v19 = vadd.f32 %v2861_v50, %v3595_v26  ;;  %v2056_v11 = vadd.f32 %v2040_v52, %v1990_v51 }
 0x5c1   :  { %v1992_v54 = vpop.f32.mrf.mxu0 }
 0x5c2   :  { %v2059_v13 = vadd.f32 %v2043_v49, %v2001_v19  ;;  %v1993_v55 = vadd.f32 %v3595_v26, %v1992_v54 }
 0x5c4   :  { %v2418_v12 = vpack.c.bf16 %v2059_v13, %v2058_v16  ;;  %v2057_v56 = vadd.f32 %v2041_v53, %v1993_v55 }
 0x5c6   :  { %2449 = vst [vmem:[%s3675_s14 + $0x18] sm:$0xff] %v2418_v12   ;;  %v2413_v58 = vpack.c.bf16 %v2057_v56, %v2056_v11 }
 0x5c8   :  { %2448 = vst [vmem:[%s3675_s14 + $0x10] sm:$0xff] %v2413_v58  }
 0x5cb   :  { %v2864_v59 = vpop.f32.mrf.mxu0 }
 0x5cc   :  { %v2014_v63 = vadd.f32 %v2864_v59, %v3595_v26 }
 0x5cd   :  { %v2005_v61 = vpop.f32.mrf.mxu0 }
 0x5ce   :  { %v2006_v5 = vadd.f32 %v3595_v26, %v2005_v61  ;;  %v2062_v57 = vadd.f32 %v2046_v1, %v2014_v63 }
 0x5cf   :  { %v2865_v4 = vpop.f32.mrf.mxu0 }
 0x5d0   :  { %v2017_v8 = vadd.f32 %v2865_v4, %v3595_v26  ;;  %v2060_v14 = vadd.f32 %v2044_v7, %v2006_v5 }
 0x5d1   :  { %v2008_v10 = vpop.f32.mrf.mxu0 }
 0x5d2   :  { %v2063_v62 = vadd.f32 %v2047_v3, %v2017_v8  ;;  %v2009_v2 = vadd.f32 %v3595_v26, %v2008_v10 }
 0x5d4   :  { %v2428_v15 = vpack.c.bf16 %v2063_v62, %v2062_v57  ;;  %v2061_v17 = vadd.f32 %v2045_v9, %v2009_v2 }
 0x5d6   :  { %2451 = vst [vmem:[%s3675_s14 + $0x28] sm:$0xff] %v2428_v15   ;;  %v2423_v18 = vpack.c.bf16 %v2061_v17, %v2060_v14 }
 0x5d8   :  { %2450 = vst [vmem:[%s3675_s14 + $0x20] sm:$0xff] %v2423_v18  }
 0x5db   :  { %v2868_v20 = vpop.f32.mrf.mxu0 }
 0x5dc   :  { %v2030_v23 = vadd.f32 %v2868_v20, %v3595_v26 }
 0x5dd   :  { %v2021_v21 = vpop.f32.mrf.mxu0 }
 0x5de   :  { %v2022_v31 = vadd.f32 %v3595_v26, %v2021_v21  ;;  %v2066_v36 = vadd.f32 %v2050_v27, %v2030_v23 }
 0x5df   :  { %v2869_v30 = vpop.f32.mrf.mxu0 }
 0x5e0   :  { %v2033_v33 = vadd.f32 %v2869_v30, %v3595_v26  ;;  %v2064_v38 = vadd.f32 %v2048_v60, %v2022_v31 }
 0x5e1   :  { %v2024_v35 = vpop.f32.mrf.mxu0 }
 0x5e2   :  { %v2067_v37 = vadd.f32 %v2051_v29, %v2033_v33  ;;  %v2025_v28 = vadd.f32 %v3595_v26, %v2024_v35 }
 0x5e4   :  { %v2438_v39 = vpack.c.bf16 %v2067_v37, %v2066_v36  ;;  %v2065_v40 = vadd.f32 %v2049_v34, %v2025_v28 }
 0x5e6   :  { %2453 = vst [vmem:[%s3675_s14 + $0x38] sm:$0xff] %v2438_v39   ;;  %v2433_v41 = vpack.c.bf16 %v2065_v40, %v2064_v38 }
 0x5e8   :  { %2452 = vst [vmem:[%s3675_s14 + $0x30] sm:$0xff] %v2433_v41  }

// kernel: forward_pallas.8
= control target key start
LH: loop header
LB: loop body
LE: loop exit
PB: predicated region body
PF: predicated region fallthrough
CT: control target
= control target key end

     0   :  { %v3001_v2 = vmov 0   ;;  %s3681_s0 = inlined_call_operand.vmem [shape: bf16[128,128], index: 0, kind: input, shape index: {}]   ;;  %s3682_s1 = inlined_call_operand.vmem [shape: bf16[128,128], index: 1, kind: input, shape index: {}]   ;;  %s3683_s2 = inlined_call_operand.vmem [shape: s32[128,1], index: 2, kind: input, shape index: {}]   ;;  %s3684_s3 = inlined_call_operand.vmem [shape: s32[128,1], index: 3, kind: input, shape index: {}]   ;;  %s3685_s4 = inlined_call_operand.vmem [shape: f32[128,1], index: 4, kind: input, shape index: {}]   ;;  %s3686_s5 = inlined_call_operand.vmem [shape: bf16[384,128], index: 5, kind: input, shape index: {}]   ;;  %s3687_s6 = inlined_call_operand.vmem [shape: f32[1,128], index: 6, kind: input, shape index: {}]   ;;  %s3688_s7 = inlined_call_operand.vmem [shape: bf16[128,128], index: 7, kind: input, shape index: {}]   ;;  %s3689_s8 = inlined_call_operand.vmem [shape: f32[1,128], index: 8, kind: input, shape index: {}]   ;;  %s3690_s9 = inlined_call_operand.vmem [shape: bf16[256,128], index: 9, kind: input, shape index: {}]   ;;  %s3691_s10 = inlined_call_operand.vmem [shape: f32[1,128], index: 10, kind: input, shape index: {}]   ;;  %s3692_s11 = inlined_call_operand.vmem [shape: bf16[128,128], index: 11, kind: input, shape index: {}]   ;;  %s3693_s12 = inlined_call_operand.vmem [shape: f32[1,128], index: 12, kind: input, shape index: {}]   ;;  %s3694_s13 = inlined_call_operand.hbm [shape: bf16[128,128], index: 13, kind: output, shape index: {0}]   ;;  %s3695_s14 = inlined_call_operand.vmem [shape: bf16[128,128], index: 14, kind: output, shape index: {1}]  }
   0x1   :  { %v100_v0 = vld [vmem:[%s3684_s3] sm:$0xff]  ;;  %2890 = vset.pattern.permute.xlu1 %v3001_v2  ;;  %2889 = vset.pattern.permute.xlu0 %v3001_v2  ;;  %v101_v3 = vld [vmem:[%s3684_s3 + $0x8] sm:$0xff]  ;;  %v102_v5 = vld [vmem:[%s3684_s3 + $0x10] sm:$0xff] }
   0x2   :  { %v84_v1 = vld [vmem:[%s3683_s2] sm:$0xff]  ;;  %223 = vperm.xlu0 %2889, %v100_v0   ;;  %v85_v4 = vld [vmem:[%s3683_s2 + $0x8] sm:$0xff]  ;;  %v103_v6 = vld [vmem:[%s3684_s3 + $0x18] sm:$0xff] }
   0x3   :  { %119 = vperm.xlu1 %2890, %v84_v1   ;;  %v86_v7 = vld [vmem:[%s3683_s2 + $0x10] sm:$0xff]  ;;  %v87_v8 = vld [vmem:[%s3683_s2 + $0x18] sm:$0xff]  ;;  %v104_v11 = vld [vmem:[%s3684_s3 + $0x20] sm:$0xff] }
   0x4   :  { %v3109_v9 = vld [vmem:[%s3681_s0 + $0x38] sm:$0xff]   ;;  %v3114_v10 = vld [vmem:[%s3681_s0 + $0x30] sm:$0xff]   ;;  %v105_v12 = vld [vmem:[%s3684_s3 + $0x28] sm:$0xff] }
   0x5   :  { %v88_v13 = vld [vmem:[%s3683_s2 + $0x20] sm:$0xff]  ;;  %2723 = vmatprep.subr.bf16.mxu1 %v3109_v9  ;;  %2691 = vmatprep.subr.bf16.mxu0 %v3109_v9  ;;  %v3130_v14 = vld [vmem:[%s3681_s0 + $0x28] sm:$0xff]   ;;  %v106_v17 = vld [vmem:[%s3684_s3 + $0x30] sm:$0xff] }
   0x6   :  { %226 = vperm.xlu0 %2889, %v101_v3   ;;  %v89_v15 = vld [vmem:[%s3683_s2 + $0x28] sm:$0xff]  ;;  %2724 = vmatpush3.bf16.msra.mxu1 %v3109_v9  ;;  %v3140_v16 = vld [vmem:[%s3681_s0 + $0x20] sm:$0xff]   ;;  %v107_v18 = vld [vmem:[%s3684_s3 + $0x38] sm:$0xff] }
   0x7   :  { %122 = vperm.xlu1 %2890, %v85_v4   ;;  %2692 = vmatpush3.bf16.msra.mxu0 %v3109_v9  ;;  %v3155_v19 = vld [vmem:[%s3681_s0 + $0x18] sm:$0xff]   ;;  %v90_v20 = vld [vmem:[%s3683_s2 + $0x30] sm:$0xff]  ;;  %v108_v23 = vld [vmem:[%s3684_s3 + $0x40] sm:$0xff] }
   0x8   :  { %2725 = vmatprep.subr.bf16.mxu1 %v3114_v10  ;;  %2693 = vmatprep.subr.bf16.mxu0 %v3114_v10  ;;  %v91_v21 = vld [vmem:[%s3683_s2 + $0x38] sm:$0xff]  ;;  %v3170_v22 = vld [vmem:[%s3681_s0 + $0x10] sm:$0xff]   ;;  %v109_v24 = vld [vmem:[%s3684_s3 + $0x48] sm:$0xff] }
   0x9   :  { %v3185_v25 = vld [vmem:[%s3681_s0 + $0x8] sm:$0xff]   ;;  %v92_v26 = vld [vmem:[%s3683_s2 + $0x40] sm:$0xff]  ;;  %v110_v29 = vld [vmem:[%s3684_s3 + $0x50] sm:$0xff] }
   0xa   :  { %229 = vperm.xlu0 %2889, %v102_v5   ;;  %2726 = vmatpush3.bf16.msra.mxu1 %v3114_v10  ;;  %v93_v27 = vld [vmem:[%s3683_s2 + $0x48] sm:$0xff]  ;;  %v3200_v28 = vld [vmem:[%s3681_s0] sm:$0xff]   ;;  %v111_v30 = vld [vmem:[%s3684_s3 + $0x58] sm:$0xff] }
   0xb   :  { %232 = vperm.xlu1 %2890, %v103_v6   ;;  %2694 = vmatpush3.bf16.msra.mxu0 %v3114_v10  ;;  %v94_v31 = vld [vmem:[%s3683_s2 + $0x50] sm:$0xff]  ;;  %v95_v32 = vld [vmem:[%s3683_s2 + $0x58] sm:$0xff]  ;;  %v112_v33 = vld [vmem:[%s3684_s3 + $0x60] sm:$0xff] }
   0xc   :  { %2727 = vmatprep.subr.bf16.mxu1 %v3130_v14  ;;  %2695 = vmatprep.subr.bf16.mxu0 %v3130_v14  ;;  %v113_v34 = vld [vmem:[%s3684_s3 + $0x68] sm:$0xff]  ;;  %v96_v35 = vld [vmem:[%s3683_s2 + $0x60] sm:$0xff]  ;;  %v114_v37 = vld [vmem:[%s3684_s3 + $0x70] sm:$0xff] }
   0xd   :  { %v97_v36 = vld [vmem:[%s3683_s2 + $0x68] sm:$0xff]  ;;  %v115_v38 = vld [vmem:[%s3684_s3 + $0x78] sm:$0xff]  ;;  %v98_v39 = vld [vmem:[%s3683_s2 + $0x70] sm:$0xff] }
   0xe   :  { %125 = vperm.xlu0 %2889, %v86_v7   ;;  %2728 = vmatpush3.bf16.msra.mxu1 %v3130_v14  ;;  %v99_v40 = vld [vmem:[%s3683_s2 + $0x78] sm:$0xff] }
   0xf   :  { %128 = vperm.xlu1 %2890, %v87_v8   ;;  %2696 = vmatpush3.bf16.msra.mxu0 %v3130_v14 }
  0x10   :  { %2729 = vmatprep.subr.bf16.mxu1 %v3140_v16  ;;  %2697 = vmatprep.subr.bf16.mxu0 %v3140_v16 }
  0x12   :  { %235 = vperm.xlu0 %2889, %v104_v11   ;;  %2730 = vmatpush3.bf16.msra.mxu1 %v3140_v16 }
  0x13   :  { %238 = vperm.xlu1 %2890, %v105_v12   ;;  %2698 = vmatpush3.bf16.msra.mxu0 %v3140_v16 }
  0x14   :  { %2731 = vmatprep.subr.bf16.mxu1 %v3155_v19  ;;  %2699 = vmatprep.subr.bf16.mxu0 %v3155_v19 }
  0x16   :  { %131 = vperm.xlu0 %2889, %v88_v13   ;;  %2732 = vmatpush3.bf16.msra.mxu1 %v3155_v19 }
  0x17   :  { %134 = vperm.xlu1 %2890, %v89_v15   ;;  %2700 = vmatpush3.bf16.msra.mxu0 %v3155_v19 }
  0x18   :  { %2733 = vmatprep.subr.bf16.mxu1 %v3170_v22  ;;  %2701 = vmatprep.subr.bf16.mxu0 %v3170_v22 }
  0x1a   :  { %241 = vperm.xlu0 %2889, %v106_v17   ;;  %2734 = vmatpush3.bf16.msra.mxu1 %v3170_v22 }
  0x1b   :  { %244 = vperm.xlu1 %2890, %v107_v18   ;;  %2702 = vmatpush3.bf16.msra.mxu0 %v3170_v22 }
  0x1c   :  { %2735 = vmatprep.subr.bf16.mxu1 %v3185_v25  ;;  %2703 = vmatprep.subr.bf16.mxu0 %v3185_v25 }
  0x1e   :  { %137 = vperm.xlu0 %2889, %v90_v20   ;;  %2736 = vmatpush3.bf16.msra.mxu1 %v3185_v25 }
  0x1f   :  { %140 = vperm.xlu1 %2890, %v91_v21   ;;  %2704 = vmatpush3.bf16.msra.mxu0 %v3185_v25 }
  0x20   :  { %2737 = vmatprep.subr.bf16.mxu1 %v3200_v28  ;;  %2705 = vmatprep.subr.bf16.mxu0 %v3200_v28 }
  0x22   :  { %247 = vperm.xlu0 %2889, %v108_v23   ;;  %2738 = vmatpush3.bf16.msra.mxu1 %v3200_v28 }
  0x23   :  { %250 = vperm.xlu1 %2890, %v109_v24   ;;  %2706 = vmatpush3.bf16.msra.mxu0 %v3200_v28 }
  0x26   :  { %143 = vperm.xlu0 %2889, %v92_v26  }
  0x27   :  { %146 = vperm.xlu1 %2890, %v93_v27  }
  0x2a   :  { %253 = vperm.xlu0 %2889, %v110_v29  }
  0x2b   :  { %256 = vperm.xlu1 %2890, %v111_v30  }
  0x2e   :  { %149 = vperm.xlu0 %2889, %v94_v31  }
  0x2f   :  { %152 = vperm.xlu1 %2890, %v95_v32  }
  0x32   :  { %259 = vperm.xlu0 %2889, %v112_v33  }
  0x33   :  { %262 = vperm.xlu1 %2890, %v113_v34  }
  0x36   :  { %155 = vperm.xlu0 %2889, %v96_v35  }
  0x37   :  { %158 = vperm.xlu1 %2890, %v97_v36  }
  0x3a   :  { %265 = vperm.xlu0 %2889, %v114_v37  }
  0x3b   :  { %268 = vperm.xlu1 %2890, %v115_v38  }
  0x3c   :  { %20 = vsyncpa [#allocation4], 0  ;;  %v1493_v41 = vld [vmem:[%s3685_s4] sm:$0xff]  ;;  %v1494_v42 = vld [vmem:[%s3685_s4 + $0x8] sm:$0xff]  ;;  %v116_v56 = vlaneseq  ;;  %v3002_v62 = vmov 0.0  }
  0x3d   :  { %v1495_v43 = vld [vmem:[%s3685_s4 + $0x10] sm:$0xff]  ;;  %v1496_v44 = vld [vmem:[%s3685_s4 + $0x18] sm:$0xff]  ;;  %v1497_v45 = vld [vmem:[%s3685_s4 + $0x20] sm:$0xff]  ;;  %v3003_v2 = vmov 1.0|1.0  }
  0x3e   :  { %161 = vperm.xlu0 %2889, %v98_v39   ;;  %v1498_v46 = vld [vmem:[%s3685_s4 + $0x28] sm:$0xff]  ;;  %v1499_v47 = vld [vmem:[%s3685_s4 + $0x30] sm:$0xff]  ;;  %v1500_v48 = vld [vmem:[%s3685_s4 + $0x38] sm:$0xff]  ;;  %v3295_v57 = vand.u32 127, %v116_v56 }
  0x3f   :  { %164 = vperm.xlu1 %2890, %v99_v40   ;;  %v1501_v49 = vld [vmem:[%s3685_s4 + $0x40] sm:$0xff]  ;;  %v1502_v50 = vld [vmem:[%s3685_s4 + $0x48] sm:$0xff]  ;;  %v1503_v51 = vld [vmem:[%s3685_s4 + $0x50] sm:$0xff] }
  0x40   :  { %v1504_v52 = vld [vmem:[%s3685_s4 + $0x58] sm:$0xff]  ;;  %v1505_v53 = vld [vmem:[%s3685_s4 + $0x60] sm:$0xff]  ;;  %v1506_v54 = vld [vmem:[%s3685_s4 + $0x68] sm:$0xff] }
  0x41   :  { %v1507_v55 = vld [vmem:[%s3685_s4 + $0x70] sm:$0xff]  ;;  %v2899_v23 = vld [vmem:[%s3686_s5 + $0x78] sm:$0xff]   ;;  %v2904_v37 = vld [vmem:[%s3686_s5 + $0x68] sm:$0xff]  }
  0x42   :  { %2499 = vmatprep.subr.bf16.mxu0 %v2899_v23  ;;  %v2900_v27 = vld [vmem:[%s3686_s5 + $0x38] sm:$0xff]   ;;  %v2901_v29 = vld [vmem:[%s3686_s5 + $0x70] sm:$0xff]   ;;  %v2919_v23 = vld [vmem:[%s3686_s5 + $0x40] sm:$0xff]  }
  0x43   :  { %1511 = vperm.xlu1 %2890, %v1493_v41   ;;  %v2902_v30 = vld [vmem:[%s3686_s5 + $0xb8] sm:$0xff]   ;;  %v2903_v36 = vld [vmem:[%s3686_s5 + $0x30] sm:$0xff]   ;;  %v2906_v41 = vld [vmem:[%s3686_s5 + $0x28] sm:$0xff]  }
  0x44   :  { %2755 = vmatprep.subr.bf16.mxu1 %v2902_v30  ;;  %v2905_v38 = vld [vmem:[%s3686_s5 + $0xb0] sm:$0xff]  }
  0x47   :  { %1516 = vperm.xlu1 %2890, %v1494_v42   ;;  %v2907_v42 = vld [vmem:[%s3686_s5 + $0x60] sm:$0xff]  }
  0x4b   :  { %1521 = vperm.xlu1 %2890, %v1495_v43   ;;  %v2908_v43 = vld [vmem:[%s3686_s5 + $0xa8] sm:$0xff]  }
  0x4f   :  { %1526 = vperm.xlu1 %2890, %v1496_v44  }
  0x53   :  { %1531 = vperm.xlu1 %2890, %v1497_v45  }
  0x57   :  { %1536 = vperm.xlu1 %2890, %v1498_v46  }
  0x5b   :  { %1541 = vperm.xlu1 %2890, %v1499_v47  }
  0x5f   :  { %1546 = vperm.xlu1 %2890, %v1500_v48  }
  0x63   :  { %1551 = vperm.xlu1 %2890, %v1501_v49  }
  0x67   :  { %1556 = vperm.xlu1 %2890, %v1502_v50  }
  0x6b   :  { %1561 = vperm.xlu1 %2890, %v1503_v51  }
  0x6f   :  { %1566 = vperm.xlu1 %2890, %v1504_v52  }
  0x73   :  { %1571 = vperm.xlu1 %2890, %v1505_v53  }
  0x77   :  { %1576 = vperm.xlu1 %2890, %v1506_v54  }
  0x7b   :  { %1581 = vperm.xlu1 %2890, %v1507_v55  }
  0x7d   :  { %v224_v58 = vpop.permute.xlu0 %223 }
  0x7e   :  { %v120_v59 = vpop.permute.xlu1 %119  ;;  %vm270_vm3 = vcmp.eq.s32.totalorder %v224_v58, %v3295_v57 }
  0x7f   :  { %vm166_vm0 = vcmp.eq.s32.totalorder %v120_v59, %v3295_v57 }
  0x80   :  { %v2169_v63 = vsel %vm166_vm0, 1.0, %v3002_v62 }
  0x81   :  { %v227_v60 = vpop.permute.xlu0 %226 }
  0x82   :  { %v123_v61 = vpop.permute.xlu1 %122  ;;  %vm271_vm1 = vcmp.eq.s32.totalorder %v227_v60, %v3295_v57 }
  0x83   :  { %vm167_vm2 = vcmp.eq.s32.totalorder %v123_v61, %v3295_v57  ;;  %vm2225_vm5 = vmpackc.low %vm271_vm1, %vm270_vm3 }
  0x84   :  { %v2170_v0 = vsel %vm167_vm2, 1.0, %v3002_v62  ;;  %vm2209_vm4 = vmpackc.low %vm167_vm2, %vm166_vm0  ;;  %2739 = vmatprep.mubr.msk.bf16.mxu1 %vm2225_vm5, %v3003_v2 }
  0x85   :  { %v214_v1 = vpack.c.bf16 %v2170_v0, %v2169_v63  ;;  %2707 = vmatprep.mubr.msk.bf16.mxu0 %vm2209_vm4, %v3003_v2  ;;  %v230_v3 = vpop.permute.xlu0 %229 }
  0x86   :  { %v233_v4 = vpop.permute.xlu1 %232  ;;  %vm272_vm6 = vcmp.eq.s32.totalorder %v230_v3, %v3295_v57 }
  0x87   :  { %vm273_vm7 = vcmp.eq.s32.totalorder %v233_v4, %v3295_v57  ;;  %1329 = vxpose.xlu0.c.b16.start [1/8] %v214_v1, 128 }
  0x88   :  { %vm2227_vm8 = vmpackc.low %vm273_vm7, %vm272_vm6 }
  0x89   :  { %2740 = vmatmul.mubr.msk.bf16.vlgmr.msra.gmra.mxu1 %vm2227_vm8, %v3003_v2  ;;  %v126_v5 = vpop.permute.xlu0 %125 }
  0x8a   :  { %v129_v6 = vpop.permute.xlu1 %128  ;;  %vm168_vm9 = vcmp.eq.s32.totalorder %v126_v5, %v3295_v57  ;;  %2756 = vmatpush3.bf16.msra.mxu1 %v2902_v30  ;;  %v2924_v30 = vld [vmem:[%s3682_s1 + $0x8] sm:$0xff]  }
  0x8b   :  { %vm169_vm10 = vcmp.eq.s32.totalorder %v129_v6, %v3295_v57  ;;  %v2171_v7 = vsel %vm168_vm9, 1.0, %v3002_v62  ;;  %2757 = vmatprep.subr.bf16.mxu1 %v2905_v38 }
  0x8c   :  { %v2172_v8 = vsel %vm169_vm10, 1.0, %v3002_v62  ;;  %vm2211_vm11 = vmpackc.low %vm169_vm10, %vm168_vm9 }
  0x8d   :  { %v215_v11 = vpack.c.bf16 %v2172_v8, %v2171_v7  ;;  %2708 = vmatmul.mubr.msk.bf16.vlgmr.msra.gmra.mxu0 %vm2211_vm11, %v3003_v2  ;;  %v236_v12 = vpop.permute.xlu0 %235 }
  0x8e   :  { %v239_v13 = vpop.permute.xlu1 %238  ;;  %vm274_vm12 = vcmp.eq.s32.totalorder %v236_v12, %v3295_v57  ;;  %2500 = vmatpush3.bf16.msra.mxu0 %v2900_v27  ;;  %2758 = vmatpush3.bf16.msra.mxu1 %v2905_v38  ;;  %v2910_v12 = vld [vmem:[%s3686_s5 + $0x58] sm:$0xff]   ;;  %v2922_v27 = vld [vmem:[%s3686_s5 + $0x80] sm:$0xff]   ;;  %v2932_v38 = vld [vmem:[%s3688_s7 + $0x30] sm:$0xff]  }
  0x8f   :  { %vm275_vm13 = vcmp.eq.s32.totalorder %v239_v13, %v3295_v57  ;;  %1330 = vxpose.xlu0.c.b16.cont [2/8] %v215_v11, 128  ;;  %2501 = vmatprep.subr.bf16.mxu0 %v2901_v29  ;;  %v2909_v11 = vld [vmem:[%s3686_s5 + $0x20] sm:$0xff]   ;;  %v2913_v13 = vld [vmem:[%s3686_s5 + $0x50] sm:$0xff]  }
  0x90   :  { %vm2229_vm14 = vmpackc.low %vm275_vm13, %vm274_vm12  ;;  %2759 = vmatprep.subr.bf16.mxu1 %v2908_v43  ;;  %v2923_v29 = vld [vmem:[%s3682_s1] sm:$0xff]  }
  0x91   :  { %2743 = vmatprep.mubr.msk.bf16.mxu1 %vm2229_vm14, %v3003_v2  ;;  %v132_v15 = vpop.permute.xlu0 %131 }
  0x92   :  { %v135_v17 = vpop.permute.xlu1 %134  ;;  %vm170_vm15 = vcmp.eq.s32.totalorder %v132_v15, %v3295_v57  ;;  %2502 = vmatpush3.bf16.msra.mxu0 %v2903_v36  ;;  %2760 = vmatpush3.bf16.msra.mxu1 %v2908_v43  ;;  %v2914_v15 = vld [vmem:[%s3686_s5 + $0x98] sm:$0xff]  }
  0x93   :  { %vm171_vm0 = vcmp.eq.s32.totalorder %v135_v17, %v3295_v57  ;;  %v2173_v18 = vsel %vm170_vm15, 1.0, %v3002_v62  ;;  %2503 = vmatprep.subr.bf16.mxu0 %v2904_v37  ;;  %v2915_v17 = vld [vmem:[%s3686_s5 + $0x10] sm:$0xff]   ;;  %v2930_v36 = vld [vmem:[%s3682_s1 + $0x38] sm:$0xff]  }
  0x94   :  { %v2174_v20 = vsel %vm171_vm0, 1.0, %v3002_v62  ;;  %vm2213_vm1 = vmpackc.low %vm171_vm0, %vm170_vm15  ;;  %v2931_v37 = vld [vmem:[%s3688_s7 + $0x38] sm:$0xff]  }
  0x95   :  { %v216_v21 = vpack.c.bf16 %v2174_v20, %v2173_v18  ;;  %2711 = vmatprep.mubr.msk.bf16.mxu0 %vm2213_vm1, %v3003_v2  ;;  %v242_v24 = vpop.permute.xlu0 %241  ;;  %v2916_v18 = vld [vmem:[%s3686_s5 + $0x48] sm:$0xff]   ;;  %v2917_v20 = vld [vmem:[%s3686_s5 + $0x90] sm:$0xff]  }
  0x96   :  { %v245_v26 = vpop.permute.xlu1 %244  ;;  %vm276_vm2 = vcmp.eq.s32.totalorder %v242_v24, %v3295_v57  ;;  %2504 = vmatpush3.bf16.msra.mxu0 %v2906_v41  ;;  %v2920_v24 = vld [vmem:[%s3686_s5 + $0x88] sm:$0xff]  }
  0x97   :  { %vm277_vm3 = vcmp.eq.s32.totalorder %v245_v26, %v3295_v57  ;;  %1331 = vxpose.xlu0.c.b16.cont [3/8] %v216_v21, 128  ;;  %2505 = vmatprep.subr.bf16.mxu0 %v2907_v42  ;;  %v2918_v21 = vld [vmem:[%s3686_s5 + $0x8] sm:$0xff]   ;;  %v2921_v26 = vld [vmem:[%s3686_s5] sm:$0xff]  }
  0x98   :  { %vm2231_vm4 = vmpackc.low %vm277_vm3, %vm276_vm2 }
  0x99   :  { %2744 = vmatmul.mubr.msk.bf16.gmra.mxu1 %vm2231_vm4, %v3003_v2  ;;  %v138_v31 = vpop.permute.xlu0 %137 }
  0x9a   :  { %v141_v32 = vpop.permute.xlu1 %140  ;;  %vm172_vm5 = vcmp.eq.s32.totalorder %v138_v31, %v3295_v57  ;;  %2506 = vmatpush3.bf16.msra.mxu0 %v2909_v11  ;;  %v2925_v31 = vld [vmem:[%s3682_s1 + $0x10] sm:$0xff]  }
  0x9b   :  { %vm173_vm6 = vcmp.eq.s32.totalorder %v141_v32, %v3295_v57  ;;  %v2175_v33 = vsel %vm172_vm5, 1.0, %v3002_v62  ;;  %2507 = vmatprep.subr.bf16.mxu0 %v2910_v12  ;;  %v2926_v32 = vld [vmem:[%s3682_s1 + $0x18] sm:$0xff]  }
  0x9c   :  { %v2176_v34 = vsel %vm173_vm6, 1.0, %v3002_v62  ;;  %vm2215_vm7 = vmpackc.low %vm173_vm6, %vm172_vm5 }
  0x9d   :  { %v217_v35 = vpack.c.bf16 %v2176_v34, %v2175_v33  ;;  %2712 = vmatmul.mubr.msk.bf16.gmra.mxu0 %vm2215_vm7, %v3003_v2  ;;  %v248_v39 = vpop.permute.xlu0 %247  ;;  %v2927_v33 = vld [vmem:[%s3682_s1 + $0x20] sm:$0xff]   ;;  %v2928_v34 = vld [vmem:[%s3682_s1 + $0x28] sm:$0xff]  }
  0x9e   :  { %v251_v40 = vpop.permute.xlu1 %250  ;;  %vm278_vm8 = vcmp.eq.s32.totalorder %v248_v39, %v3295_v57 }
  0x9f   :  { %vm279_vm9 = vcmp.eq.s32.totalorder %v251_v40, %v3295_v57  ;;  %1332 = vxpose.xlu0.c.b16.cont [4/8] %v217_v35, 128  ;;  %v2929_v35 = vld [vmem:[%s3682_s1 + $0x30] sm:$0xff]  }
  0xa0   :  { %vm2233_vm10 = vmpackc.low %vm279_vm9, %vm278_vm8 }
  0xa1   :  { %2747 = vmatprep.mubr.msk.bf16.mxu1 %vm2233_vm10, %v3003_v2  ;;  %v144_v44 = vpop.permute.xlu0 %143 }
  0xa2   :  { %v147_v45 = vpop.permute.xlu1 %146  ;;  %vm174_vm11 = vcmp.eq.s32.totalorder %v144_v44, %v3295_v57 }
  0xa3   :  { %vm175_vm12 = vcmp.eq.s32.totalorder %v147_v45, %v3295_v57  ;;  %v2177_v46 = vsel %vm174_vm11, 1.0, %v3002_v62 }
  0xa4   :  { %v2178_v47 = vsel %vm175_vm12, 1.0, %v3002_v62  ;;  %vm2217_vm13 = vmpackc.low %vm175_vm12, %vm174_vm11 }
  0xa5   :  { %v218_v48 = vpack.c.bf16 %v2178_v47, %v2177_v46  ;;  %2715 = vmatprep.mubr.msk.bf16.mxu0 %vm2217_vm13, %v3003_v2  ;;  %v254_v49 = vpop.permute.xlu0 %253 }
  0xa6   :  { %v257_v50 = vpop.permute.xlu1 %256  ;;  %vm280_vm14 = vcmp.eq.s32.totalorder %v254_v49, %v3295_v57 }
  0xa7   :  { %vm281_vm15 = vcmp.eq.s32.totalorder %v257_v50, %v3295_v57  ;;  %1333 = vxpose.xlu0.c.b16.cont [5/8] %v218_v48, 128 }
  0xa8   :  { %vm2235_vm0 = vmpackc.low %vm281_vm15, %vm280_vm14 }
  0xa9   :  { %2748 = vmatmul.mubr.msk.bf16.gmra.mxu1 %vm2235_vm0, %v3003_v2  ;;  %v150_v51 = vpop.permute.xlu0 %149 }
  0xaa   :  { %v153_v52 = vpop.permute.xlu1 %152  ;;  %vm176_vm1 = vcmp.eq.s32.totalorder %v150_v51, %v3295_v57 }
  0xab   :  { %vm177_vm2 = vcmp.eq.s32.totalorder %v153_v52, %v3295_v57  ;;  %v2179_v53 = vsel %vm176_vm1, 1.0, %v3002_v62 }
  0xac   :  { %v2180_v54 = vsel %vm177_vm2, 1.0, %v3002_v62  ;;  %vm2219_vm3 = vmpackc.low %vm177_vm2, %vm176_vm1 }
  0xad   :  { %v219_v55 = vpack.c.bf16 %v2180_v54, %v2179_v53  ;;  %2716 = vmatmul.mubr.msk.bf16.gmra.mxu0 %vm2219_vm3, %v3003_v2  ;;  %v260_v56 = vpop.permute.xlu0 %259 }
  0xae   :  { %v263_v58 = vpop.permute.xlu1 %262  ;;  %vm282_vm4 = vcmp.eq.s32.totalorder %v260_v56, %v3295_v57 }
  0xaf   :  { %vm283_vm5 = vcmp.eq.s32.totalorder %v263_v58, %v3295_v57  ;;  %1334 = vxpose.xlu0.c.b16.cont [6/8] %v219_v55, 128 }
  0xb0   :  { %vm2237_vm6 = vmpackc.low %vm283_vm5, %vm282_vm4 }
  0xb1   :  { %2751 = vmatprep.mubr.msk.bf16.mxu1 %vm2237_vm6, %v3003_v2  ;;  %v156_v59 = vpop.permute.xlu0 %155 }
  0xb2   :  { %v159_v60 = vpop.permute.xlu1 %158  ;;  %vm178_vm7 = vcmp.eq.s32.totalorder %v156_v59, %v3295_v57 }
  0xb3   :  { %vm179_vm8 = vcmp.eq.s32.totalorder %v159_v60, %v3295_v57  ;;  %v2181_v61 = vsel %vm178_vm7, 1.0, %v3002_v62 }
  0xb4   :  { %v2182_v63 = vsel %vm179_vm8, 1.0, %v3002_v62  ;;  %vm2221_vm9 = vmpackc.low %vm179_vm8, %vm178_vm7 }
  0xb5   :  { %v220_v0 = vpack.c.bf16 %v2182_v63, %v2181_v61  ;;  %2719 = vmatprep.mubr.msk.bf16.mxu0 %vm2221_vm9, %v3003_v2  ;;  %v266_v1 = vpop.permute.xlu0 %265 }
  0xb6   :  { %v269_v3 = vpop.permute.xlu1 %268  ;;  %vm284_vm10 = vcmp.eq.s32.totalorder %v266_v1, %v3295_v57 }
  0xb7   :  { %vm285_vm11 = vcmp.eq.s32.totalorder %v269_v3, %v3295_v57  ;;  %1335 = vxpose.xlu0.c.b16.cont [7/8] %v220_v0, 128 }
  0xb8   :  { %vm2239_vm12 = vmpackc.low %vm285_vm11, %vm284_vm10 }
  0xb9   :  { %2752 = vmatmul.mubr.msk.bf16.gmra.mxu1 %vm2239_vm12, %v3003_v2  ;;  %v162_v4 = vpop.permute.xlu0 %161 }
  0xba   :  { %v165_v5 = vpop.permute.xlu1 %164  ;;  %vm180_vm13 = vcmp.eq.s32.totalorder %v162_v4, %v3295_v57  ;;  %2771 = vmatprep.mubr.bf16.mxu1 %v2923_v29 }
  0xbb   :  { %vm181_vm14 = vcmp.eq.s32.totalorder %v165_v5, %v3295_v57  ;;  %v2183_v6 = vsel %vm180_vm13, 1.0, %v3002_v62  ;;  %v2911_v57 = vld [vmem:[%s3686_s5 + $0xa0] sm:$0xff]  }
  0xbc   :  { %v2184_v7 = vsel %vm181_vm14, 1.0, %v3002_v62  ;;  %vm2223_vm15 = vmpackc.low %vm181_vm14, %vm180_vm13  ;;  %v2912_v62 = vld [vmem:[%s3686_s5 + $0x18] sm:$0xff]   ;;  %2761 = vmatprep.subr.bf16.mxu1 %v2911_v57 }
  0xbd   :  { %v221_v8 = vpack.c.bf16 %v2184_v7, %v2183_v6  ;;  %2720 = vmatmul.mubr.msk.bf16.gmra.mxu0 %vm2223_vm15, %v3003_v2  ;;  %v1508_v2 = vld [vmem:[%s3685_s4 + $0x78] sm:$0xff]  ;;  %2762 = vmatpush3.bf16.msra.mxu1 %v2911_v57 }
  0xbe   :  { %2508 = vmatpush3.bf16.msra.mxu0 %v2912_v62  ;;  %2763 = vmatprep.subr.bf16.mxu1 %v2914_v15 }
  0xbf   :  { %1336 = vxpose.xlu0.c.b16.end [8/8] %v221_v8, 128  ;;  %2509 = vmatprep.subr.bf16.mxu0 %v2913_v13 }
  0xc1   :  { %2764 = vmatpush3.bf16.msra.mxu1 %v2914_v15 }
  0xc2   :  { %2510 = vmatpush3.bf16.msra.mxu0 %v2915_v17  ;;  %2765 = vmatprep.subr.bf16.mxu1 %v2917_v20 }
  0xc3   :  { %2511 = vmatprep.subr.bf16.mxu0 %v2916_v18 }
  0xc5   :  { %2766 = vmatpush3.bf16.msra.mxu1 %v2917_v20 }
  0xc6   :  { %2512 = vmatpush3.bf16.msra.mxu0 %v2918_v21  ;;  %2767 = vmatprep.subr.bf16.mxu1 %v2920_v24 }
  0xc7   :  { %2513 = vmatprep.subr.bf16.mxu0 %v2919_v23 }
  0xc8   :  { %1586 = vperm.xlu0 %2889, %v1508_v2  }
  0xc9   :  { %2768 = vmatpush3.bf16.msra.mxu1 %v2920_v24 }
  0xca   :  { %2514 = vmatpush3.bf16.msra.mxu0 %v2921_v26  ;;  %2769 = vmatprep.subr.bf16.mxu1 %v2922_v27 }
  0xcd   :  { %2770 = vmatpush3.bf16.msra.mxu1 %v2922_v27 }
  0xce   :  { %2787 = vmatprep.subr.bf16.mxu1 %v2931_v37 }
  0xd0   :  { %2772 = vmatmul.mubr.bf16.vlgmr.msra.gmra.mxu1 %v2924_v30 }
  0xd1   :  { %2775 = vmatprep.mubr.bf16.mxu1 %v2925_v31  ;;  %2788 = vmatpush3.bf16.msra.mxu1 %v2931_v37  ;;  %v2938_v37 = vld [vmem:[%s3688_s7] sm:$0xff]  }
  0xd2   :  { %2789 = vmatprep.subr.bf16.mxu1 %v2932_v38 }
  0xd5   :  { %2790 = vmatpush3.bf16.msra.mxu1 %v2932_v38 }
  0xd8   :  { %2776 = vmatmul.mubr.bf16.gmra.mxu1 %v2926_v32  ;;  %v2933_v32 = vld [vmem:[%s3688_s7 + $0x28] sm:$0xff]  }
  0xd9   :  { %2779 = vmatprep.mubr.bf16.mxu1 %v2927_v33  ;;  %2791 = vmatprep.subr.bf16.mxu1 %v2933_v32  ;;  %v2934_v33 = vld [vmem:[%s3688_s7 + $0x20] sm:$0xff]  }
  0xda   :  { %2792 = vmatpush3.bf16.msra.mxu1 %v2933_v32 }
  0xdb   :  { %2793 = vmatprep.subr.bf16.mxu1 %v2934_v33 }
  0xde   :  { %2794 = vmatpush3.bf16.msra.mxu1 %v2934_v33 }
  0xe0   :  { %2780 = vmatmul.mubr.bf16.gmra.mxu1 %v2928_v34  ;;  %v2935_v34 = vld [vmem:[%s3688_s7 + $0x18] sm:$0xff]  }
  0xe1   :  { %2783 = vmatprep.mubr.bf16.mxu1 %v2929_v35  ;;  %2795 = vmatprep.subr.bf16.mxu1 %v2935_v34  ;;  %v2936_v35 = vld [vmem:[%s3688_s7 + $0x10] sm:$0xff]  }
  0xe2   :  { %2796 = vmatpush3.bf16.msra.mxu1 %v2935_v34 }
  0xe3   :  { %2797 = vmatprep.subr.bf16.mxu1 %v2936_v35 }
  0xe6   :  { %2798 = vmatpush3.bf16.msra.mxu1 %v2936_v35 }
  0xe8   :  { %2784 = vmatmul.mubr.bf16.gmra.mxu1 %v2930_v36  ;;  %v2937_v36 = vld [vmem:[%s3688_s7 + $0x8] sm:$0xff]  }
  0xe9   :  { %2799 = vmatprep.subr.bf16.mxu1 %v2937_v36 }
  0xea   :  { %2800 = vmatpush3.bf16.msra.mxu1 %v2937_v36 }
  0xeb   :  { %2801 = vmatprep.subr.bf16.mxu1 %v2938_v37 }
  0xee   :  { %2802 = vmatpush3.bf16.msra.mxu1 %v2938_v37 }
 0x105   :  { %v1337_v31 = vpop.trf.xlu0 }
 0x149   :  { %v2741_v39 = vpop.f32.mrf.mxu1 }
 0x14b   :  { %v513_v40 = vpop.f32.mrf.mxu1 }
 0x14d   :  { %v2709_v41 = vpop.f32.mrf.mxu0  ;;  %v2742_v42 = vpop.f32.mrf.mxu1 }
 0x14e   :  { %v577_v49 = vpack.c.bf16 %v2742_v42, %v2741_v39  ;;  %v3487_v42 = vld [vmem:[%s3687_s6] ss:$0 sm:$0xff] }
 0x14f   :  { %v408_v43 = vpop.f32.mrf.mxu0  ;;  %v516_v44 = vpop.f32.mrf.mxu1 }
 0x150   :  { %v576_v45 = vpack.c.bf16 %v516_v44, %v513_v40 }
 0x151   :  { %v2710_v46 = vpop.f32.mrf.mxu0 }
 0x152   :  { %879 = vmatprep.mubr.bf16.mxu0 %v576_v45  ;;  %v472_v52 = vpack.c.bf16 %v2710_v46, %v2709_v41 }
 0x153   :  { %v411_v47 = vpop.f32.mrf.mxu0 }
 0x154   :  { %v471_v48 = vpack.c.bf16 %v411_v47, %v408_v43 }
 0x156   :  { %880 = vmatmul.mubr.bf16.vlgmr.msra.gmra.mxu0 %v471_v48 }
 0x157   :  { %887 = vmatprep.mubr.bf16.mxu0 %v577_v49 }
 0x159   :  { %v2745_v50 = vpop.f32.mrf.mxu1 }
 0x15b   :  { %v529_v51 = vpop.f32.mrf.mxu1 }
 0x15d   :  { %v2713_v53 = vpop.f32.mrf.mxu0  ;;  %v2746_v54 = vpop.f32.mrf.mxu1 }
 0x15e   :  { %888 = vmatmul.mubr.bf16.gmra.mxu0 %v472_v52  ;;  %v579_v63 = vpack.c.bf16 %v2746_v54, %v2745_v50 }
 0x15f   :  { %v424_v55 = vpop.f32.mrf.mxu0  ;;  %v532_v56 = vpop.f32.mrf.mxu1 }
 0x160   :  { %v578_v58 = vpack.c.bf16 %v532_v56, %v529_v51 }
 0x161   :  { %v2714_v59 = vpop.f32.mrf.mxu0 }
 0x162   :  { %895 = vmatprep.mubr.bf16.mxu0 %v578_v58  ;;  %v474_v3 = vpack.c.bf16 %v2714_v59, %v2713_v53 }
 0x163   :  { %v427_v60 = vpop.f32.mrf.mxu0 }
 0x164   :  { %v473_v61 = vpack.c.bf16 %v427_v60, %v424_v55 }
 0x166   :  { %896 = vmatmul.mubr.bf16.gmra.mxu0 %v473_v61 }
 0x167   :  { %903 = vmatprep.mubr.bf16.mxu0 %v579_v63 }
 0x169   :  { %v2749_v0 = vpop.f32.mrf.mxu1 }
 0x16b   :  { %v545_v1 = vpop.f32.mrf.mxu1 }
 0x16d   :  { %v2717_v4 = vpop.f32.mrf.mxu0  ;;  %v2750_v5 = vpop.f32.mrf.mxu1 }
 0x16e   :  { %904 = vmatmul.mubr.bf16.gmra.mxu0 %v474_v3  ;;  %v581_v62 = vpack.c.bf16 %v2750_v5, %v2749_v0 }
 0x16f   :  { %v440_v6 = vpop.f32.mrf.mxu0  ;;  %v548_v7 = vpop.f32.mrf.mxu1 }
 0x170   :  { %v580_v8 = vpack.c.bf16 %v548_v7, %v545_v1 }
 0x171   :  { %v2718_v11 = vpop.f32.mrf.mxu0 }
 0x172   :  { %911 = vmatprep.mubr.bf16.mxu0 %v580_v8  ;;  %v476_v15 = vpack.c.bf16 %v2718_v11, %v2717_v4 }
 0x173   :  { %v443_v12 = vpop.f32.mrf.mxu0 }
 0x174   :  { %v475_v57 = vpack.c.bf16 %v443_v12, %v440_v6 }
 0x176   :  { %912 = vmatmul.mubr.bf16.gmra.mxu0 %v475_v57 }
 0x177   :  { %919 = vmatprep.mubr.bf16.mxu0 %v581_v62 }
 0x179   :  { %v2753_v2 = vpop.f32.mrf.mxu1 }
 0x17b   :  { %v561_v13 = vpop.f32.mrf.mxu1 }
 0x17d   :  { %v2721_v17 = vpop.f32.mrf.mxu0  ;;  %v2754_v18 = vpop.f32.mrf.mxu1 }
 0x17e   :  { %920 = vmatmul.mubr.bf16.gmra.mxu0 %v476_v15  ;;  %v583_v29 = vpack.c.bf16 %v2754_v18, %v2753_v2 }
 0x17f   :  { %v456_v20 = vpop.f32.mrf.mxu0  ;;  %v564_v21 = vpop.f32.mrf.mxu1 }
 0x180   :  { %v582_v23 = vpack.c.bf16 %v564_v21, %v561_v13 }
 0x181   :  { %v2722_v24 = vpop.f32.mrf.mxu0 }
 0x182   :  { %927 = vmatprep.mubr.bf16.mxu0 %v582_v23  ;;  %v478_v30 = vpack.c.bf16 %v2722_v24, %v2721_v17 }
 0x183   :  { %v459_v26 = vpop.f32.mrf.mxu0 }
 0x184   :  { %v477_v27 = vpack.c.bf16 %v459_v26, %v456_v20 }
 0x186   :  { %928 = vmatmul.mubr.bf16.gmra.mxu0 %v477_v27 }
 0x187   :  { %935 = vmatprep.mubr.bf16.mxu0 %v583_v29 }
 0x18e   :  { %936 = vmatmul.mubr.bf16.gmra.mxu0 %v478_v30 }
 0x18f   :  { %2835 = vmatprep.mubr.bf16.mxu0 %v1337_v31 }
 0x190   :  { %v2773_v38 = vpop.f32.mrf.mxu1 }
 0x192   :  { %v978_v40 = vpop.f32.mrf.mxu1 }
 0x194   :  { %v2774_v45 = vpop.f32.mrf.mxu1 }
 0x196   :  { %v981_v50 = vpop.f32.mrf.mxu1 }
 0x198   :  { %v2777_v58 = vpop.f32.mrf.mxu1 }
 0x19a   :  { %v994_v4 = vpop.f32.mrf.mxu1 }
 0x19c   :  { %v2778_v57 = vpop.f32.mrf.mxu1 }
 0x19e   :  { %v997_v21 = vpop.f32.mrf.mxu1 }
 0x1a0   :  { %v2781_v31 = vpop.f32.mrf.mxu1 }
 0x216   :  { %v2515_v39 = vpop.f32.mrf.mxu0 }
 0x218   :  { %v2516_v41 = vpop.f32.mrf.mxu0 }
 0x219   :  { %v2517_v43 = vadd.f32 %v2516_v41, %v2515_v39  ;;  %v1010_v39 = vpop.f32.mrf.mxu1 }
 0x21a   :  { %v2518_v44 = vpop.f32.mrf.mxu0 }
 0x21b   :  { %v882_v46 = vadd.f32 %v2517_v43, %v3487_v42 }
 0x21c   :  { %v2519_v47 = vpop.f32.mrf.mxu0 }
 0x21d   :  { %v2520_v48 = vadd.f32 %v2519_v47, %v2518_v44  ;;  %v979_v51 = vadd.f32 %v978_v40, %v882_v46  ;;  %v2782_v47 = vpop.f32.mrf.mxu1 }
 0x21e   :  { %v2521_v49 = vpop.f32.mrf.mxu0 }
 0x21f   :  { %v885_v52 = vadd.f32 %v2520_v48, %v3487_v42  ;;  %v1041_v59 = vmax.f32 %v979_v51, 0.0 }
 0x220   :  { %v2522_v53 = vpop.f32.mrf.mxu0 }
 0x221   :  { %v2523_v54 = vadd.f32 %v2522_v53, %v2521_v49  ;;  %v982_v55 = vadd.f32 %v981_v50, %v885_v52 }
 0x222   :  { %v2524_v56 = vpop.f32.mrf.mxu0 }
 0x223   :  { %v890_v60 = vadd.f32 %v2523_v54, %v3487_v42  ;;  %v1042_v61 = vmax.f32 %v982_v55, 0.0  ;;  %v1013_v55 = vpop.f32.mrf.mxu1 }
 0x224   :  { %v2525_v63 = vpop.f32.mrf.mxu0 }
 0x225   :  { %v1057_v0 = vpack.c.bf16 %v1042_v61, %v1041_v59  ;;  %v2526_v1 = vadd.f32 %v2525_v63, %v2524_v56  ;;  %v987_v5 = vadd.f32 %v2773_v38, %v890_v60 }
 0x226   :  { %v2527_v3 = vpop.f32.mrf.mxu0 }
 0x227   :  { %v893_v6 = vadd.f32 %v2526_v1, %v3487_v42  ;;  %2803 = vmatprep.mubr.bf16.mxu1 %v1057_v0  ;;  %v1043_v62 = vmax.f32 %v987_v5, 0.0  ;;  %v2785_v0 = vpop.f32.mrf.mxu1 }
 0x228   :  { %v2528_v7 = vpop.f32.mrf.mxu0 }
 0x229   :  { %v990_v8 = vadd.f32 %v2774_v45, %v893_v6  ;;  %v2529_v11 = vadd.f32 %v2528_v7, %v2527_v3 }
 0x22a   :  { %v2530_v12 = vpop.f32.mrf.mxu0 }
 0x22b   :  { %v1044_v2 = vmax.f32 %v990_v8, 0.0  ;;  %v898_v13 = vadd.f32 %v2529_v11, %v3487_v42  ;;  %v1026_v11 = vpop.f32.mrf.mxu1 }
 0x22c   :  { %v2531_v15 = vpop.f32.mrf.mxu0 }
 0x22d   :  { %v1058_v17 = vpack.c.bf16 %v1044_v2, %v1043_v62  ;;  %v2532_v18 = vadd.f32 %v2531_v15, %v2530_v12  ;;  %v995_v23 = vadd.f32 %v994_v4, %v898_v13 }
 0x22e   :  { %v2533_v20 = vpop.f32.mrf.mxu0 }
 0x22f   :  { %2804 = vmatmul.mubr.bf16.vlgmr.msra.gmra.mxu1 %v1058_v17  ;;  %v901_v24 = vadd.f32 %v2532_v18, %v3487_v42  ;;  %v1045_v32 = vmax.f32 %v995_v23, 0.0  ;;  %v2786_v17 = vpop.f32.mrf.mxu1 }
 0x230   :  { %v2534_v26 = vpop.f32.mrf.mxu0 }
 0x231   :  { %v2535_v27 = vadd.f32 %v2534_v26, %v2533_v20  ;;  %v998_v29 = vadd.f32 %v997_v21, %v901_v24 }
 0x232   :  { %v2536_v30 = vpop.f32.mrf.mxu0 }
 0x233   :  { %v906_v33 = vadd.f32 %v2535_v27, %v3487_v42  ;;  %v1046_v34 = vmax.f32 %v998_v29, 0.0  ;;  %v1029_v29 = vpop.f32.mrf.mxu1 }
 0x234   :  { %v2537_v35 = vpop.f32.mrf.mxu0 }
 0x235   :  { %v1059_v36 = vpack.c.bf16 %v1046_v34, %v1045_v32  ;;  %v2538_v37 = vadd.f32 %v2537_v35, %v2536_v30  ;;  %v1003_v40 = vadd.f32 %v2777_v58, %v906_v33 }
 0x236   :  { %v2539_v38 = vpop.f32.mrf.mxu0 }
 0x237   :  { %v909_v41 = vadd.f32 %v2538_v37, %v3487_v42  ;;  %2807 = vmatprep.mubr.bf16.mxu1 %v1059_v36  ;;  %v1047_v48 = vmax.f32 %v1003_v40, 0.0 }
 0x238   :  { %v2540_v43 = vpop.f32.mrf.mxu0 }
 0x239   :  { %v1006_v44 = vadd.f32 %v2778_v57, %v909_v41  ;;  %v2541_v45 = vadd.f32 %v2540_v43, %v2539_v38 }
 0x23a   :  { %v2542_v46 = vpop.f32.mrf.mxu0 }
 0x23b   :  { %v1048_v49 = vmax.f32 %v1006_v44, 0.0  ;;  %v914_v50 = vadd.f32 %v2541_v45, %v3487_v42 }
 0x23c   :  { %v2543_v51 = vpop.f32.mrf.mxu0 }
 0x23d   :  { %v2544_v52 = vadd.f32 %v2543_v51, %v2542_v46  ;;  %v1060_v53 = vpack.c.bf16 %v1048_v49, %v1047_v48  ;;  %v1011_v56 = vadd.f32 %v1010_v39, %v914_v50  ;;  %v2939_v49 = vld [vmem:[%s3690_s9 + $0x78] sm:$0xff]   ;;  %v2941_v51 = vld [vmem:[%s3690_s9 + $0x70] sm:$0xff]  }
 0x23e   :  { %v2545_v54 = vpop.f32.mrf.mxu0  ;;  %v2940_v50 = vld [vmem:[%s3690_s9 + $0x38] sm:$0xff]   ;;  %2611 = vmatprep.subr.bf16.mxu1 %v2939_v49 }
 0x23f   :  { %2808 = vmatmul.mubr.bf16.gmra.mxu1 %v1060_v53  ;;  %v917_v58 = vadd.f32 %v2544_v52, %v3487_v42  ;;  %v1049_v1 = vmax.f32 %v1011_v56, 0.0  ;;  %v2943_v52 = vld [vmem:[%s3690_s9 + $0x68] sm:$0xff]   ;;  %v2947_v56 = vld [vmem:[%s3690_s9 + $0x58] sm:$0xff]  }
 0x240   :  { %v2546_v59 = vpop.f32.mrf.mxu0  ;;  %2612 = vmatpush3.bf16.msra.mxu1 %v2940_v50  ;;  %v2944_v53 = vld [vmem:[%s3690_s9 + $0x28] sm:$0xff]  }
 0x241   :  { %v2547_v60 = vadd.f32 %v2546_v59, %v2545_v54  ;;  %v1014_v61 = vadd.f32 %v1013_v55, %v917_v58  ;;  %2613 = vmatprep.subr.bf16.mxu1 %v2941_v51  ;;  %v2945_v54 = vld [vmem:[%s3690_s9 + $0x60] sm:$0xff]   ;;  %v2948_v59 = vld [vmem:[%s3690_s9 + $0x18] sm:$0xff]   ;;  %v2949_v51 = vld [vmem:[%s3690_s9 + $0x50] sm:$0xff]  }
 0x242   :  { %v2548_v63 = vpop.f32.mrf.mxu0  ;;  %v2946_v55 = vld [vmem:[%s3690_s9 + $0x20] sm:$0xff]  }
 0x243   :  { %v922_v3 = vadd.f32 %v2547_v60, %v3487_v42  ;;  %v1050_v4 = vmax.f32 %v1014_v61, 0.0  ;;  %v2274_v60 = vld [vmem:[%s3689_s8] ss:$0 sm:$0xff] }
 0x244   :  { %v2549_v5 = vpop.f32.mrf.mxu0 }
 0x245   :  { %v1061_v6 = vpack.c.bf16 %v1050_v4, %v1049_v1  ;;  %v2550_v7 = vadd.f32 %v2549_v5, %v2548_v63  ;;  %v1019_v12 = vadd.f32 %v2781_v31, %v922_v3 }
 0x246   :  { %v2551_v8 = vpop.f32.mrf.mxu0 }
 0x247   :  { %v925_v57 = vadd.f32 %v2550_v7, %v3487_v42  ;;  %2811 = vmatprep.mubr.bf16.mxu1 %v1061_v6  ;;  %v1051_v18 = vmax.f32 %v1019_v12, 0.0 }
 0x248   :  { %v2552_v62 = vpop.f32.mrf.mxu0 }
 0x249   :  { %v1022_v2 = vadd.f32 %v2782_v47, %v925_v57  ;;  %v2553_v13 = vadd.f32 %v2552_v62, %v2551_v8 }
 0x24a   :  { %v2554_v15 = vpop.f32.mrf.mxu0 }
 0x24b   :  { %v1052_v20 = vmax.f32 %v1022_v2, 0.0  ;;  %v930_v21 = vadd.f32 %v2553_v13, %v3487_v42 }
 0x24c   :  { %v2555_v23 = vpop.f32.mrf.mxu0 }
 0x24d   :  { %v2556_v24 = vadd.f32 %v2555_v23, %v2554_v15  ;;  %v1062_v26 = vpack.c.bf16 %v1052_v20, %v1051_v18  ;;  %v1027_v30 = vadd.f32 %v1026_v11, %v930_v21 }
 0x24e   :  { %v2557_v27 = vpop.f32.mrf.mxu0 }
 0x24f   :  { %2812 = vmatmul.mubr.bf16.gmra.mxu1 %v1062_v26  ;;  %v933_v31 = vadd.f32 %v2556_v24, %v3487_v42  ;;  %v1053_v36 = vmax.f32 %v1027_v30, 0.0 }
 0x250   :  { %v2558_v32 = vpop.f32.mrf.mxu0 }
 0x251   :  { %v2559_v33 = vadd.f32 %v2558_v32, %v2557_v27  ;;  %v1030_v34 = vadd.f32 %v1029_v29, %v933_v31 }
 0x252   :  { %v2560_v35 = vpop.f32.mrf.mxu0 }
 0x253   :  { %v938_v37 = vadd.f32 %v2559_v33, %v3487_v42  ;;  %v1054_v38 = vmax.f32 %v1030_v34, 0.0 }
 0x254   :  { %v2561_v39 = vpop.f32.mrf.mxu0 }
 0x255   :  { %v1063_v40 = vpack.c.bf16 %v1054_v38, %v1053_v36  ;;  %v2562_v41 = vadd.f32 %v2561_v39, %v2560_v35  ;;  %v1035_v43 = vadd.f32 %v2785_v0, %v938_v37 }
 0x257   :  { %v941_v44 = vadd.f32 %v2562_v41, %v3487_v42  ;;  %2815 = vmatprep.mubr.bf16.mxu1 %v1063_v40  ;;  %v1055_v46 = vmax.f32 %v1035_v43, 0.0  ;;  %v2942_v42 = vld [vmem:[%s3690_s9 + $0x30] sm:$0xff]  }
 0x258   :  { %2614 = vmatpush3.bf16.msra.mxu1 %v2942_v42  ;;  %v2950_v42 = vld [vmem:[%s3690_s9 + $0x10] sm:$0xff]  }
 0x259   :  { %v1038_v45 = vadd.f32 %v2786_v17, %v941_v44  ;;  %2615 = vmatprep.subr.bf16.mxu1 %v2943_v52  ;;  %v1338_v44 = vpop.trf.xlu0  ;;  %v2951_v52 = vld [vmem:[%s3690_s9 + $0x48] sm:$0xff]  }
 0x25b   :  { %v1056_v47 = vmax.f32 %v1038_v45, 0.0 }
 0x25c   :  { %2616 = vmatpush3.bf16.msra.mxu1 %v2944_v53  ;;  %v2952_v53 = vld [vmem:[%s3690_s9 + $0x8] sm:$0xff]  }
 0x25d   :  { %v1064_v48 = vpack.c.bf16 %v1056_v47, %v1055_v46  ;;  %2617 = vmatprep.subr.bf16.mxu1 %v2945_v54  ;;  %v1339_v45 = vpop.trf.xlu0  ;;  %v2953_v54 = vld [vmem:[%s3690_s9 + $0x40] sm:$0xff]  }
 0x25f   :  { %2816 = vmatmul.mubr.bf16.gmra.mxu1 %v1064_v48 }
 0x260   :  { %2618 = vmatpush3.bf16.msra.mxu1 %v2946_v55  ;;  %v2954_v55 = vld [vmem:[%s3690_s9] sm:$0xff]  }
 0x261   :  { %2619 = vmatprep.subr.bf16.mxu1 %v2947_v56  ;;  %v1340_v46 = vpop.trf.xlu0  ;;  %v2955_v56 = vld [vmem:[%s3692_s11 + $0x38] sm:$0xff]  }
 0x264   :  { %2620 = vmatpush3.bf16.msra.mxu1 %v2948_v59  ;;  %v2957_v59 = vld [vmem:[%s3692_s11 + $0x28] sm:$0xff]  }
 0x265   :  { %v1341_v47 = vpop.trf.xlu0  ;;  %2621 = vmatprep.subr.bf16.mxu1 %v2949_v51 }
 0x268   :  { %2622 = vmatpush3.bf16.msra.mxu1 %v2950_v42 }
 0x269   :  { %v1342_v48 = vpop.trf.xlu0  ;;  %2623 = vmatprep.subr.bf16.mxu1 %v2951_v52 }
 0x26c   :  { %2624 = vmatpush3.bf16.msra.mxu1 %v2952_v53 }
 0x26d   :  { %v1343_v49 = vpop.trf.xlu0  ;;  %2625 = vmatprep.subr.bf16.mxu1 %v2953_v54 }
 0x270   :  { %2626 = vmatpush3.bf16.msra.mxu1 %v2954_v55  ;;  %v2960_v55 = vld [vmem:[%s3692_s11 + $0x10] sm:$0xff]  }
 0x271   :  { %v1344_v50 = vpop.trf.xlu0 }
 0x275   :  { %v1587_v42 = vpop.permute.xlu0 %1586 }
 0x2ef   :  { %v2805_v58 = vpop.f32.mrf.mxu1 }
 0x2f0   :  { %v1179_v0 = vadd.f32 %v2805_v58, %v2274_v60  ;;  %v2956_v58 = vld [vmem:[%s3692_s11 + $0x30] sm:$0xff]  }
 0x2f1   :  { %v1170_v61 = vpop.f32.mrf.mxu1 }
 0x2f2   :  { %v1171_v4 = vadd.f32 %v2274_v60, %v1170_v61 }
 0x2f3   :  { %v2806_v63 = vpop.f32.mrf.mxu1 }
 0x2f4   :  { %v1182_v1 = vadd.f32 %v2806_v63, %v2274_v60 }
 0x2f5   :  { %v1173_v3 = vpop.f32.mrf.mxu1 }
 0x2f6   :  { %v1234_v5 = vpack.c.bf16 %v1182_v1, %v1179_v0  ;;  %v1174_v6 = vadd.f32 %v2274_v60, %v1173_v3 }
 0x2f8   :  { %2453 = vst [vmem:[#allocation3 + $0x8] sm:$0xff] %v1234_v5   ;;  %v1233_v7 = vpack.c.bf16 %v1174_v6, %v1171_v4 }
 0x2fa   :  { %2377 = vst [vmem:[#allocation3] sm:$0xff] %v1233_v7  }
 0x2ff   :  { %v2809_v8 = vpop.f32.mrf.mxu1 }
 0x300   :  { %v1195_v57 = vadd.f32 %v2809_v8, %v2274_v60 }
 0x301   :  { %v1186_v11 = vpop.f32.mrf.mxu1 }
 0x302   :  { %v1187_v13 = vadd.f32 %v2274_v60, %v1186_v11 }
 0x303   :  { %v2810_v12 = vpop.f32.mrf.mxu1 }
 0x304   :  { %v1198_v62 = vadd.f32 %v2810_v12, %v2274_v60 }
 0x305   :  { %v1189_v2 = vpop.f32.mrf.mxu1 }
 0x306   :  { %v1236_v15 = vpack.c.bf16 %v1198_v62, %v1195_v57  ;;  %v1190_v17 = vadd.f32 %v2274_v60, %v1189_v2 }
 0x308   :  { %2455 = vst [vmem:[#allocation3 + $0x18] sm:$0xff] %v1236_v15   ;;  %v1235_v18 = vpack.c.bf16 %v1190_v17, %v1187_v13 }
 0x30a   :  { %2454 = vst [vmem:[#allocation3 + $0x10] sm:$0xff] %v1235_v18  }
 0x30f   :  { %v2813_v20 = vpop.f32.mrf.mxu1 }
 0x310   :  { %v1211_v24 = vadd.f32 %v2813_v20, %v2274_v60 }
 0x311   :  { %v1202_v21 = vpop.f32.mrf.mxu1 }
 0x312   :  { %v1203_v29 = vadd.f32 %v2274_v60, %v1202_v21 }
 0x313   :  { %v2814_v23 = vpop.f32.mrf.mxu1 }
 0x314   :  { %v1214_v26 = vadd.f32 %v2814_v23, %v2274_v60 }
 0x315   :  { %v1205_v27 = vpop.f32.mrf.mxu1 }
 0x316   :  { %v1238_v30 = vpack.c.bf16 %v1214_v26, %v1211_v24  ;;  %v1206_v31 = vadd.f32 %v2274_v60, %v1205_v27 }
 0x318   :  { %2457 = vst [vmem:[#allocation3 + $0x28] sm:$0xff] %v1238_v30   ;;  %v1237_v32 = vpack.c.bf16 %v1206_v31, %v1203_v29 }
 0x31a   :  { %2456 = vst [vmem:[#allocation3 + $0x20] sm:$0xff] %v1237_v32  }
 0x31f   :  { %v2817_v33 = vpop.f32.mrf.mxu1 }
 0x320   :  { %v1227_v36 = vadd.f32 %v2817_v33, %v2274_v60 }
 0x321   :  { %v1218_v34 = vpop.f32.mrf.mxu1 }
 0x322   :  { %v1219_v39 = vadd.f32 %v2274_v60, %v1218_v34 }
 0x323   :  { %v2818_v35 = vpop.f32.mrf.mxu1 }
 0x324   :  { %v1230_v37 = vadd.f32 %v2818_v35, %v2274_v60 }
 0x325   :  { %v1221_v38 = vpop.f32.mrf.mxu1 }
 0x326   :  { %v1240_v40 = vpack.c.bf16 %v1230_v37, %v1227_v36  ;;  %v1222_v41 = vadd.f32 %v2274_v60, %v1221_v38  ;;  %v1512_v60 = vpop.permute.xlu1 %1511 }
 0x328   :  { %2459 = vst [vmem:[#allocation3 + $0x38] sm:$0xff] %v1240_v40   ;;  %v1239_v43 = vpack.c.bf16 %v1222_v41, %v1219_v39  ;;  %2819 = vmatprep.subr.bf16.mxu0 %v1240_v40 }
 0x329   :  { %2820 = vmatpush3.bf16.msra.mxu0 %v1240_v40 }
 0x32a   :  { %2458 = vst [vmem:[#allocation3 + $0x30] sm:$0xff] %v1239_v43   ;;  %2821 = vmatprep.subr.bf16.mxu0 %v1239_v43  ;;  %v1517_v61 = vpop.permute.xlu1 %1516 }
 0x32d   :  { %2822 = vmatpush3.bf16.msra.mxu0 %v1239_v43 }
 0x32e   :  { %2823 = vmatprep.subr.bf16.mxu0 %v1238_v30  ;;  %v1522_v63 = vpop.permute.xlu1 %1521 }
 0x331   :  { %2824 = vmatpush3.bf16.msra.mxu0 %v1238_v30 }
 0x332   :  { %2825 = vmatprep.subr.bf16.mxu0 %v1237_v32  ;;  %v1527_v0 = vpop.permute.xlu1 %1526 }
 0x335   :  { %2826 = vmatpush3.bf16.msra.mxu0 %v1237_v32 }
 0x336   :  { %2827 = vmatprep.subr.bf16.mxu0 %v1236_v15  ;;  %v1532_v1 = vpop.permute.xlu1 %1531 }
 0x339   :  { %2828 = vmatpush3.bf16.msra.mxu0 %v1236_v15 }
 0x33a   :  { %2829 = vmatprep.subr.bf16.mxu0 %v1235_v18  ;;  %v1537_v3 = vpop.permute.xlu1 %1536 }
 0x33d   :  { %2830 = vmatpush3.bf16.msra.mxu0 %v1235_v18 }
 0x33e   :  { %2831 = vmatprep.subr.bf16.mxu0 %v1234_v5  ;;  %v1542_v6 = vpop.permute.xlu1 %1541 }
 0x341   :  { %2832 = vmatpush3.bf16.msra.mxu0 %v1234_v5 }
 0x342   :  { %2833 = vmatprep.subr.bf16.mxu0 %v1233_v7  ;;  %v1547_v15 = vpop.permute.xlu1 %1546 }
 0x345   :  { %2834 = vmatpush3.bf16.msra.mxu0 %v1233_v7 }
 0x346   :  { %2851 = vmatprep.subr.bf16.mxu0 %v2955_v56  ;;  %v1552_v24 = vpop.permute.xlu1 %1551 }
 0x348   :  { %2836 = vmatmul.mubr.bf16.vlgmr.msra.gmra.mxu0 %v1338_v44 }
 0x349   :  { %2839 = vmatprep.mubr.bf16.mxu0 %v1339_v45  ;;  %2852 = vmatpush3.bf16.msra.mxu0 %v2955_v56 }
 0x34a   :  { %2853 = vmatprep.subr.bf16.mxu0 %v2956_v58  ;;  %v1557_v31 = vpop.permute.xlu1 %1556 }
 0x34d   :  { %2854 = vmatpush3.bf16.msra.mxu0 %v2956_v58 }
 0x34e   :  { %2855 = vmatprep.subr.bf16.mxu0 %v2957_v59  ;;  %v1562_v36 = vpop.permute.xlu1 %1561 }
 0x350   :  { %2840 = vmatmul.mubr.bf16.gmra.mxu0 %v1340_v46 }
 0x351   :  { %2843 = vmatprep.mubr.bf16.mxu0 %v1341_v47  ;;  %2856 = vmatpush3.bf16.msra.mxu0 %v2957_v59 }
 0x352   :  { %v1567_v40 = vpop.permute.xlu1 %1566 }
 0x356   :  { %v1572_v44 = vpop.permute.xlu1 %1571 }
 0x358   :  { %2844 = vmatmul.mubr.bf16.gmra.mxu0 %v1342_v48 }
 0x359   :  { %2847 = vmatprep.mubr.bf16.mxu0 %v1343_v49 }
 0x360   :  { %2848 = vmatmul.mubr.bf16.gmra.mxu0 %v1344_v50 }
 0x408   :  { %v2837_v4 = vpop.f32.mrf.mxu0 }
 0x409   :  { %v1591_v2 = vmul.f32 %v2837_v4, %v1522_v63 }
 0x40a   :  { %v1379_v5 = vpop.f32.mrf.mxu0 }
 0x40b   :  { %v1589_v11 = vmul.f32 %v1512_v60, %v1379_v5  ;;  %v3591_v60 = vld [vmem:[%s3691_s10] ss:$0 sm:$0xff]  ;;  %s3004_s10 = smov [#allocation3]  }
 0x40c   :  { %v2838_v7 = vpop.f32.mrf.mxu0 }
 0x40d   :  { %v1592_v12 = vmul.f32 %v2838_v7, %v1527_v0 }
 0x40e   :  { %v1382_v8 = vpop.f32.mrf.mxu0 }
 0x40f   :  { %v1590_v57 = vmul.f32 %v1517_v61, %v1382_v8  ;;  %v1606_v18 = vpack.c.bf16 %v1592_v12, %v1591_v2 }
 0x410   :  { %v2841_v62 = vpop.f32.mrf.mxu0 }
 0x411   :  { %v1605_v13 = vpack.c.bf16 %v1590_v57, %v1589_v11  ;;  %v1595_v34 = vmul.f32 %v2841_v62, %v1542_v6 }
 0x412   :  { %v1395_v17 = vpop.f32.mrf.mxu0 }
 0x413   :  { %1780 = vmatprep.mubr.bf16.mxu1 %v1605_v13  ;;  %v1593_v27 = vmul.f32 %v1532_v1, %v1395_v17 }
 0x414   :  { %v2842_v20 = vpop.f32.mrf.mxu0  ;;  %1781 = vmatmul.mubr.bf16.vlgmr.msra.gmra.mxu1 %v3200_v28 }
 0x415   :  { %1788 = vmatprep.mubr.bf16.mxu1 %v1606_v18  ;;  %v1596_v32 = vmul.f32 %v2842_v20, %v1547_v15 }
 0x416   :  { %v1398_v21 = vpop.f32.mrf.mxu0 }
 0x417   :  { %v1594_v23 = vmul.f32 %v1537_v3, %v1398_v21  ;;  %v1608_v35 = vpack.c.bf16 %v1596_v32, %v1595_v34 }
 0x418   :  { %v2845_v26 = vpop.f32.mrf.mxu0 }
 0x419   :  { %v1607_v29 = vpack.c.bf16 %v1594_v23, %v1593_v27  ;;  %v1599_v46 = vmul.f32 %v2845_v26, %v1562_v36 }
 0x41a   :  { %v1411_v30 = vpop.f32.mrf.mxu0 }
 0x41b   :  { %v1597_v39 = vmul.f32 %v1552_v24, %v1411_v30 }
 0x41c   :  { %1789 = vmatmul.mubr.bf16.gmra.mxu1 %v3185_v25  ;;  %v2846_v33 = vpop.f32.mrf.mxu0 }
 0x41d   :  { %1796 = vmatprep.mubr.bf16.mxu1 %v1607_v29  ;;  %v1600_v25 = vmul.f32 %v2846_v33, %v1567_v40 }
 0x41e   :  { %v1414_v37 = vpop.f32.mrf.mxu0 }
 0x41f   :  { %v1598_v28 = vmul.f32 %v1557_v31, %v1414_v37  ;;  %v1610_v47 = vpack.c.bf16 %v1600_v25, %v1599_v46 }
 0x420   :  { %v2849_v38 = vpop.f32.mrf.mxu0 }
 0x421   :  { %v1609_v41 = vpack.c.bf16 %v1598_v28, %v1597_v39 }
 0x422   :  { %v1427_v43 = vpop.f32.mrf.mxu0 }
 0x423   :  { %v1601_v50 = vmul.f32 %v1572_v44, %v1427_v43 }
 0x424   :  { %1797 = vmatmul.mubr.bf16.gmra.mxu1 %v3170_v22  ;;  %v2850_v45 = vpop.f32.mrf.mxu0  ;;  %v1577_v22 = vpop.permute.xlu1 %1576 }
 0x425   :  { %1804 = vmatprep.mubr.bf16.mxu1 %v1608_v35  ;;  %v1604_v52 = vmul.f32 %v2850_v45, %v1587_v42 }
 0x426   :  { %v1430_v48 = vpop.f32.mrf.mxu0 }
 0x427   :  { %v1602_v49 = vmul.f32 %v1577_v22, %v1430_v48 }
 0x429   :  { %v1611_v51 = vpack.c.bf16 %v1602_v49, %v1601_v50 }
 0x42c   :  { %1805 = vmatmul.mubr.bf16.gmra.mxu1 %v3155_v19  ;;  %v1582_v19 = vpop.permute.xlu1 %1581 }
 0x42d   :  { %1812 = vmatprep.mubr.bf16.mxu1 %v1609_v41  ;;  %v1603_v53 = vmul.f32 %v2849_v38, %v1582_v19 }
 0x42f   :  { %v1612_v54 = vpack.c.bf16 %v1604_v52, %v1603_v53 }
 0x434   :  { %1813 = vmatmul.mubr.bf16.gmra.mxu1 %v3140_v16  ;;  %v2958_v16 = vld [vmem:[%s3692_s11 + $0x20] sm:$0xff]  }
 0x435   :  { %1820 = vmatprep.mubr.bf16.mxu1 %v1610_v47  ;;  %2857 = vmatprep.subr.bf16.mxu0 %v2958_v16 }
 0x436   :  { %2858 = vmatpush3.bf16.msra.mxu0 %v2958_v16 }
 0x43c   :  { %1821 = vmatmul.mubr.bf16.gmra.mxu1 %v3130_v14  ;;  %v2959_v14 = vld [vmem:[%s3692_s11 + $0x18] sm:$0xff]  }
 0x43d   :  { %1828 = vmatprep.mubr.bf16.mxu1 %v1611_v51  ;;  %2859 = vmatprep.subr.bf16.mxu0 %v2959_v14 }
 0x43e   :  { %2860 = vmatpush3.bf16.msra.mxu0 %v2959_v14 }
 0x43f   :  { %2861 = vmatprep.subr.bf16.mxu0 %v2960_v55 }
 0x442   :  { %2862 = vmatpush3.bf16.msra.mxu0 %v2960_v55 }
 0x444   :  { %1829 = vmatmul.mubr.bf16.gmra.mxu1 %v3114_v10  ;;  %v2962_v10 = vld [vmem:[%s3692_s11] sm:$0xff]  }
 0x445   :  { %1836 = vmatprep.mubr.bf16.mxu1 %v1612_v54 }
 0x44c   :  { %1837 = vmatmul.mubr.bf16.gmra.mxu1 %v3109_v9  ;;  %v2961_v9 = vld [vmem:[%s3692_s11 + $0x8] sm:$0xff]   ;;  %s2154_s11 = sshll.u32 %s3004_s10, 4  ;;  %s2155_s11 = int_to_ptr.vmem [resolvable:$true] %s2154_s11 }
 0x44d   :  { %2863 = vmatprep.subr.bf16.mxu0 %v2961_v9  ;;  %s2979_s30 = scalar_lea.vmem %s2155_s11, 1024  ;;  %p2984_p1 = scmp.lt.s32.totalorder %s2155_s11, %s2155_s11 }
 0x44e   :  { %2864 = vmatpush3.bf16.msra.mxu0 %v2961_v9  ;;  %p2980_p0 = scmp.ne.s32.totalorder %s2155_s11, %s2979_s30  ;;  %p2985_p2 = scmp.lt.s32.totalorder %s2979_s30, %s2979_s30 }
 0x44f   :  { %2865 = vmatprep.subr.bf16.mxu0 %v2962_v10 }
 0x450   :  { %p2986_p3 = por %p2985_p2, %p2984_p1 }
 0x452   :  { %2866 = vmatpush3.bf16.msra.mxu0 %v2962_v10  ;;  %p2987_p4 = pnand %p2986_p3, %p2980_p0 }
 0x4d4   :  { %v2627_v56 = vpop.f32.mrf.mxu1 }
 0x4d6   :  { %v2628_v58 = vpop.f32.mrf.mxu1 }
 0x4d7   :  { %v2629_v59 = vadd.f32 %v2628_v58, %v2627_v56 }
 0x4d8   :  { %v2630_v61 = vpop.f32.mrf.mxu1 }
 0x4d9   :  { %v1783_v0 = vadd.f32 %v2629_v59, %v3591_v60 }
 0x4da   :  { %v2631_v63 = vpop.f32.mrf.mxu1 }
 0x4db   :  { %v2632_v1 = vadd.f32 %v2631_v63, %v2630_v61  ;;  %v1845_v6 = vmax.f32 %v1783_v0, 0.0 }
 0x4dc   :  { %v2633_v3 = vpop.f32.mrf.mxu1 }
 0x4dd   :  { %v1786_v4 = vadd.f32 %v2632_v1, %v3591_v60 }
 0x4de   :  { %v2634_v5 = vpop.f32.mrf.mxu1 }
 0x4df   :  { %v1846_v7 = vmax.f32 %v1786_v4, 0.0  ;;  %v2635_v8 = vadd.f32 %v2634_v5, %v2633_v3 }
 0x4e0   :  { %v2636_v11 = vpop.f32.mrf.mxu1 }
 0x4e1   :  { %v1861_v12 = vpack.c.bf16 %v1846_v7, %v1845_v6  ;;  %v1791_v62 = vadd.f32 %v2635_v8, %v3591_v60 }
 0x4e2   :  { %v2637_v57 = vpop.f32.mrf.mxu1 }
 0x4e3   :  { %v2638_v2 = vadd.f32 %v2637_v57, %v2636_v11  ;;  %2867 = vmatprep.mubr.bf16.mxu0 %v1861_v12  ;;  %v1847_v18 = vmax.f32 %v1791_v62, 0.0 }
 0x4e4   :  { %v2639_v13 = vpop.f32.mrf.mxu1 }
 0x4e5   :  { %v1794_v15 = vadd.f32 %v2638_v2, %v3591_v60 }
 0x4e6   :  { %v2640_v17 = vpop.f32.mrf.mxu1 }
 0x4e7   :  { %v1848_v20 = vmax.f32 %v1794_v15, 0.0  ;;  %v2641_v21 = vadd.f32 %v2640_v17, %v2639_v13 }
 0x4e8   :  { %v2642_v23 = vpop.f32.mrf.mxu1 }
 0x4e9   :  { %v1862_v24 = vpack.c.bf16 %v1848_v20, %v1847_v18  ;;  %v1799_v27 = vadd.f32 %v2641_v21, %v3591_v60 }
 0x4ea   :  { %v2643_v26 = vpop.f32.mrf.mxu1 }
 0x4eb   :  { %v2644_v29 = vadd.f32 %v2643_v26, %v2642_v23  ;;  %2868 = vmatmul.mubr.bf16.vlgmr.msra.gmra.mxu0 %v1862_v24  ;;  %v1849_v33 = vmax.f32 %v1799_v27, 0.0 }
 0x4ec   :  { %v2645_v30 = vpop.f32.mrf.mxu1 }
 0x4ed   :  { %v1802_v31 = vadd.f32 %v2644_v29, %v3591_v60 }
 0x4ee   :  { %v2646_v32 = vpop.f32.mrf.mxu1 }
 0x4ef   :  { %v1850_v34 = vmax.f32 %v1802_v31, 0.0  ;;  %v2647_v35 = vadd.f32 %v2646_v32, %v2645_v30 }
 0x4f0   :  { %v2648_v36 = vpop.f32.mrf.mxu1 }
 0x4f1   :  { %v1863_v37 = vpack.c.bf16 %v1850_v34, %v1849_v33  ;;  %v1807_v38 = vadd.f32 %v2647_v35, %v3591_v60 }
 0x4f2   :  { %v2649_v28 = vpop.f32.mrf.mxu1 }
 0x4f3   :  { %v2650_v39 = vadd.f32 %v2649_v28, %v2648_v36  ;;  %2871 = vmatprep.mubr.bf16.mxu0 %v1863_v37  ;;  %v1851_v25 = vmax.f32 %v1807_v38, 0.0 }
 0x4f4   :  { %v2651_v40 = vpop.f32.mrf.mxu1 }
 0x4f5   :  { %v1810_v41 = vadd.f32 %v2650_v39, %v3591_v60 }
 0x4f6   :  { %v2652_v43 = vpop.f32.mrf.mxu1 }
 0x4f7   :  { %v1852_v44 = vmax.f32 %v1810_v41, 0.0  ;;  %v2653_v45 = vadd.f32 %v2652_v43, %v2651_v40 }
 0x4f8   :  { %v2654_v46 = vpop.f32.mrf.mxu1 }
 0x4f9   :  { %v1864_v47 = vpack.c.bf16 %v1852_v44, %v1851_v25  ;;  %v1815_v22 = vadd.f32 %v2653_v45, %v3591_v60 }
 0x4fa   :  { %v2655_v48 = vpop.f32.mrf.mxu1 }
 0x4fb   :  { %v2656_v49 = vadd.f32 %v2655_v48, %v2654_v46  ;;  %2872 = vmatmul.mubr.bf16.gmra.mxu0 %v1864_v47  ;;  %v1853_v52 = vmax.f32 %v1815_v22, 0.0 }
 0x4fc   :  { %v2657_v50 = vpop.f32.mrf.mxu1 }
 0x4fd   :  { %v1818_v51 = vadd.f32 %v2656_v49, %v3591_v60 }
 0x4fe   :  { %v2658_v42 = vpop.f32.mrf.mxu1 }
 0x4ff   :  { %v1854_v19 = vmax.f32 %v1818_v51, 0.0  ;;  %v2659_v53 = vadd.f32 %v2658_v42, %v2657_v50 }
 0x500   :  { %v2660_v54 = vpop.f32.mrf.mxu1 }
 0x501   :  { %v1865_v16 = vpack.c.bf16 %v1854_v19, %v1853_v52  ;;  %v1823_v55 = vadd.f32 %v2659_v53, %v3591_v60 }
 0x502   :  { %v2661_v14 = vpop.f32.mrf.mxu1 }
 0x503   :  { %v2662_v9 = vadd.f32 %v2661_v14, %v2660_v54  ;;  %2875 = vmatprep.mubr.bf16.mxu0 %v1865_v16  ;;  %v1855_v59 = vmax.f32 %v1823_v55, 0.0 }
 0x504   :  { %v2663_v10 = vpop.f32.mrf.mxu1 }
 0x505   :  { %v1826_v56 = vadd.f32 %v2662_v9, %v3591_v60 }
 0x506   :  { %v2664_v58 = vpop.f32.mrf.mxu1 }
 0x507   :  { %v1856_v61 = vmax.f32 %v1826_v56, 0.0  ;;  %v2665_v63 = vadd.f32 %v2664_v58, %v2663_v10 }
 0x508   :  { %v2666_v0 = vpop.f32.mrf.mxu1 }
 0x509   :  { %v1866_v1 = vpack.c.bf16 %v1856_v61, %v1855_v59  ;;  %v1831_v4 = vadd.f32 %v2665_v63, %v3591_v60 }
 0x50a   :  { %v2667_v3 = vpop.f32.mrf.mxu1 }
 0x50b   :  { %v2668_v5 = vadd.f32 %v2667_v3, %v2666_v0  ;;  %2876 = vmatmul.mubr.bf16.gmra.mxu0 %v1866_v1  ;;  %v1857_v11 = vmax.f32 %v1831_v4, 0.0 }
 0x50c   :  { %v2669_v6 = vpop.f32.mrf.mxu1 }
 0x50d   :  { %v1834_v7 = vadd.f32 %v2668_v5, %v3591_v60 }
 0x50e   :  { %v2670_v8 = vpop.f32.mrf.mxu1 }
 0x50f   :  { %v1858_v12 = vmax.f32 %v1834_v7, 0.0  ;;  %v2671_v57 = vadd.f32 %v2670_v8, %v2669_v6 }
 0x510   :  { %v2672_v62 = vpop.f32.mrf.mxu1 }
 0x511   :  { %v1867_v2 = vpack.c.bf16 %v1858_v12, %v1857_v11  ;;  %v1839_v15 = vadd.f32 %v2671_v57, %v3591_v60 }
 0x512   :  { %v2673_v13 = vpop.f32.mrf.mxu1 }
 0x513   :  { %v2674_v17 = vadd.f32 %v2673_v13, %v2672_v62  ;;  %2879 = vmatprep.mubr.bf16.mxu0 %v1867_v2  ;;  %v1859_v20 = vmax.f32 %v1839_v15, 0.0 }
 0x515   :  { %v1842_v18 = vadd.f32 %v2674_v17, %v3591_v60 }
 0x517   :  { %v1860_v21 = vmax.f32 %v1842_v18, 0.0 }
 0x519   :  { %v1868_v23 = vpack.c.bf16 %v1860_v21, %v1859_v20 }
 0x51b   :  { %2880 = vmatmul.mubr.bf16.gmra.mxu0 %v1868_v23 }
 0x51c   :  { %2990 = shalt.err (!%p2987_p4)
}
 0x51d   :  { %s3005_s3 = smov 64   ;;  %s3006_s15 = smov 4   ;;  %v3615_v24 = vld [vmem:[%s3693_s12] ss:$0 sm:$0xff]  ;;  %v2971_v29 = vld [vmem:[%s3681_s0 + $0x8] sm:$0xff]   ;;  %v2973_v48 = vld [vmem:[%s3681_s0 + $0x18] sm:$0xff]  }
 0x51e   :  { %2160 = dma.vmem_to_hbm [thread:$0]  %s2155_s11, 1024, %s3694_s13, [#allocation4], %s3005_s3, %s3005_s3, %s3006_s15   ;;  %v2039_v30 = vunpack.c.l.bf16 %v2971_v29  ;;  %v2040_v31 = vunpack.c.h.bf16 %v2971_v29  ;;  %v2043_v22 = vunpack.c.l.bf16 %v2973_v48  ;;  %v2044_v49 = vunpack.c.h.bf16 %v2973_v48 }
 0x51f   :  { %v2972_v34 = vld [vmem:[%s3681_s0] sm:$0xff]   ;;  %v2974_v42 = vld [vmem:[%s3681_s0 + $0x10] sm:$0xff]   ;;  %v2975_v0 = vld [vmem:[%s3681_s0 + $0x28] sm:$0xff]  }
 0x520   :  { %v2037_v35 = vunpack.c.l.bf16 %v2972_v34  ;;  %v2038_v37 = vunpack.c.h.bf16 %v2972_v34  ;;  %v2041_v52 = vunpack.c.l.bf16 %v2974_v42  ;;  %v2042_v53 = vunpack.c.h.bf16 %v2974_v42  ;;  %v2976_v6 = vld [vmem:[%s3681_s0 + $0x20] sm:$0xff]  }
 0x521   :  { %v2047_v1 = vunpack.c.l.bf16 %v2975_v0  ;;  %v2048_v3 = vunpack.c.h.bf16 %v2975_v0  ;;  %v2045_v7 = vunpack.c.l.bf16 %v2976_v6  ;;  %v2046_v11 = vunpack.c.h.bf16 %v2976_v6 }
 0x5ab   :  { %v2869_v60 = vpop.f32.mrf.mxu0 }
 0x5ac   :  { %v1983_v27 = vadd.f32 %v2869_v60, %v3615_v24  ;;  %v2977_v60 = vld [vmem:[%s3681_s0 + $0x38] sm:$0xff]  }
 0x5ad   :  { %v1974_v26 = vpop.f32.mrf.mxu0 }
 0x5ae   :  { %v1975_v33 = vadd.f32 %v3615_v24, %v1974_v26  ;;  %v2055_v38 = vadd.f32 %v2039_v30, %v1983_v27  ;;  %v2051_v26 = vunpack.c.l.bf16 %v2977_v60  ;;  %v2052_v27 = vunpack.c.h.bf16 %v2977_v60 }
 0x5af   :  { %v2870_v32 = vpop.f32.mrf.mxu0 }
 0x5b0   :  { %v1986_v36 = vadd.f32 %v2870_v32, %v3615_v24  ;;  %v2053_v41 = vadd.f32 %v2037_v35, %v1975_v33 }
 0x5b1   :  { %v1977_v28 = vpop.f32.mrf.mxu0 }
 0x5b2   :  { %v2056_v39 = vadd.f32 %v2040_v31, %v1986_v36  ;;  %v1978_v40 = vadd.f32 %v3615_v24, %v1977_v28  ;;  %v2978_v31 = vld [vmem:[%s3681_s0 + $0x30] sm:$0xff]  }
 0x5b3   :  { %v2049_v32 = vunpack.c.l.bf16 %v2978_v31  ;;  %v2050_v34 = vunpack.c.h.bf16 %v2978_v31 }
 0x5b4   :  { %v2421_v43 = vpack.c.bf16 %v2056_v39, %v2055_v38  ;;  %v2054_v25 = vadd.f32 %v2038_v37, %v1978_v40 }
 0x5b6   :  { %2460 = vst [vmem:[%s3695_s14 + $0x8] sm:$0xff] %v2421_v43   ;;  %v2416_v44 = vpack.c.bf16 %v2054_v25, %v2053_v41 }
 0x5b8   :  { %2417 = vst [vmem:[%s3695_s14] sm:$0xff] %v2416_v44  }
 0x5bb   :  { %v2873_v45 = vpop.f32.mrf.mxu0 }
 0x5bc   :  { %v1999_v47 = vadd.f32 %v2873_v45, %v3615_v24 }
 0x5bd   :  { %v1990_v46 = vpop.f32.mrf.mxu0 }
 0x5be   :  { %v1991_v51 = vadd.f32 %v3615_v24, %v1990_v46  ;;  %v2059_v16 = vadd.f32 %v2043_v22, %v1999_v47 }
 0x5bf   :  { %v2874_v50 = vpop.f32.mrf.mxu0 }
 0x5c0   :  { %v2002_v19 = vadd.f32 %v2874_v50, %v3615_v24  ;;  %v2057_v9 = vadd.f32 %v2041_v52, %v1991_v51 }
 0x5c1   :  { %v1993_v54 = vpop.f32.mrf.mxu0 }
 0x5c2   :  { %v2060_v14 = vadd.f32 %v2044_v49, %v2002_v19  ;;  %v1994_v55 = vadd.f32 %v3615_v24, %v1993_v54 }
 0x5c4   :  { %v2431_v10 = vpack.c.bf16 %v2060_v14, %v2059_v16  ;;  %v2058_v56 = vadd.f32 %v2042_v53, %v1994_v55 }
 0x5c6   :  { %2462 = vst [vmem:[%s3695_s14 + $0x18] sm:$0xff] %v2431_v10   ;;  %v2426_v58 = vpack.c.bf16 %v2058_v56, %v2057_v9 }
 0x5c8   :  { %2461 = vst [vmem:[%s3695_s14 + $0x10] sm:$0xff] %v2426_v58  }
 0x5cb   :  { %v2877_v59 = vpop.f32.mrf.mxu0 }
 0x5cc   :  { %v2015_v63 = vadd.f32 %v2877_v59, %v3615_v24 }
 0x5cd   :  { %v2006_v61 = vpop.f32.mrf.mxu0 }
 0x5ce   :  { %v2007_v5 = vadd.f32 %v3615_v24, %v2006_v61  ;;  %v2063_v57 = vadd.f32 %v2047_v1, %v2015_v63 }
 0x5cf   :  { %v2878_v4 = vpop.f32.mrf.mxu0 }
 0x5d0   :  { %v2018_v8 = vadd.f32 %v2878_v4, %v3615_v24  ;;  %v2061_v13 = vadd.f32 %v2045_v7, %v2007_v5 }
 0x5d1   :  { %v2009_v12 = vpop.f32.mrf.mxu0 }
 0x5d2   :  { %v2064_v62 = vadd.f32 %v2048_v3, %v2018_v8  ;;  %v2010_v2 = vadd.f32 %v3615_v24, %v2009_v12 }
 0x5d4   :  { %v2441_v15 = vpack.c.bf16 %v2064_v62, %v2063_v57  ;;  %v2062_v17 = vadd.f32 %v2046_v11, %v2010_v2 }
 0x5d6   :  { %2464 = vst [vmem:[%s3695_s14 + $0x28] sm:$0xff] %v2441_v15   ;;  %v2436_v18 = vpack.c.bf16 %v2062_v17, %v2061_v13 }
 0x5d8   :  { %2463 = vst [vmem:[%s3695_s14 + $0x20] sm:$0xff] %v2436_v18  }
 0x5db   :  { %v2881_v20 = vpop.f32.mrf.mxu0 }
 0x5dc   :  { %v2031_v23 = vadd.f32 %v2881_v20, %v3615_v24 }
 0x5dd   :  { %v2022_v21 = vpop.f32.mrf.mxu0 }
 0x5de   :  { %v2023_v30 = vadd.f32 %v3615_v24, %v2022_v21  ;;  %v2067_v36 = vadd.f32 %v2051_v26, %v2031_v23 }
 0x5df   :  { %v2882_v29 = vpop.f32.mrf.mxu0 }
 0x5e0   :  { %v2034_v33 = vadd.f32 %v2882_v29, %v3615_v24  ;;  %v2065_v38 = vadd.f32 %v2049_v32, %v2023_v30 }
 0x5e1   :  { %v2025_v35 = vpop.f32.mrf.mxu0 }
 0x5e2   :  { %v2068_v37 = vadd.f32 %v2052_v27, %v2034_v33  ;;  %v2026_v28 = vadd.f32 %v3615_v24, %v2025_v35 }
 0x5e4   :  { %v2451_v39 = vpack.c.bf16 %v2068_v37, %v2067_v36  ;;  %v2066_v40 = vadd.f32 %v2050_v34, %v2026_v28 }
 0x5e6   :  { %2466 = vst [vmem:[%s3695_s14 + $0x38] sm:$0xff] %v2451_v39   ;;  %v2446_v41 = vpack.c.bf16 %v2066_v40, %v2065_v38 }
 0x5e8   :  { %2465 = vst [vmem:[%s3695_s14 + $0x30] sm:$0xff] %v2446_v41  }
 0x5e9   :  { %2999 = dma.done.wait [#allocation4], 1024  }
 0x5ea   :  { %3000 = vsyncadd [#allocation4], 4294966272 }
 0x5eb   :  { %2168 = vsyncpa [#allocation4], 1 }

</bundles_post_ra>
